<compile_context>
chip_gen: v7x
topology: tpu7x:2x2x1
jax: 0.10.0
libtpu: 0.0.40
codegen_flags: <defaults>
</compile_context>

<pallas_src>
import functools

import jax
import jax.numpy as jnp
import numpy as np
from jax.experimental import pallas as pl
from jax.experimental.pallas import tpu as pltpu

# ----------------------------- configuration --------------------------------
IN_FEATURES = 4
OUT_FEATURES = 8
ORDER = 3                 # spline order k
GRID_INTERVALS = 5        # G
GRID_MIN, GRID_MAX = -1.0, 1.0
INIT_NOISE = 0.1
SPLINE_SCALE = 1.0
RESIDUAL_SCALE = 1.0
S = IN_FEATURES * OUT_FEATURES                # number of edges (o*i)
GEXT = GRID_INTERVALS + 1 + 2 * ORDER         # extended grid length
NBASIS = GRID_INTERVALS + ORDER               # number of B-spline basis fns


# ------------------------- plain-JAX init helpers ---------------------------
def extend_grid(grid, k):
    # grid: (s, G+1) -> (s, G+1+2k), replicating pykan's extend_grid
    h = (grid[:, -1:] - grid[:, :1]) / (grid.shape[1] - 1)
    for _ in range(k):
        grid = jnp.concatenate([grid[:, :1] - h, grid, grid[:, -1:] + h], axis=1)
    return grid


def b_batch(x_eval, grid, k):
    # x_eval: (s, n), grid: (s, G+1)  ->  B-spline bases (s, G+k, n)
    g = extend_grid(grid, k)                 # (s, Gext)
    xg = x_eval[:, None, :]                  # (s, 1, n)
    gg = g[:, :, None]                       # (s, Gext, 1)
    B = ((xg >= gg[:, :-1]) & (xg < gg[:, 1:])).astype(x_eval.dtype)
    for d in range(1, k + 1):
        B = ((xg - gg[:, :-(d + 1)]) / (gg[:, d:-1] - gg[:, :-(d + 1)]) * B[:, :-1]
             + (gg[:, d + 1:] - xg) / (gg[:, d + 1:] - gg[:, 1:-d]) * B[:, 1:])
    return B


def curve2coef(x_eval, y_eval, grid, k):
    # least-squares fit of B-spline coefficients (matches pykan's curve2coef)
    A = jnp.transpose(b_batch(x_eval, grid, k), (0, 2, 1))  # (s, n, G+k)

    def solve(Ai, yi):
        return jnp.linalg.lstsq(Ai, yi)[0]

    return jax.vmap(solve)(A, y_eval)        # (s, G+k)


# ------------------------------ Pallas kernel --------------------------------
def kan_kernel(order, gext, nbasis, o, i, emit_aux,
               x_ref, knots_ref, cy_ref, cs_ref, *out_refs):
    # x_ref:     (i, tb)              transposed input tile (batch on lanes)
    # knots_ref: (i, gext + 2*sum_n)  per-input-feature knots + span reciprocals
    # cy_ref:    (s, i*(nbasis+1))    mask*ss*coef | mask*rs  (MXU contraction)
    # cs_ref:    (s, i*(nbasis+1))    coef | 0                (post_spline)
    # outputs:   ysum (o, tb) [+ postact (s, tb), postspline (s, tb)]
    if emit_aux:
        ysum_ref, postact_ref, postspline_ref = out_refs
    else:
        (ysum_ref,) = out_refs

    x = x_ref[...]                                        # (i, tb)

    def kcol(c):
        # one knot / reciprocal column: (i, 1), lane-broadcasts against (i, tb)
        return knots_ref[:, c:c + 1]

    # ---- order-0 indicator bases (booleans; only one `ge` kept live) --------
    ge_prev = x >= kcol(0)
    B = []
    for j in range(gext - 1):
        ge_next = x >= kcol(j + 1)
        B.append(jnp.logical_and(ge_prev, jnp.logical_not(ge_next)))
        ge_prev = ge_next

    # ---- Cox-de Boor recursion on (i, tb) rows (grid shared across outputs).
    # Reciprocal knot spans are precomputed in the wrapper -> no in-kernel
    # divides; (x - t_j) is recomputed at use to bound the live set.
    col = gext
    for d in range(1, order + 1):
        n = gext - 1 - d
        newB = []
        for j in range(n):
            lt = (x - kcol(j)) * kcol(col + j)            # (x-t_j)/(t_{j+d}-t_j)
            rt = (x - kcol(j + d + 1)) * kcol(col + n + j)
            if d == 1:
                # consume boolean indicators directly (no cast + multiply)
                nb = jnp.where(B[j], lt, 0.0) - jnp.where(B[j + 1], rt, 0.0)
            else:
                nb = lt * B[j] - rt * B[j + 1]
            newB.append(nb)
        B = newB
        col += 2 * n
    if order == 0:
        B = [b.astype(jnp.float32) for b in B]

    # ---- SiLU residual on the un-replicated (i, tb) input (EUP) -------------
    base = x * jax.nn.sigmoid(x)

    # ---- per-edge expansion + contraction on the MXU ------------------------
    # b_ext rows: [B_0 | B_1 | ... | B_{nbasis-1} | base], row = j*i + k
    b_ext = jnp.concatenate(B + [base], axis=0)           # (i*(nbasis+1), tb)

    # y[(k*o+o'), b] = mask*(ss*spline + rs*silu(x_k))  -- one small f32 dot
    y = jnp.dot(cy_ref[...], b_ext,
                preferred_element_type=jnp.float32,
                precision=jax.lax.Precision.HIGHEST)      # (s, tb)

    # sum over in_features: in-major edge rows -> contiguous aligned o-groups
    ysum = y[0:o, :]
    for k in range(1, i):
        ysum = ysum + y[k * o:(k + 1) * o, :]
    ysum_ref[...] = ysum                                  # (o, tb), lane-dense

    if emit_aux:
        postact_ref[...] = y
        postspline_ref[...] = jnp.dot(cs_ref[...], b_ext,
                                      preferred_element_type=jnp.float32,
                                      precision=jax.lax.Precision.HIGHEST)


# ------------------------------ wrapper --------------------------------------
def kan_forward(x, grid, coef, residual_scale, spline_scale, mask,
                *, out_features=OUT_FEATURES, order=ORDER,
                batch_tile=512, return_intermediates=True):
    b, in_features = x.shape
    o = out_features
    i = in_features
    s = o * i

    # lane-dense batch tile (multiple of 128); pad batch up to a whole grid
    tb = max(128, (int(batch_tile) // 128) * 128)
    b_pad = ((b + tb - 1) // tb) * tb
    n_blocks = b_pad // tb

    grid_ext = extend_grid(jnp.asarray(grid, jnp.float32), order)    # (s, gext)
    gext = grid_ext.shape[1]
    nbasis = coef.shape[1]
    assert nbasis == gext - 1 - order

    # Shared-grid fast path: the basis recursion runs once per INPUT feature,
    # so all out_features edges of an input feature must share their grid
    # (always true for KANLayer's broadcast-linspace init + identity
    # weight_sharing).  Checked when the grid is concrete.
    if not isinstance(grid_ext, jax.core.Tracer):
        g_np = np.asarray(grid_ext).reshape(o, i, gext)
        assert np.all(g_np == g_np[:1]), (
            "kan_forward requires every output edge of an input feature to "
            "share the same grid (holds for KANLayer's init).")
    g_if = grid_ext.reshape(o, i, gext)[0]                           # (i, gext)

    # Cox-de Boor denominators depend only on the grid: precompute reciprocals.
    # NOTE: the zero-span guard diverges from pykan's unguarded division
    # (which would give inf/NaN) on degenerate/coincident knots.
    knot_cols = [g_if]
    for d in range(1, order + 1):
        n = gext - 1 - d
        lspan = g_if[:, d:d + n] - g_if[:, 0:n]              # t[j+d]   - t[j]
        rspan = g_if[:, d + 1:d + 1 + n] - g_if[:, 1:1 + n]  # t[j+d+1] - t[j+1]
        knot_cols.append(jnp.where(lspan != 0, 1.0 / lspan, 0.0))
        knot_cols.append(jnp.where(rspan != 0, 1.0 / rspan, 0.0))
    knots = jnp.concatenate(knot_cols, axis=1)                       # (i, nk)
    n_kcols = knots.shape[1]

    # Edge-coefficient matrices for the MXU contraction.  b_ext rows are
    # (j*i + k) basis rows followed by i residual rows; kernel output rows are
    # in-major edges r = k*o + o'; PyTorch params are out-major e = o'*i + k.
    coef_oi = jnp.asarray(coef, jnp.float32).reshape(o, i, nbasis)   # [o',k,j]
    msk = jnp.asarray(mask, jnp.float32).reshape(o, i)
    mss = msk * jnp.asarray(spline_scale, jnp.float32).reshape(o, i)
    mrs = msk * jnp.asarray(residual_scale, jnp.float32).reshape(o, i)
    eye_i = jnp.eye(i, dtype=jnp.float32)
    cy = jnp.concatenate(
        [jnp.einsum('okj,kc->kojc', mss[..., None] * coef_oi,
                    eye_i).reshape(s, nbasis * i),
         jnp.einsum('ok,kc->koc', mrs, eye_i).reshape(s, i)],
        axis=1)                                                      # (s, 36)
    cs = jnp.concatenate(
        [jnp.einsum('okj,kc->kojc', coef_oi, eye_i).reshape(s, nbasis * i),
         jnp.zeros((s, i), jnp.float32)],
        axis=1)                                                      # (s, 36)
    n_ext = cy.shape[1]

    # batch-on-lanes input layout (x DMA'd once per tile as (i, tb))
    x_t = jnp.transpose(jnp.asarray(x, jnp.float32))                 # (i, b)
    if b_pad != b:
        x_t = jnp.pad(x_t, ((0, 0), (0, b_pad - b)))

    kernel = functools.partial(kan_kernel, order, gext, nbasis, o, i,
                               return_intermediates)

    out_shape = [jax.ShapeDtypeStruct((o, b_pad), jnp.float32)]
    out_specs = [pl.BlockSpec((o, tb), lambda gi: (0, gi))]
    if return_intermediates:
        out_shape += [jax.ShapeDtypeStruct((s, b_pad), jnp.float32)] * 2
        out_specs += [pl.BlockSpec((s, tb), lambda gi: (0, gi)),
                      pl.BlockSpec((s, tb), lambda gi: (0, gi))]

    outs = pl.pallas_call(
        kernel,
        out_shape=tuple(out_shape),
        grid_spec=pltpu.PrefetchScalarGridSpec(
            num_scalar_prefetch=0,
            grid=(n_blocks,),
            in_specs=[
                pl.BlockSpec((i, tb), lambda gi: (0, gi)),        # x^T tile
                pl.BlockSpec((i, n_kcols), lambda gi: (0, 0)),    # knots+recips
                pl.BlockSpec((s, n_ext), lambda gi: (0, 0)),      # C_y
                pl.BlockSpec((s, n_ext), lambda gi: (0, 0)),      # C_spline
            ],
            out_specs=out_specs,
        ),
        compiler_params=pltpu.CompilerParams(
            dimension_semantics=("parallel",)),      # megacore sharding on v7x
    )(x_t, knots, cy, cs)

    ysum_t = outs[0]
    y_sum = jnp.transpose(ysum_t[:, :b])                             # (b, o)
    pre_activation = jnp.broadcast_to(
        jnp.asarray(x, jnp.float32)[:, None, :], (b, o, i))

    if not return_intermediates:
        return y_sum, pre_activation, None, None

    # kernel-native layout is (edge = k*o + o', batch); restore PyTorch (b,o,i)
    postact_t, postspline_t = outs[1], outs[2]
    post_activation = jnp.transpose(postact_t[:, :b].reshape(i, o, b), (2, 1, 0))
    post_spline = jnp.transpose(postspline_t[:, :b].reshape(i, o, b), (2, 1, 0))
    return y_sum, pre_activation, post_activation, post_spline


# --------------------------- pure-JAX reference ------------------------------
def reference_forward(x, grid, coef, rs, ss, mask, o, k):
    b, i = x.shape
    x_sb = jnp.tile(x, (1, o)).T                            # (s, b), out-major
    base = (x_sb * jax.nn.sigmoid(x_sb)).T                  # (b, s)
    B = b_batch(x_sb, grid, k)                              # (s, G+k, b)
    y = jnp.einsum('sj,sjb->sb', coef, B).T                 # (b, s)
    post_spline = y.reshape(b, o, i)
    y = rs[None, :] * base + ss[None, :] * y
    y = mask[None, :] * y
    post_act = y.reshape(b, o, i)
    y_sum = post_act.sum(axis=2)
    pre_act = jnp.broadcast_to(x[:, None, :], (b, o, i))
    return y_sum, pre_act, post_act, post_spline


# --------------------------------- main --------------------------------------
if __name__ == "__main__":
    key = jax.random.PRNGKey(0)
    k_noise, k_x = jax.random.split(key)

    # deterministic parameter init (mirrors KANLayer.__init__ shapes)
    grid = jnp.broadcast_to(
        jnp.linspace(GRID_MIN, GRID_MAX, GRID_INTERVALS + 1, dtype=jnp.float32),
        (S, GRID_INTERVALS + 1)).astype(jnp.float32)
    noises = ((jax.random.uniform(k_noise, (S, GRID_INTERVALS + 1),
                                  dtype=jnp.float32) - 0.5)
              * INIT_NOISE / GRID_INTERVALS)
    coef = curve2coef(grid, noises, grid, ORDER)            # (S, G+k)
    residual_scale = jnp.full((S,), RESIDUAL_SCALE, dtype=jnp.float32)
    spline_scale = jnp.full((S,), SPLINE_SCALE, dtype=jnp.float32)
    mask = jnp.ones((S,), dtype=jnp.float32)

    # example input: (batch, in_features); 2 lane-dense tiles of 512
    BATCH = 1024
    x = jax.random.uniform(k_x, (BATCH, IN_FEATURES), dtype=jnp.float32,
                           minval=-1.0, maxval=1.0)

    outs = kan_forward(x, grid, coef, residual_scale, spline_scale, mask,
                       batch_tile=512)
    outs = jax.block_until_ready(outs)
    y_sum, pre_act, post_act, post_spline = outs

    # sanity check against pure-JAX reference
    ref = reference_forward(x, grid, coef, residual_scale, spline_scale, mask,
                            OUT_FEATURES, ORDER)
    for got, want in zip(outs, ref):
        np.testing.assert_allclose(np.asarray(got), np.asarray(want),
                                   rtol=1e-4, atol=1e-5)

    assert y_sum.shape == (BATCH, OUT_FEATURES)
    assert pre_act.shape == (BATCH, OUT_FEATURES, IN_FEATURES)
    assert post_act.shape == (BATCH, OUT_FEATURES, IN_FEATURES)
    assert post_spline.shape == (BATCH, OUT_FEATURES, IN_FEATURES)

    print("KERNEL_OK")
</pallas_src>

<mosaic_0001>
module attributes {stable_mosaic.version = 11 : i64} {
  func.func @kan_kernel(%arg0: i32, %arg1: memref<4x512xf32, #tpu.memory_space<vmem>>, %arg2: memref<4x66xf32, #tpu.memory_space<vmem>>, %arg3: memref<32x36xf32, #tpu.memory_space<vmem>>, %arg4: memref<32x36xf32, #tpu.memory_space<vmem>>, %arg5: memref<8x512xf32, #tpu.memory_space<vmem>>, %arg6: memref<32x512xf32, #tpu.memory_space<vmem>>, %arg7: memref<32x512xf32, #tpu.memory_space<vmem>>) attributes {dimension_semantics = [#tpu.dimension_semantics<parallel>], iteration_bounds = array<i64: 2>, scalar_prefetch = 0 : i64, scratch_operands = 0 : i64, tpu.core_type = #tpu.core_type<tc>, window_params = [{transform_indices = @transform_0, window_bounds = array<i64: 4, 512>}, {pipeline_mode = #tpu.pipeline_mode<synchronous>, transform_indices = @transform_1, window_bounds = array<i64: 4, 66>}, {pipeline_mode = #tpu.pipeline_mode<synchronous>, transform_indices = @transform_2, window_bounds = array<i64: 32, 36>}, {pipeline_mode = #tpu.pipeline_mode<synchronous>, transform_indices = @transform_3, window_bounds = array<i64: 32, 36>}, {transform_indices = @transform_4, window_bounds = array<i64: 8, 512>}, {transform_indices = @transform_5, window_bounds = array<i64: 32, 512>}, {transform_indices = @transform_6, window_bounds = array<i64: 32, 512>}]} {
    %c0 = arith.constant 0 : index
    %c0_0 = arith.constant 0 : index
    %0 = vector.load %arg1[%c0, %c0_0] : memref<4x512xf32, #tpu.memory_space<vmem>>, vector<4x512xf32>
    %c0_1 = arith.constant 0 : index
    %c0_2 = arith.constant 0 : index
    %1 = vector.load %arg2[%c0_1, %c0_2] : memref<4x66xf32, #tpu.memory_space<vmem>>, vector<4x1xf32>
    %2 = vector.broadcast %1 : vector<4x1xf32> to vector<4x512xf32>
    %3 = arith.cmpf oge, %0, %2 : vector<4x512xf32>
    %c0_3 = arith.constant 0 : index
    %c1 = arith.constant 1 : index
    %4 = vector.load %arg2[%c0_3, %c1] : memref<4x66xf32, #tpu.memory_space<vmem>>, vector<4x1xf32>
    %5 = vector.broadcast %4 : vector<4x1xf32> to vector<4x512xf32>
    %6 = arith.cmpf oge, %0, %5 : vector<4x512xf32>
    %cst = arith.constant dense<true> : vector<4x512xi1>
    %7 = arith.xori %6, %cst : vector<4x512xi1>
    %8 = arith.andi %3, %7 : vector<4x512xi1>
    %c0_4 = arith.constant 0 : index
    %c2 = arith.constant 2 : index
    %9 = vector.load %arg2[%c0_4, %c2] : memref<4x66xf32, #tpu.memory_space<vmem>>, vector<4x1xf32>
    %10 = vector.broadcast %9 : vector<4x1xf32> to vector<4x512xf32>
    %11 = arith.cmpf oge, %0, %10 : vector<4x512xf32>
    %cst_5 = arith.constant dense<true> : vector<4x512xi1>
    %12 = arith.xori %11, %cst_5 : vector<4x512xi1>
    %13 = arith.andi %6, %12 : vector<4x512xi1>
    %c0_6 = arith.constant 0 : index
    %c3 = arith.constant 3 : index
    %14 = vector.load %arg2[%c0_6, %c3] : memref<4x66xf32, #tpu.memory_space<vmem>>, vector<4x1xf32>
    %15 = vector.broadcast %14 : vector<4x1xf32> to vector<4x512xf32>
    %16 = arith.cmpf oge, %0, %15 : vector<4x512xf32>
    %cst_7 = arith.constant dense<true> : vector<4x512xi1>
    %17 = arith.xori %16, %cst_7 : vector<4x512xi1>
    %18 = arith.andi %11, %17 : vector<4x512xi1>
    %c0_8 = arith.constant 0 : index
    %c4 = arith.constant 4 : index
    %19 = vector.load %arg2[%c0_8, %c4] : memref<4x66xf32, #tpu.memory_space<vmem>>, vector<4x1xf32>
    %20 = vector.broadcast %19 : vector<4x1xf32> to vector<4x512xf32>
    %21 = arith.cmpf oge, %0, %20 : vector<4x512xf32>
    %cst_9 = arith.constant dense<true> : vector<4x512xi1>
    %22 = arith.xori %21, %cst_9 : vector<4x512xi1>
    %23 = arith.andi %16, %22 : vector<4x512xi1>
    %c0_10 = arith.constant 0 : index
    %c5 = arith.constant 5 : index
    %24 = vector.load %arg2[%c0_10, %c5] : memref<4x66xf32, #tpu.memory_space<vmem>>, vector<4x1xf32>
    %25 = vector.broadcast %24 : vector<4x1xf32> to vector<4x512xf32>
    %26 = arith.cmpf oge, %0, %25 : vector<4x512xf32>
    %cst_11 = arith.constant dense<true> : vector<4x512xi1>
    %27 = arith.xori %26, %cst_11 : vector<4x512xi1>
    %28 = arith.andi %21, %27 : vector<4x512xi1>
    %c0_12 = arith.constant 0 : index
    %c6 = arith.constant 6 : index
    %29 = vector.load %arg2[%c0_12, %c6] : memref<4x66xf32, #tpu.memory_space<vmem>>, vector<4x1xf32>
    %30 = vector.broadcast %29 : vector<4x1xf32> to vector<4x512xf32>
    %31 = arith.cmpf oge, %0, %30 : vector<4x512xf32>
    %cst_13 = arith.constant dense<true> : vector<4x512xi1>
    %32 = arith.xori %31, %cst_13 : vector<4x512xi1>
    %33 = arith.andi %26, %32 : vector<4x512xi1>
    %c0_14 = arith.constant 0 : index
    %c7 = arith.constant 7 : index
    %34 = vector.load %arg2[%c0_14, %c7] : memref<4x66xf32, #tpu.memory_space<vmem>>, vector<4x1xf32>
    %35 = vector.broadcast %34 : vector<4x1xf32> to vector<4x512xf32>
    %36 = arith.cmpf oge, %0, %35 : vector<4x512xf32>
    %cst_15 = arith.constant dense<true> : vector<4x512xi1>
    %37 = arith.xori %36, %cst_15 : vector<4x512xi1>
    %38 = arith.andi %31, %37 : vector<4x512xi1>
    %c0_16 = arith.constant 0 : index
    %c8 = arith.constant 8 : index
    %39 = vector.load %arg2[%c0_16, %c8] : memref<4x66xf32, #tpu.memory_space<vmem>>, vector<4x1xf32>
    %40 = vector.broadcast %39 : vector<4x1xf32> to vector<4x512xf32>
    %41 = arith.cmpf oge, %0, %40 : vector<4x512xf32>
    %cst_17 = arith.constant dense<true> : vector<4x512xi1>
    %42 = arith.xori %41, %cst_17 : vector<4x512xi1>
    %43 = arith.andi %36, %42 : vector<4x512xi1>
    %c0_18 = arith.constant 0 : index
    %c9 = arith.constant 9 : index
    %44 = vector.load %arg2[%c0_18, %c9] : memref<4x66xf32, #tpu.memory_space<vmem>>, vector<4x1xf32>
    %45 = vector.broadcast %44 : vector<4x1xf32> to vector<4x512xf32>
    %46 = arith.cmpf oge, %0, %45 : vector<4x512xf32>
    %cst_19 = arith.constant dense<true> : vector<4x512xi1>
    %47 = arith.xori %46, %cst_19 : vector<4x512xi1>
    %48 = arith.andi %41, %47 : vector<4x512xi1>
    %c0_20 = arith.constant 0 : index
    %c10 = arith.constant 10 : index
    %49 = vector.load %arg2[%c0_20, %c10] : memref<4x66xf32, #tpu.memory_space<vmem>>, vector<4x1xf32>
    %50 = vector.broadcast %49 : vector<4x1xf32> to vector<4x512xf32>
    %51 = arith.cmpf oge, %0, %50 : vector<4x512xf32>
    %cst_21 = arith.constant dense<true> : vector<4x512xi1>
    %52 = arith.xori %51, %cst_21 : vector<4x512xi1>
    %53 = arith.andi %46, %52 : vector<4x512xi1>
    %c0_22 = arith.constant 0 : index
    %c11 = arith.constant 11 : index
    %54 = vector.load %arg2[%c0_22, %c11] : memref<4x66xf32, #tpu.memory_space<vmem>>, vector<4x1xf32>
    %55 = vector.broadcast %54 : vector<4x1xf32> to vector<4x512xf32>
    %56 = arith.cmpf oge, %0, %55 : vector<4x512xf32>
    %cst_23 = arith.constant dense<true> : vector<4x512xi1>
    %57 = arith.xori %56, %cst_23 : vector<4x512xi1>
    %58 = arith.andi %51, %57 : vector<4x512xi1>
    %c0_24 = arith.constant 0 : index
    %c0_25 = arith.constant 0 : index
    %59 = vector.load %arg2[%c0_24, %c0_25] : memref<4x66xf32, #tpu.memory_space<vmem>>, vector<4x1xf32>
    %60 = vector.broadcast %59 : vector<4x1xf32> to vector<4x512xf32>
    %61 = arith.subf %0, %60 : vector<4x512xf32>
    %c0_26 = arith.constant 0 : index
    %c12 = arith.constant 12 : index
    %62 = vector.load %arg2[%c0_26, %c12] : memref<4x66xf32, #tpu.memory_space<vmem>>, vector<4x1xf32>
    %63 = vector.broadcast %62 : vector<4x1xf32> to vector<4x512xf32>
    %64 = arith.mulf %61, %63 : vector<4x512xf32>
    %c0_27 = arith.constant 0 : index
    %c2_28 = arith.constant 2 : index
    %65 = vector.load %arg2[%c0_27, %c2_28] : memref<4x66xf32, #tpu.memory_space<vmem>>, vector<4x1xf32>
    %66 = vector.broadcast %65 : vector<4x1xf32> to vector<4x512xf32>
    %67 = arith.subf %0, %66 : vector<4x512xf32>
    %c0_29 = arith.constant 0 : index
    %c22 = arith.constant 22 : index
    %68 = vector.load %arg2[%c0_29, %c22] : memref<4x66xf32, #tpu.memory_space<vmem>>, vector<4x1xf32>
    %69 = vector.broadcast %68 : vector<4x1xf32> to vector<4x512xf32>
    %70 = arith.mulf %67, %69 : vector<4x512xf32>
    %cst_30 = arith.constant 0.000000e+00 : f32
    %71 = vector.broadcast %cst_30 : f32 to vector<4x512xf32>
    %72 = arith.select %8, %64, %71 : vector<4x512xi1>, vector<4x512xf32>
    %cst_31 = arith.constant 0.000000e+00 : f32
    %73 = vector.broadcast %cst_31 : f32 to vector<4x512xf32>
    %74 = arith.select %13, %70, %73 : vector<4x512xi1>, vector<4x512xf32>
    %75 = arith.subf %72, %74 : vector<4x512xf32>
    %c0_32 = arith.constant 0 : index
    %c1_33 = arith.constant 1 : index
    %76 = vector.load %arg2[%c0_32, %c1_33] : memref<4x66xf32, #tpu.memory_space<vmem>>, vector<4x1xf32>
    %77 = vector.broadcast %76 : vector<4x1xf32> to vector<4x512xf32>
    %78 = arith.subf %0, %77 : vector<4x512xf32>
    %c0_34 = arith.constant 0 : index
    %c13 = arith.constant 13 : index
    %79 = vector.load %arg2[%c0_34, %c13] : memref<4x66xf32, #tpu.memory_space<vmem>>, vector<4x1xf32>
    %80 = vector.broadcast %79 : vector<4x1xf32> to vector<4x512xf32>
    %81 = arith.mulf %78, %80 : vector<4x512xf32>
    %c0_35 = arith.constant 0 : index
    %c3_36 = arith.constant 3 : index
    %82 = vector.load %arg2[%c0_35, %c3_36] : memref<4x66xf32, #tpu.memory_space<vmem>>, vector<4x1xf32>
    %83 = vector.broadcast %82 : vector<4x1xf32> to vector<4x512xf32>
    %84 = arith.subf %0, %83 : vector<4x512xf32>
    %c0_37 = arith.constant 0 : index
    %c23 = arith.constant 23 : index
    %85 = vector.load %arg2[%c0_37, %c23] : memref<4x66xf32, #tpu.memory_space<vmem>>, vector<4x1xf32>
    %86 = vector.broadcast %85 : vector<4x1xf32> to vector<4x512xf32>
    %87 = arith.mulf %84, %86 : vector<4x512xf32>
    %cst_38 = arith.constant 0.000000e+00 : f32
    %88 = vector.broadcast %cst_38 : f32 to vector<4x512xf32>
    %89 = arith.select %13, %81, %88 : vector<4x512xi1>, vector<4x512xf32>
    %cst_39 = arith.constant 0.000000e+00 : f32
    %90 = vector.broadcast %cst_39 : f32 to vector<4x512xf32>
    %91 = arith.select %18, %87, %90 : vector<4x512xi1>, vector<4x512xf32>
    %92 = arith.subf %89, %91 : vector<4x512xf32>
    %c0_40 = arith.constant 0 : index
    %c2_41 = arith.constant 2 : index
    %93 = vector.load %arg2[%c0_40, %c2_41] : memref<4x66xf32, #tpu.memory_space<vmem>>, vector<4x1xf32>
    %94 = vector.broadcast %93 : vector<4x1xf32> to vector<4x512xf32>
    %95 = arith.subf %0, %94 : vector<4x512xf32>
    %c0_42 = arith.constant 0 : index
    %c14 = arith.constant 14 : index
    %96 = vector.load %arg2[%c0_42, %c14] : memref<4x66xf32, #tpu.memory_space<vmem>>, vector<4x1xf32>
    %97 = vector.broadcast %96 : vector<4x1xf32> to vector<4x512xf32>
    %98 = arith.mulf %95, %97 : vector<4x512xf32>
    %c0_43 = arith.constant 0 : index
    %c4_44 = arith.constant 4 : index
    %99 = vector.load %arg2[%c0_43, %c4_44] : memref<4x66xf32, #tpu.memory_space<vmem>>, vector<4x1xf32>
    %100 = vector.broadcast %99 : vector<4x1xf32> to vector<4x512xf32>
    %101 = arith.subf %0, %100 : vector<4x512xf32>
    %c0_45 = arith.constant 0 : index
    %c24 = arith.constant 24 : index
    %102 = vector.load %arg2[%c0_45, %c24] : memref<4x66xf32, #tpu.memory_space<vmem>>, vector<4x1xf32>
    %103 = vector.broadcast %102 : vector<4x1xf32> to vector<4x512xf32>
    %104 = arith.mulf %101, %103 : vector<4x512xf32>
    %cst_46 = arith.constant 0.000000e+00 : f32
    %105 = vector.broadcast %cst_46 : f32 to vector<4x512xf32>
    %106 = arith.select %18, %98, %105 : vector<4x512xi1>, vector<4x512xf32>
    %cst_47 = arith.constant 0.000000e+00 : f32
    %107 = vector.broadcast %cst_47 : f32 to vector<4x512xf32>
    %108 = arith.select %23, %104, %107 : vector<4x512xi1>, vector<4x512xf32>
    %109 = arith.subf %106, %108 : vector<4x512xf32>
    %c0_48 = arith.constant 0 : index
    %c3_49 = arith.constant 3 : index
    %110 = vector.load %arg2[%c0_48, %c3_49] : memref<4x66xf32, #tpu.memory_space<vmem>>, vector<4x1xf32>
    %111 = vector.broadcast %110 : vector<4x1xf32> to vector<4x512xf32>
    %112 = arith.subf %0, %111 : vector<4x512xf32>
    %c0_50 = arith.constant 0 : index
    %c15 = arith.constant 15 : index
    %113 = vector.load %arg2[%c0_50, %c15] : memref<4x66xf32, #tpu.memory_space<vmem>>, vector<4x1xf32>
    %114 = vector.broadcast %113 : vector<4x1xf32> to vector<4x512xf32>
    %115 = arith.mulf %112, %114 : vector<4x512xf32>
    %c0_51 = arith.constant 0 : index
    %c5_52 = arith.constant 5 : index
    %116 = vector.load %arg2[%c0_51, %c5_52] : memref<4x66xf32, #tpu.memory_space<vmem>>, vector<4x1xf32>
    %117 = vector.broadcast %116 : vector<4x1xf32> to vector<4x512xf32>
    %118 = arith.subf %0, %117 : vector<4x512xf32>
    %c0_53 = arith.constant 0 : index
    %c25 = arith.constant 25 : index
    %119 = vector.load %arg2[%c0_53, %c25] : memref<4x66xf32, #tpu.memory_space<vmem>>, vector<4x1xf32>
    %120 = vector.broadcast %119 : vector<4x1xf32> to vector<4x512xf32>
    %121 = arith.mulf %118, %120 : vector<4x512xf32>
    %cst_54 = arith.constant 0.000000e+00 : f32
    %122 = vector.broadcast %cst_54 : f32 to vector<4x512xf32>
    %123 = arith.select %23, %115, %122 : vector<4x512xi1>, vector<4x512xf32>
    %cst_55 = arith.constant 0.000000e+00 : f32
    %124 = vector.broadcast %cst_55 : f32 to vector<4x512xf32>
    %125 = arith.select %28, %121, %124 : vector<4x512xi1>, vector<4x512xf32>
    %126 = arith.subf %123, %125 : vector<4x512xf32>
    %c0_56 = arith.constant 0 : index
    %c4_57 = arith.constant 4 : index
    %127 = vector.load %arg2[%c0_56, %c4_57] : memref<4x66xf32, #tpu.memory_space<vmem>>, vector<4x1xf32>
    %128 = vector.broadcast %127 : vector<4x1xf32> to vector<4x512xf32>
    %129 = arith.subf %0, %128 : vector<4x512xf32>
    %c0_58 = arith.constant 0 : index
    %c16 = arith.constant 16 : index
    %130 = vector.load %arg2[%c0_58, %c16] : memref<4x66xf32, #tpu.memory_space<vmem>>, vector<4x1xf32>
    %131 = vector.broadcast %130 : vector<4x1xf32> to vector<4x512xf32>
    %132 = arith.mulf %129, %131 : vector<4x512xf32>
    %c0_59 = arith.constant 0 : index
    %c6_60 = arith.constant 6 : index
    %133 = vector.load %arg2[%c0_59, %c6_60] : memref<4x66xf32, #tpu.memory_space<vmem>>, vector<4x1xf32>
    %134 = vector.broadcast %133 : vector<4x1xf32> to vector<4x512xf32>
    %135 = arith.subf %0, %134 : vector<4x512xf32>
    %c0_61 = arith.constant 0 : index
    %c26 = arith.constant 26 : index
    %136 = vector.load %arg2[%c0_61, %c26] : memref<4x66xf32, #tpu.memory_space<vmem>>, vector<4x1xf32>
    %137 = vector.broadcast %136 : vector<4x1xf32> to vector<4x512xf32>
    %138 = arith.mulf %135, %137 : vector<4x512xf32>
    %cst_62 = arith.constant 0.000000e+00 : f32
    %139 = vector.broadcast %cst_62 : f32 to vector<4x512xf32>
    %140 = arith.select %28, %132, %139 : vector<4x512xi1>, vector<4x512xf32>
    %cst_63 = arith.constant 0.000000e+00 : f32
    %141 = vector.broadcast %cst_63 : f32 to vector<4x512xf32>
    %142 = arith.select %33, %138, %141 : vector<4x512xi1>, vector<4x512xf32>
    %143 = arith.subf %140, %142 : vector<4x512xf32>
    %c0_64 = arith.constant 0 : index
    %c5_65 = arith.constant 5 : index
    %144 = vector.load %arg2[%c0_64, %c5_65] : memref<4x66xf32, #tpu.memory_space<vmem>>, vector<4x1xf32>
    %145 = vector.broadcast %144 : vector<4x1xf32> to vector<4x512xf32>
    %146 = arith.subf %0, %145 : vector<4x512xf32>
    %c0_66 = arith.constant 0 : index
    %c17 = arith.constant 17 : index
    %147 = vector.load %arg2[%c0_66, %c17] : memref<4x66xf32, #tpu.memory_space<vmem>>, vector<4x1xf32>
    %148 = vector.broadcast %147 : vector<4x1xf32> to vector<4x512xf32>
    %149 = arith.mulf %146, %148 : vector<4x512xf32>
    %c0_67 = arith.constant 0 : index
    %c7_68 = arith.constant 7 : index
    %150 = vector.load %arg2[%c0_67, %c7_68] : memref<4x66xf32, #tpu.memory_space<vmem>>, vector<4x1xf32>
    %151 = vector.broadcast %150 : vector<4x1xf32> to vector<4x512xf32>
    %152 = arith.subf %0, %151 : vector<4x512xf32>
    %c0_69 = arith.constant 0 : index
    %c27 = arith.constant 27 : index
    %153 = vector.load %arg2[%c0_69, %c27] : memref<4x66xf32, #tpu.memory_space<vmem>>, vector<4x1xf32>
    %154 = vector.broadcast %153 : vector<4x1xf32> to vector<4x512xf32>
    %155 = arith.mulf %152, %154 : vector<4x512xf32>
    %cst_70 = arith.constant 0.000000e+00 : f32
    %156 = vector.broadcast %cst_70 : f32 to vector<4x512xf32>
    %157 = arith.select %33, %149, %156 : vector<4x512xi1>, vector<4x512xf32>
    %cst_71 = arith.constant 0.000000e+00 : f32
    %158 = vector.broadcast %cst_71 : f32 to vector<4x512xf32>
    %159 = arith.select %38, %155, %158 : vector<4x512xi1>, vector<4x512xf32>
    %160 = arith.subf %157, %159 : vector<4x512xf32>
    %c0_72 = arith.constant 0 : index
    %c6_73 = arith.constant 6 : index
    %161 = vector.load %arg2[%c0_72, %c6_73] : memref<4x66xf32, #tpu.memory_space<vmem>>, vector<4x1xf32>
    %162 = vector.broadcast %161 : vector<4x1xf32> to vector<4x512xf32>
    %163 = arith.subf %0, %162 : vector<4x512xf32>
    %c0_74 = arith.constant 0 : index
    %c18 = arith.constant 18 : index
    %164 = vector.load %arg2[%c0_74, %c18] : memref<4x66xf32, #tpu.memory_space<vmem>>, vector<4x1xf32>
    %165 = vector.broadcast %164 : vector<4x1xf32> to vector<4x512xf32>
    %166 = arith.mulf %163, %165 : vector<4x512xf32>
    %c0_75 = arith.constant 0 : index
    %c8_76 = arith.constant 8 : index
    %167 = vector.load %arg2[%c0_75, %c8_76] : memref<4x66xf32, #tpu.memory_space<vmem>>, vector<4x1xf32>
    %168 = vector.broadcast %167 : vector<4x1xf32> to vector<4x512xf32>
    %169 = arith.subf %0, %168 : vector<4x512xf32>
    %c0_77 = arith.constant 0 : index
    %c28 = arith.constant 28 : index
    %170 = vector.load %arg2[%c0_77, %c28] : memref<4x66xf32, #tpu.memory_space<vmem>>, vector<4x1xf32>
    %171 = vector.broadcast %170 : vector<4x1xf32> to vector<4x512xf32>
    %172 = arith.mulf %169, %171 : vector<4x512xf32>
    %cst_78 = arith.constant 0.000000e+00 : f32
    %173 = vector.broadcast %cst_78 : f32 to vector<4x512xf32>
    %174 = arith.select %38, %166, %173 : vector<4x512xi1>, vector<4x512xf32>
    %cst_79 = arith.constant 0.000000e+00 : f32
    %175 = vector.broadcast %cst_79 : f32 to vector<4x512xf32>
    %176 = arith.select %43, %172, %175 : vector<4x512xi1>, vector<4x512xf32>
    %177 = arith.subf %174, %176 : vector<4x512xf32>
    %c0_80 = arith.constant 0 : index
    %c7_81 = arith.constant 7 : index
    %178 = vector.load %arg2[%c0_80, %c7_81] : memref<4x66xf32, #tpu.memory_space<vmem>>, vector<4x1xf32>
    %179 = vector.broadcast %178 : vector<4x1xf32> to vector<4x512xf32>
    %180 = arith.subf %0, %179 : vector<4x512xf32>
    %c0_82 = arith.constant 0 : index
    %c19 = arith.constant 19 : index
    %181 = vector.load %arg2[%c0_82, %c19] : memref<4x66xf32, #tpu.memory_space<vmem>>, vector<4x1xf32>
    %182 = vector.broadcast %181 : vector<4x1xf32> to vector<4x512xf32>
    %183 = arith.mulf %180, %182 : vector<4x512xf32>
    %c0_83 = arith.constant 0 : index
    %c9_84 = arith.constant 9 : index
    %184 = vector.load %arg2[%c0_83, %c9_84] : memref<4x66xf32, #tpu.memory_space<vmem>>, vector<4x1xf32>
    %185 = vector.broadcast %184 : vector<4x1xf32> to vector<4x512xf32>
    %186 = arith.subf %0, %185 : vector<4x512xf32>
    %c0_85 = arith.constant 0 : index
    %c29 = arith.constant 29 : index
    %187 = vector.load %arg2[%c0_85, %c29] : memref<4x66xf32, #tpu.memory_space<vmem>>, vector<4x1xf32>
    %188 = vector.broadcast %187 : vector<4x1xf32> to vector<4x512xf32>
    %189 = arith.mulf %186, %188 : vector<4x512xf32>
    %cst_86 = arith.constant 0.000000e+00 : f32
    %190 = vector.broadcast %cst_86 : f32 to vector<4x512xf32>
    %191 = arith.select %43, %183, %190 : vector<4x512xi1>, vector<4x512xf32>
    %cst_87 = arith.constant 0.000000e+00 : f32
    %192 = vector.broadcast %cst_87 : f32 to vector<4x512xf32>
    %193 = arith.select %48, %189, %192 : vector<4x512xi1>, vector<4x512xf32>
    %194 = arith.subf %191, %193 : vector<4x512xf32>
    %c0_88 = arith.constant 0 : index
    %c8_89 = arith.constant 8 : index
    %195 = vector.load %arg2[%c0_88, %c8_89] : memref<4x66xf32, #tpu.memory_space<vmem>>, vector<4x1xf32>
    %196 = vector.broadcast %195 : vector<4x1xf32> to vector<4x512xf32>
    %197 = arith.subf %0, %196 : vector<4x512xf32>
    %c0_90 = arith.constant 0 : index
    %c20 = arith.constant 20 : index
    %198 = vector.load %arg2[%c0_90, %c20] : memref<4x66xf32, #tpu.memory_space<vmem>>, vector<4x1xf32>
    %199 = vector.broadcast %198 : vector<4x1xf32> to vector<4x512xf32>
    %200 = arith.mulf %197, %199 : vector<4x512xf32>
    %c0_91 = arith.constant 0 : index
    %c10_92 = arith.constant 10 : index
    %201 = vector.load %arg2[%c0_91, %c10_92] : memref<4x66xf32, #tpu.memory_space<vmem>>, vector<4x1xf32>
    %202 = vector.broadcast %201 : vector<4x1xf32> to vector<4x512xf32>
    %203 = arith.subf %0, %202 : vector<4x512xf32>
    %c0_93 = arith.constant 0 : index
    %c30 = arith.constant 30 : index
    %204 = vector.load %arg2[%c0_93, %c30] : memref<4x66xf32, #tpu.memory_space<vmem>>, vector<4x1xf32>
    %205 = vector.broadcast %204 : vector<4x1xf32> to vector<4x512xf32>
    %206 = arith.mulf %203, %205 : vector<4x512xf32>
    %cst_94 = arith.constant 0.000000e+00 : f32
    %207 = vector.broadcast %cst_94 : f32 to vector<4x512xf32>
    %208 = arith.select %48, %200, %207 : vector<4x512xi1>, vector<4x512xf32>
    %cst_95 = arith.constant 0.000000e+00 : f32
    %209 = vector.broadcast %cst_95 : f32 to vector<4x512xf32>
    %210 = arith.select %53, %206, %209 : vector<4x512xi1>, vector<4x512xf32>
    %211 = arith.subf %208, %210 : vector<4x512xf32>
    %c0_96 = arith.constant 0 : index
    %c9_97 = arith.constant 9 : index
    %212 = vector.load %arg2[%c0_96, %c9_97] : memref<4x66xf32, #tpu.memory_space<vmem>>, vector<4x1xf32>
    %213 = vector.broadcast %212 : vector<4x1xf32> to vector<4x512xf32>
    %214 = arith.subf %0, %213 : vector<4x512xf32>
    %c0_98 = arith.constant 0 : index
    %c21 = arith.constant 21 : index
    %215 = vector.load %arg2[%c0_98, %c21] : memref<4x66xf32, #tpu.memory_space<vmem>>, vector<4x1xf32>
    %216 = vector.broadcast %215 : vector<4x1xf32> to vector<4x512xf32>
    %217 = arith.mulf %214, %216 : vector<4x512xf32>
    %c0_99 = arith.constant 0 : index
    %c11_100 = arith.constant 11 : index
    %218 = vector.load %arg2[%c0_99, %c11_100] : memref<4x66xf32, #tpu.memory_space<vmem>>, vector<4x1xf32>
    %219 = vector.broadcast %218 : vector<4x1xf32> to vector<4x512xf32>
    %220 = arith.subf %0, %219 : vector<4x512xf32>
    %c0_101 = arith.constant 0 : index
    %c31 = arith.constant 31 : index
    %221 = vector.load %arg2[%c0_101, %c31] : memref<4x66xf32, #tpu.memory_space<vmem>>, vector<4x1xf32>
    %222 = vector.broadcast %221 : vector<4x1xf32> to vector<4x512xf32>
    %223 = arith.mulf %220, %222 : vector<4x512xf32>
    %cst_102 = arith.constant 0.000000e+00 : f32
    %224 = vector.broadcast %cst_102 : f32 to vector<4x512xf32>
    %225 = arith.select %53, %217, %224 : vector<4x512xi1>, vector<4x512xf32>
    %cst_103 = arith.constant 0.000000e+00 : f32
    %226 = vector.broadcast %cst_103 : f32 to vector<4x512xf32>
    %227 = arith.select %58, %223, %226 : vector<4x512xi1>, vector<4x512xf32>
    %228 = arith.subf %225, %227 : vector<4x512xf32>
    %c0_104 = arith.constant 0 : index
    %c0_105 = arith.constant 0 : index
    %229 = vector.load %arg2[%c0_104, %c0_105] : memref<4x66xf32, #tpu.memory_space<vmem>>, vector<4x1xf32>
    %230 = vector.broadcast %229 : vector<4x1xf32> to vector<4x512xf32>
    %231 = arith.subf %0, %230 : vector<4x512xf32>
    %c0_106 = arith.constant 0 : index
    %c32 = arith.constant 32 : index
    %232 = vector.load %arg2[%c0_106, %c32] : memref<4x66xf32, #tpu.memory_space<vmem>>, vector<4x1xf32>
    %233 = vector.broadcast %232 : vector<4x1xf32> to vector<4x512xf32>
    %234 = arith.mulf %231, %233 : vector<4x512xf32>
    %c0_107 = arith.constant 0 : index
    %c3_108 = arith.constant 3 : index
    %235 = vector.load %arg2[%c0_107, %c3_108] : memref<4x66xf32, #tpu.memory_space<vmem>>, vector<4x1xf32>
    %236 = vector.broadcast %235 : vector<4x1xf32> to vector<4x512xf32>
    %237 = arith.subf %0, %236 : vector<4x512xf32>
    %c0_109 = arith.constant 0 : index
    %c41 = arith.constant 41 : index
    %238 = vector.load %arg2[%c0_109, %c41] : memref<4x66xf32, #tpu.memory_space<vmem>>, vector<4x1xf32>
    %239 = vector.broadcast %238 : vector<4x1xf32> to vector<4x512xf32>
    %240 = arith.mulf %237, %239 : vector<4x512xf32>
    %241 = arith.mulf %234, %75 : vector<4x512xf32>
    %242 = arith.mulf %240, %92 : vector<4x512xf32>
    %243 = arith.subf %241, %242 : vector<4x512xf32>
    %c0_110 = arith.constant 0 : index
    %c1_111 = arith.constant 1 : index
    %244 = vector.load %arg2[%c0_110, %c1_111] : memref<4x66xf32, #tpu.memory_space<vmem>>, vector<4x1xf32>
    %245 = vector.broadcast %244 : vector<4x1xf32> to vector<4x512xf32>
    %246 = arith.subf %0, %245 : vector<4x512xf32>
    %c0_112 = arith.constant 0 : index
    %c33 = arith.constant 33 : index
    %247 = vector.load %arg2[%c0_112, %c33] : memref<4x66xf32, #tpu.memory_space<vmem>>, vector<4x1xf32>
    %248 = vector.broadcast %247 : vector<4x1xf32> to vector<4x512xf32>
    %249 = arith.mulf %246, %248 : vector<4x512xf32>
    %c0_113 = arith.constant 0 : index
    %c4_114 = arith.constant 4 : index
    %250 = vector.load %arg2[%c0_113, %c4_114] : memref<4x66xf32, #tpu.memory_space<vmem>>, vector<4x1xf32>
    %251 = vector.broadcast %250 : vector<4x1xf32> to vector<4x512xf32>
    %252 = arith.subf %0, %251 : vector<4x512xf32>
    %c0_115 = arith.constant 0 : index
    %c42 = arith.constant 42 : index
    %253 = vector.load %arg2[%c0_115, %c42] : memref<4x66xf32, #tpu.memory_space<vmem>>, vector<4x1xf32>
    %254 = vector.broadcast %253 : vector<4x1xf32> to vector<4x512xf32>
    %255 = arith.mulf %252, %254 : vector<4x512xf32>
    %256 = arith.mulf %249, %92 : vector<4x512xf32>
    %257 = arith.mulf %255, %109 : vector<4x512xf32>
    %258 = arith.subf %256, %257 : vector<4x512xf32>
    %c0_116 = arith.constant 0 : index
    %c2_117 = arith.constant 2 : index
    %259 = vector.load %arg2[%c0_116, %c2_117] : memref<4x66xf32, #tpu.memory_space<vmem>>, vector<4x1xf32>
    %260 = vector.broadcast %259 : vector<4x1xf32> to vector<4x512xf32>
    %261 = arith.subf %0, %260 : vector<4x512xf32>
    %c0_118 = arith.constant 0 : index
    %c34 = arith.constant 34 : index
    %262 = vector.load %arg2[%c0_118, %c34] : memref<4x66xf32, #tpu.memory_space<vmem>>, vector<4x1xf32>
    %263 = vector.broadcast %262 : vector<4x1xf32> to vector<4x512xf32>
    %264 = arith.mulf %261, %263 : vector<4x512xf32>
    %c0_119 = arith.constant 0 : index
    %c5_120 = arith.constant 5 : index
    %265 = vector.load %arg2[%c0_119, %c5_120] : memref<4x66xf32, #tpu.memory_space<vmem>>, vector<4x1xf32>
    %266 = vector.broadcast %265 : vector<4x1xf32> to vector<4x512xf32>
    %267 = arith.subf %0, %266 : vector<4x512xf32>
    %c0_121 = arith.constant 0 : index
    %c43 = arith.constant 43 : index
    %268 = vector.load %arg2[%c0_121, %c43] : memref<4x66xf32, #tpu.memory_space<vmem>>, vector<4x1xf32>
    %269 = vector.broadcast %268 : vector<4x1xf32> to vector<4x512xf32>
    %270 = arith.mulf %267, %269 : vector<4x512xf32>
    %271 = arith.mulf %264, %109 : vector<4x512xf32>
    %272 = arith.mulf %270, %126 : vector<4x512xf32>
    %273 = arith.subf %271, %272 : vector<4x512xf32>
    %c0_122 = arith.constant 0 : index
    %c3_123 = arith.constant 3 : index
    %274 = vector.load %arg2[%c0_122, %c3_123] : memref<4x66xf32, #tpu.memory_space<vmem>>, vector<4x1xf32>
    %275 = vector.broadcast %274 : vector<4x1xf32> to vector<4x512xf32>
    %276 = arith.subf %0, %275 : vector<4x512xf32>
    %c0_124 = arith.constant 0 : index
    %c35 = arith.constant 35 : index
    %277 = vector.load %arg2[%c0_124, %c35] : memref<4x66xf32, #tpu.memory_space<vmem>>, vector<4x1xf32>
    %278 = vector.broadcast %277 : vector<4x1xf32> to vector<4x512xf32>
    %279 = arith.mulf %276, %278 : vector<4x512xf32>
    %c0_125 = arith.constant 0 : index
    %c6_126 = arith.constant 6 : index
    %280 = vector.load %arg2[%c0_125, %c6_126] : memref<4x66xf32, #tpu.memory_space<vmem>>, vector<4x1xf32>
    %281 = vector.broadcast %280 : vector<4x1xf32> to vector<4x512xf32>
    %282 = arith.subf %0, %281 : vector<4x512xf32>
    %c0_127 = arith.constant 0 : index
    %c44 = arith.constant 44 : index
    %283 = vector.load %arg2[%c0_127, %c44] : memref<4x66xf32, #tpu.memory_space<vmem>>, vector<4x1xf32>
    %284 = vector.broadcast %283 : vector<4x1xf32> to vector<4x512xf32>
    %285 = arith.mulf %282, %284 : vector<4x512xf32>
    %286 = arith.mulf %279, %126 : vector<4x512xf32>
    %287 = arith.mulf %285, %143 : vector<4x512xf32>
    %288 = arith.subf %286, %287 : vector<4x512xf32>
    %c0_128 = arith.constant 0 : index
    %c4_129 = arith.constant 4 : index
    %289 = vector.load %arg2[%c0_128, %c4_129] : memref<4x66xf32, #tpu.memory_space<vmem>>, vector<4x1xf32>
    %290 = vector.broadcast %289 : vector<4x1xf32> to vector<4x512xf32>
    %291 = arith.subf %0, %290 : vector<4x512xf32>
    %c0_130 = arith.constant 0 : index
    %c36 = arith.constant 36 : index
    %292 = vector.load %arg2[%c0_130, %c36] : memref<4x66xf32, #tpu.memory_space<vmem>>, vector<4x1xf32>
    %293 = vector.broadcast %292 : vector<4x1xf32> to vector<4x512xf32>
    %294 = arith.mulf %291, %293 : vector<4x512xf32>
    %c0_131 = arith.constant 0 : index
    %c7_132 = arith.constant 7 : index
    %295 = vector.load %arg2[%c0_131, %c7_132] : memref<4x66xf32, #tpu.memory_space<vmem>>, vector<4x1xf32>
    %296 = vector.broadcast %295 : vector<4x1xf32> to vector<4x512xf32>
    %297 = arith.subf %0, %296 : vector<4x512xf32>
    %c0_133 = arith.constant 0 : index
    %c45 = arith.constant 45 : index
    %298 = vector.load %arg2[%c0_133, %c45] : memref<4x66xf32, #tpu.memory_space<vmem>>, vector<4x1xf32>
    %299 = vector.broadcast %298 : vector<4x1xf32> to vector<4x512xf32>
    %300 = arith.mulf %297, %299 : vector<4x512xf32>
    %301 = arith.mulf %294, %143 : vector<4x512xf32>
    %302 = arith.mulf %300, %160 : vector<4x512xf32>
    %303 = arith.subf %301, %302 : vector<4x512xf32>
    %c0_134 = arith.constant 0 : index
    %c5_135 = arith.constant 5 : index
    %304 = vector.load %arg2[%c0_134, %c5_135] : memref<4x66xf32, #tpu.memory_space<vmem>>, vector<4x1xf32>
    %305 = vector.broadcast %304 : vector<4x1xf32> to vector<4x512xf32>
    %306 = arith.subf %0, %305 : vector<4x512xf32>
    %c0_136 = arith.constant 0 : index
    %c37 = arith.constant 37 : index
    %307 = vector.load %arg2[%c0_136, %c37] : memref<4x66xf32, #tpu.memory_space<vmem>>, vector<4x1xf32>
    %308 = vector.broadcast %307 : vector<4x1xf32> to vector<4x512xf32>
    %309 = arith.mulf %306, %308 : vector<4x512xf32>
    %c0_137 = arith.constant 0 : index
    %c8_138 = arith.constant 8 : index
    %310 = vector.load %arg2[%c0_137, %c8_138] : memref<4x66xf32, #tpu.memory_space<vmem>>, vector<4x1xf32>
    %311 = vector.broadcast %310 : vector<4x1xf32> to vector<4x512xf32>
    %312 = arith.subf %0, %311 : vector<4x512xf32>
    %c0_139 = arith.constant 0 : index
    %c46 = arith.constant 46 : index
    %313 = vector.load %arg2[%c0_139, %c46] : memref<4x66xf32, #tpu.memory_space<vmem>>, vector<4x1xf32>
    %314 = vector.broadcast %313 : vector<4x1xf32> to vector<4x512xf32>
    %315 = arith.mulf %312, %314 : vector<4x512xf32>
    %316 = arith.mulf %309, %160 : vector<4x512xf32>
    %317 = arith.mulf %315, %177 : vector<4x512xf32>
    %318 = arith.subf %316, %317 : vector<4x512xf32>
    %c0_140 = arith.constant 0 : index
    %c6_141 = arith.constant 6 : index
    %319 = vector.load %arg2[%c0_140, %c6_141] : memref<4x66xf32, #tpu.memory_space<vmem>>, vector<4x1xf32>
    %320 = vector.broadcast %319 : vector<4x1xf32> to vector<4x512xf32>
    %321 = arith.subf %0, %320 : vector<4x512xf32>
    %c0_142 = arith.constant 0 : index
    %c38 = arith.constant 38 : index
    %322 = vector.load %arg2[%c0_142, %c38] : memref<4x66xf32, #tpu.memory_space<vmem>>, vector<4x1xf32>
    %323 = vector.broadcast %322 : vector<4x1xf32> to vector<4x512xf32>
    %324 = arith.mulf %321, %323 : vector<4x512xf32>
    %c0_143 = arith.constant 0 : index
    %c9_144 = arith.constant 9 : index
    %325 = vector.load %arg2[%c0_143, %c9_144] : memref<4x66xf32, #tpu.memory_space<vmem>>, vector<4x1xf32>
    %326 = vector.broadcast %325 : vector<4x1xf32> to vector<4x512xf32>
    %327 = arith.subf %0, %326 : vector<4x512xf32>
    %c0_145 = arith.constant 0 : index
    %c47 = arith.constant 47 : index
    %328 = vector.load %arg2[%c0_145, %c47] : memref<4x66xf32, #tpu.memory_space<vmem>>, vector<4x1xf32>
    %329 = vector.broadcast %328 : vector<4x1xf32> to vector<4x512xf32>
    %330 = arith.mulf %327, %329 : vector<4x512xf32>
    %331 = arith.mulf %324, %177 : vector<4x512xf32>
    %332 = arith.mulf %330, %194 : vector<4x512xf32>
    %333 = arith.subf %331, %332 : vector<4x512xf32>
    %c0_146 = arith.constant 0 : index
    %c7_147 = arith.constant 7 : index
    %334 = vector.load %arg2[%c0_146, %c7_147] : memref<4x66xf32, #tpu.memory_space<vmem>>, vector<4x1xf32>
    %335 = vector.broadcast %334 : vector<4x1xf32> to vector<4x512xf32>
    %336 = arith.subf %0, %335 : vector<4x512xf32>
    %c0_148 = arith.constant 0 : index
    %c39 = arith.constant 39 : index
    %337 = vector.load %arg2[%c0_148, %c39] : memref<4x66xf32, #tpu.memory_space<vmem>>, vector<4x1xf32>
    %338 = vector.broadcast %337 : vector<4x1xf32> to vector<4x512xf32>
    %339 = arith.mulf %336, %338 : vector<4x512xf32>
    %c0_149 = arith.constant 0 : index
    %c10_150 = arith.constant 10 : index
    %340 = vector.load %arg2[%c0_149, %c10_150] : memref<4x66xf32, #tpu.memory_space<vmem>>, vector<4x1xf32>
    %341 = vector.broadcast %340 : vector<4x1xf32> to vector<4x512xf32>
    %342 = arith.subf %0, %341 : vector<4x512xf32>
    %c0_151 = arith.constant 0 : index
    %c48 = arith.constant 48 : index
    %343 = vector.load %arg2[%c0_151, %c48] : memref<4x66xf32, #tpu.memory_space<vmem>>, vector<4x1xf32>
    %344 = vector.broadcast %343 : vector<4x1xf32> to vector<4x512xf32>
    %345 = arith.mulf %342, %344 : vector<4x512xf32>
    %346 = arith.mulf %339, %194 : vector<4x512xf32>
    %347 = arith.mulf %345, %211 : vector<4x512xf32>
    %348 = arith.subf %346, %347 : vector<4x512xf32>
    %c0_152 = arith.constant 0 : index
    %c8_153 = arith.constant 8 : index
    %349 = vector.load %arg2[%c0_152, %c8_153] : memref<4x66xf32, #tpu.memory_space<vmem>>, vector<4x1xf32>
    %350 = vector.broadcast %349 : vector<4x1xf32> to vector<4x512xf32>
    %351 = arith.subf %0, %350 : vector<4x512xf32>
    %c0_154 = arith.constant 0 : index
    %c40 = arith.constant 40 : index
    %352 = vector.load %arg2[%c0_154, %c40] : memref<4x66xf32, #tpu.memory_space<vmem>>, vector<4x1xf32>
    %353 = vector.broadcast %352 : vector<4x1xf32> to vector<4x512xf32>
    %354 = arith.mulf %351, %353 : vector<4x512xf32>
    %c0_155 = arith.constant 0 : index
    %c11_156 = arith.constant 11 : index
    %355 = vector.load %arg2[%c0_155, %c11_156] : memref<4x66xf32, #tpu.memory_space<vmem>>, vector<4x1xf32>
    %356 = vector.broadcast %355 : vector<4x1xf32> to vector<4x512xf32>
    %357 = arith.subf %0, %356 : vector<4x512xf32>
    %c0_157 = arith.constant 0 : index
    %c49 = arith.constant 49 : index
    %358 = vector.load %arg2[%c0_157, %c49] : memref<4x66xf32, #tpu.memory_space<vmem>>, vector<4x1xf32>
    %359 = vector.broadcast %358 : vector<4x1xf32> to vector<4x512xf32>
    %360 = arith.mulf %357, %359 : vector<4x512xf32>
    %361 = arith.mulf %354, %211 : vector<4x512xf32>
    %362 = arith.mulf %360, %228 : vector<4x512xf32>
    %363 = arith.subf %361, %362 : vector<4x512xf32>
    %c0_158 = arith.constant 0 : index
    %c0_159 = arith.constant 0 : index
    %364 = vector.load %arg2[%c0_158, %c0_159] : memref<4x66xf32, #tpu.memory_space<vmem>>, vector<4x1xf32>
    %365 = vector.broadcast %364 : vector<4x1xf32> to vector<4x512xf32>
    %366 = arith.subf %0, %365 : vector<4x512xf32>
    %c0_160 = arith.constant 0 : index
    %c50 = arith.constant 50 : index
    %367 = vector.load %arg2[%c0_160, %c50] : memref<4x66xf32, #tpu.memory_space<vmem>>, vector<4x1xf32>
    %368 = vector.broadcast %367 : vector<4x1xf32> to vector<4x512xf32>
    %369 = arith.mulf %366, %368 : vector<4x512xf32>
    %c0_161 = arith.constant 0 : index
    %c4_162 = arith.constant 4 : index
    %370 = vector.load %arg2[%c0_161, %c4_162] : memref<4x66xf32, #tpu.memory_space<vmem>>, vector<4x1xf32>
    %371 = vector.broadcast %370 : vector<4x1xf32> to vector<4x512xf32>
    %372 = arith.subf %0, %371 : vector<4x512xf32>
    %c0_163 = arith.constant 0 : index
    %c58 = arith.constant 58 : index
    %373 = vector.load %arg2[%c0_163, %c58] : memref<4x66xf32, #tpu.memory_space<vmem>>, vector<4x1xf32>
    %374 = vector.broadcast %373 : vector<4x1xf32> to vector<4x512xf32>
    %375 = arith.mulf %372, %374 : vector<4x512xf32>
    %376 = arith.mulf %369, %243 : vector<4x512xf32>
    %377 = arith.mulf %375, %258 : vector<4x512xf32>
    %378 = arith.subf %376, %377 : vector<4x512xf32>
    %c0_164 = arith.constant 0 : index
    %c1_165 = arith.constant 1 : index
    %379 = vector.load %arg2[%c0_164, %c1_165] : memref<4x66xf32, #tpu.memory_space<vmem>>, vector<4x1xf32>
    %380 = vector.broadcast %379 : vector<4x1xf32> to vector<4x512xf32>
    %381 = arith.subf %0, %380 : vector<4x512xf32>
    %c0_166 = arith.constant 0 : index
    %c51 = arith.constant 51 : index
    %382 = vector.load %arg2[%c0_166, %c51] : memref<4x66xf32, #tpu.memory_space<vmem>>, vector<4x1xf32>
    %383 = vector.broadcast %382 : vector<4x1xf32> to vector<4x512xf32>
    %384 = arith.mulf %381, %383 : vector<4x512xf32>
    %c0_167 = arith.constant 0 : index
    %c5_168 = arith.constant 5 : index
    %385 = vector.load %arg2[%c0_167, %c5_168] : memref<4x66xf32, #tpu.memory_space<vmem>>, vector<4x1xf32>
    %386 = vector.broadcast %385 : vector<4x1xf32> to vector<4x512xf32>
    %387 = arith.subf %0, %386 : vector<4x512xf32>
    %c0_169 = arith.constant 0 : index
    %c59 = arith.constant 59 : index
    %388 = vector.load %arg2[%c0_169, %c59] : memref<4x66xf32, #tpu.memory_space<vmem>>, vector<4x1xf32>
    %389 = vector.broadcast %388 : vector<4x1xf32> to vector<4x512xf32>
    %390 = arith.mulf %387, %389 : vector<4x512xf32>
    %391 = arith.mulf %384, %258 : vector<4x512xf32>
    %392 = arith.mulf %390, %273 : vector<4x512xf32>
    %393 = arith.subf %391, %392 : vector<4x512xf32>
    %c0_170 = arith.constant 0 : index
    %c2_171 = arith.constant 2 : index
    %394 = vector.load %arg2[%c0_170, %c2_171] : memref<4x66xf32, #tpu.memory_space<vmem>>, vector<4x1xf32>
    %395 = vector.broadcast %394 : vector<4x1xf32> to vector<4x512xf32>
    %396 = arith.subf %0, %395 : vector<4x512xf32>
    %c0_172 = arith.constant 0 : index
    %c52 = arith.constant 52 : index
    %397 = vector.load %arg2[%c0_172, %c52] : memref<4x66xf32, #tpu.memory_space<vmem>>, vector<4x1xf32>
    %398 = vector.broadcast %397 : vector<4x1xf32> to vector<4x512xf32>
    %399 = arith.mulf %396, %398 : vector<4x512xf32>
    %c0_173 = arith.constant 0 : index
    %c6_174 = arith.constant 6 : index
    %400 = vector.load %arg2[%c0_173, %c6_174] : memref<4x66xf32, #tpu.memory_space<vmem>>, vector<4x1xf32>
    %401 = vector.broadcast %400 : vector<4x1xf32> to vector<4x512xf32>
    %402 = arith.subf %0, %401 : vector<4x512xf32>
    %c0_175 = arith.constant 0 : index
    %c60 = arith.constant 60 : index
    %403 = vector.load %arg2[%c0_175, %c60] : memref<4x66xf32, #tpu.memory_space<vmem>>, vector<4x1xf32>
    %404 = vector.broadcast %403 : vector<4x1xf32> to vector<4x512xf32>
    %405 = arith.mulf %402, %404 : vector<4x512xf32>
    %406 = arith.mulf %399, %273 : vector<4x512xf32>
    %407 = arith.mulf %405, %288 : vector<4x512xf32>
    %408 = arith.subf %406, %407 : vector<4x512xf32>
    %c0_176 = arith.constant 0 : index
    %c3_177 = arith.constant 3 : index
    %409 = vector.load %arg2[%c0_176, %c3_177] : memref<4x66xf32, #tpu.memory_space<vmem>>, vector<4x1xf32>
    %410 = vector.broadcast %409 : vector<4x1xf32> to vector<4x512xf32>
    %411 = arith.subf %0, %410 : vector<4x512xf32>
    %c0_178 = arith.constant 0 : index
    %c53 = arith.constant 53 : index
    %412 = vector.load %arg2[%c0_178, %c53] : memref<4x66xf32, #tpu.memory_space<vmem>>, vector<4x1xf32>
    %413 = vector.broadcast %412 : vector<4x1xf32> to vector<4x512xf32>
    %414 = arith.mulf %411, %413 : vector<4x512xf32>
    %c0_179 = arith.constant 0 : index
    %c7_180 = arith.constant 7 : index
    %415 = vector.load %arg2[%c0_179, %c7_180] : memref<4x66xf32, #tpu.memory_space<vmem>>, vector<4x1xf32>
    %416 = vector.broadcast %415 : vector<4x1xf32> to vector<4x512xf32>
    %417 = arith.subf %0, %416 : vector<4x512xf32>
    %c0_181 = arith.constant 0 : index
    %c61 = arith.constant 61 : index
    %418 = vector.load %arg2[%c0_181, %c61] : memref<4x66xf32, #tpu.memory_space<vmem>>, vector<4x1xf32>
    %419 = vector.broadcast %418 : vector<4x1xf32> to vector<4x512xf32>
    %420 = arith.mulf %417, %419 : vector<4x512xf32>
    %421 = arith.mulf %414, %288 : vector<4x512xf32>
    %422 = arith.mulf %420, %303 : vector<4x512xf32>
    %423 = arith.subf %421, %422 : vector<4x512xf32>
    %c0_182 = arith.constant 0 : index
    %c4_183 = arith.constant 4 : index
    %424 = vector.load %arg2[%c0_182, %c4_183] : memref<4x66xf32, #tpu.memory_space<vmem>>, vector<4x1xf32>
    %425 = vector.broadcast %424 : vector<4x1xf32> to vector<4x512xf32>
    %426 = arith.subf %0, %425 : vector<4x512xf32>
    %c0_184 = arith.constant 0 : index
    %c54 = arith.constant 54 : index
    %427 = vector.load %arg2[%c0_184, %c54] : memref<4x66xf32, #tpu.memory_space<vmem>>, vector<4x1xf32>
    %428 = vector.broadcast %427 : vector<4x1xf32> to vector<4x512xf32>
    %429 = arith.mulf %426, %428 : vector<4x512xf32>
    %c0_185 = arith.constant 0 : index
    %c8_186 = arith.constant 8 : index
    %430 = vector.load %arg2[%c0_185, %c8_186] : memref<4x66xf32, #tpu.memory_space<vmem>>, vector<4x1xf32>
    %431 = vector.broadcast %430 : vector<4x1xf32> to vector<4x512xf32>
    %432 = arith.subf %0, %431 : vector<4x512xf32>
    %c0_187 = arith.constant 0 : index
    %c62 = arith.constant 62 : index
    %433 = vector.load %arg2[%c0_187, %c62] : memref<4x66xf32, #tpu.memory_space<vmem>>, vector<4x1xf32>
    %434 = vector.broadcast %433 : vector<4x1xf32> to vector<4x512xf32>
    %435 = arith.mulf %432, %434 : vector<4x512xf32>
    %436 = arith.mulf %429, %303 : vector<4x512xf32>
    %437 = arith.mulf %435, %318 : vector<4x512xf32>
    %438 = arith.subf %436, %437 : vector<4x512xf32>
    %c0_188 = arith.constant 0 : index
    %c5_189 = arith.constant 5 : index
    %439 = vector.load %arg2[%c0_188, %c5_189] : memref<4x66xf32, #tpu.memory_space<vmem>>, vector<4x1xf32>
    %440 = vector.broadcast %439 : vector<4x1xf32> to vector<4x512xf32>
    %441 = arith.subf %0, %440 : vector<4x512xf32>
    %c0_190 = arith.constant 0 : index
    %c55 = arith.constant 55 : index
    %442 = vector.load %arg2[%c0_190, %c55] : memref<4x66xf32, #tpu.memory_space<vmem>>, vector<4x1xf32>
    %443 = vector.broadcast %442 : vector<4x1xf32> to vector<4x512xf32>
    %444 = arith.mulf %441, %443 : vector<4x512xf32>
    %c0_191 = arith.constant 0 : index
    %c9_192 = arith.constant 9 : index
    %445 = vector.load %arg2[%c0_191, %c9_192] : memref<4x66xf32, #tpu.memory_space<vmem>>, vector<4x1xf32>
    %446 = vector.broadcast %445 : vector<4x1xf32> to vector<4x512xf32>
    %447 = arith.subf %0, %446 : vector<4x512xf32>
    %c0_193 = arith.constant 0 : index
    %c63 = arith.constant 63 : index
    %448 = vector.load %arg2[%c0_193, %c63] : memref<4x66xf32, #tpu.memory_space<vmem>>, vector<4x1xf32>
    %449 = vector.broadcast %448 : vector<4x1xf32> to vector<4x512xf32>
    %450 = arith.mulf %447, %449 : vector<4x512xf32>
    %451 = arith.mulf %444, %318 : vector<4x512xf32>
    %452 = arith.mulf %450, %333 : vector<4x512xf32>
    %453 = arith.subf %451, %452 : vector<4x512xf32>
    %c0_194 = arith.constant 0 : index
    %c6_195 = arith.constant 6 : index
    %454 = vector.load %arg2[%c0_194, %c6_195] : memref<4x66xf32, #tpu.memory_space<vmem>>, vector<4x1xf32>
    %455 = vector.broadcast %454 : vector<4x1xf32> to vector<4x512xf32>
    %456 = arith.subf %0, %455 : vector<4x512xf32>
    %c0_196 = arith.constant 0 : index
    %c56 = arith.constant 56 : index
    %457 = vector.load %arg2[%c0_196, %c56] : memref<4x66xf32, #tpu.memory_space<vmem>>, vector<4x1xf32>
    %458 = vector.broadcast %457 : vector<4x1xf32> to vector<4x512xf32>
    %459 = arith.mulf %456, %458 : vector<4x512xf32>
    %c0_197 = arith.constant 0 : index
    %c10_198 = arith.constant 10 : index
    %460 = vector.load %arg2[%c0_197, %c10_198] : memref<4x66xf32, #tpu.memory_space<vmem>>, vector<4x1xf32>
    %461 = vector.broadcast %460 : vector<4x1xf32> to vector<4x512xf32>
    %462 = arith.subf %0, %461 : vector<4x512xf32>
    %c0_199 = arith.constant 0 : index
    %c64 = arith.constant 64 : index
    %463 = vector.load %arg2[%c0_199, %c64] : memref<4x66xf32, #tpu.memory_space<vmem>>, vector<4x1xf32>
    %464 = vector.broadcast %463 : vector<4x1xf32> to vector<4x512xf32>
    %465 = arith.mulf %462, %464 : vector<4x512xf32>
    %466 = arith.mulf %459, %333 : vector<4x512xf32>
    %467 = arith.mulf %465, %348 : vector<4x512xf32>
    %468 = arith.subf %466, %467 : vector<4x512xf32>
    %c0_200 = arith.constant 0 : index
    %c7_201 = arith.constant 7 : index
    %469 = vector.load %arg2[%c0_200, %c7_201] : memref<4x66xf32, #tpu.memory_space<vmem>>, vector<4x1xf32>
    %470 = vector.broadcast %469 : vector<4x1xf32> to vector<4x512xf32>
    %471 = arith.subf %0, %470 : vector<4x512xf32>
    %c0_202 = arith.constant 0 : index
    %c57 = arith.constant 57 : index
    %472 = vector.load %arg2[%c0_202, %c57] : memref<4x66xf32, #tpu.memory_space<vmem>>, vector<4x1xf32>
    %473 = vector.broadcast %472 : vector<4x1xf32> to vector<4x512xf32>
    %474 = arith.mulf %471, %473 : vector<4x512xf32>
    %c0_203 = arith.constant 0 : index
    %c11_204 = arith.constant 11 : index
    %475 = vector.load %arg2[%c0_203, %c11_204] : memref<4x66xf32, #tpu.memory_space<vmem>>, vector<4x1xf32>
    %476 = vector.broadcast %475 : vector<4x1xf32> to vector<4x512xf32>
    %477 = arith.subf %0, %476 : vector<4x512xf32>
    %c0_205 = arith.constant 0 : index
    %c65 = arith.constant 65 : index
    %478 = vector.load %arg2[%c0_205, %c65] : memref<4x66xf32, #tpu.memory_space<vmem>>, vector<4x1xf32>
    %479 = vector.broadcast %478 : vector<4x1xf32> to vector<4x512xf32>
    %480 = arith.mulf %477, %479 : vector<4x512xf32>
    %481 = arith.mulf %474, %348 : vector<4x512xf32>
    %482 = arith.mulf %480, %363 : vector<4x512xf32>
    %483 = arith.subf %481, %482 : vector<4x512xf32>
    %484 = arith.negf %0 : vector<4x512xf32>
    %485 = math.exp %484 : vector<4x512xf32>
    %cst_206 = arith.constant 1.000000e+00 : f32
    %486 = vector.broadcast %cst_206 : f32 to vector<4x512xf32>
    %487 = arith.addf %486, %485 : vector<4x512xf32>
    %488 = arith.divf %486, %487 : vector<4x512xf32>
    %489 = arith.mulf %0, %488 : vector<4x512xf32>
    %490 = tpu.concatenate %378, %393, %408, %423, %438, %453, %468, %483, %489 in 0 : vector<4x512xf32>, vector<4x512xf32>, vector<4x512xf32>, vector<4x512xf32>, vector<4x512xf32>, vector<4x512xf32>, vector<4x512xf32>, vector<4x512xf32>, vector<4x512xf32> -> vector<36x512xf32>
    %c0_207 = arith.constant 0 : index
    %c0_208 = arith.constant 0 : index
    %491 = vector.load %arg3[%c0_207, %c0_208] : memref<32x36xf32, #tpu.memory_space<vmem>>, vector<32x36xf32>
    %cst_209 = arith.constant dense<0.000000e+00> : vector<32x512xf32>
    %492 = tpu.matmul %491, %490, %cst_209 {dimension_numbers = #tpu.dot_dimension_numbers<[1], [0], [0], [1], [0, 0, 1, 1], [], []>, precision = #tpu.contract_precision<fp32>} : vector<32x36xf32>, vector<36x512xf32>, vector<32x512xf32> -> vector<32x512xf32>
    %493 = vector.extract_strided_slice %492 {offsets = [0, 0], sizes = [8, 512], strides = [1, 1]} : vector<32x512xf32> to vector<8x512xf32>
    %494 = vector.extract_strided_slice %492 {offsets = [8, 0], sizes = [8, 512], strides = [1, 1]} : vector<32x512xf32> to vector<8x512xf32>
    %495 = arith.addf %493, %494 : vector<8x512xf32>
    %496 = vector.extract_strided_slice %492 {offsets = [16, 0], sizes = [8, 512], strides = [1, 1]} : vector<32x512xf32> to vector<8x512xf32>
    %497 = arith.addf %495, %496 : vector<8x512xf32>
    %498 = vector.extract_strided_slice %492 {offsets = [24, 0], sizes = [8, 512], strides = [1, 1]} : vector<32x512xf32> to vector<8x512xf32>
    %499 = arith.addf %497, %498 : vector<8x512xf32>
    %c0_210 = arith.constant 0 : index
    %c0_211 = arith.constant 0 : index
    %500 = vector.load %arg5[%c0_210, %c0_211] : memref<8x512xf32, #tpu.memory_space<vmem>>, vector<8x512xf32>
    tpu.vector_store %arg5[%c0_210, %c0_211], %499 {strides = array<i32>} : memref<8x512xf32, #tpu.memory_space<vmem>>, vector<8x512xf32>,
    %c0_212 = arith.constant 0 : index
    %c0_213 = arith.constant 0 : index
    %501 = vector.load %arg6[%c0_212, %c0_213] : memref<32x512xf32, #tpu.memory_space<vmem>>, vector<32x512xf32>
    tpu.vector_store %arg6[%c0_212, %c0_213], %492 {strides = array<i32>} : memref<32x512xf32, #tpu.memory_space<vmem>>, vector<32x512xf32>,
    %c0_214 = arith.constant 0 : index
    %c0_215 = arith.constant 0 : index
    %502 = vector.load %arg4[%c0_214, %c0_215] : memref<32x36xf32, #tpu.memory_space<vmem>>, vector<32x36xf32>
    %cst_216 = arith.constant dense<0.000000e+00> : vector<32x512xf32>
    %503 = tpu.matmul %502, %490, %cst_216 {dimension_numbers = #tpu.dot_dimension_numbers<[1], [0], [0], [1], [0, 0, 1, 1], [], []>, precision = #tpu.contract_precision<fp32>} : vector<32x36xf32>, vector<36x512xf32>, vector<32x512xf32> -> vector<32x512xf32>
    %c0_217 = arith.constant 0 : index
    %c0_218 = arith.constant 0 : index
    %504 = vector.load %arg7[%c0_217, %c0_218] : memref<32x512xf32, #tpu.memory_space<vmem>>, vector<32x512xf32>
    tpu.vector_store %arg7[%c0_217, %c0_218], %503 {strides = array<i32>} : memref<32x512xf32, #tpu.memory_space<vmem>>, vector<32x512xf32>,
    return
  }
  func.func @transform_0(%arg0: i32) -> (i32, i32) {
    %c0_i32 = arith.constant 0 : i32
    %c0_i32_0 = arith.constant 0 : i32
    return %c0_i32, %arg0 : i32, i32
  }
  func.func @transform_1(%arg0: i32) -> (i32, i32) {
    %c0_i32 = arith.constant 0 : i32
    %c0_i32_0 = arith.constant 0 : i32
    %c0_i32_1 = arith.constant 0 : i32
    return %c0_i32, %c0_i32_0 : i32, i32
  }
  func.func @transform_2(%arg0: i32) -> (i32, i32) {
    %c0_i32 = arith.constant 0 : i32
    %c0_i32_0 = arith.constant 0 : i32
    %c0_i32_1 = arith.constant 0 : i32
    return %c0_i32, %c0_i32_0 : i32, i32
  }
  func.func @transform_3(%arg0: i32) -> (i32, i32) {
    %c0_i32 = arith.constant 0 : i32
    %c0_i32_0 = arith.constant 0 : i32
    %c0_i32_1 = arith.constant 0 : i32
    return %c0_i32, %c0_i32_0 : i32, i32
  }
  func.func @transform_4(%arg0: i32) -> (i32, i32) {
    %c0_i32 = arith.constant 0 : i32
    %c0_i32_0 = arith.constant 0 : i32
    return %c0_i32, %arg0 : i32, i32
  }
  func.func @transform_5(%arg0: i32) -> (i32, i32) {
    %c0_i32 = arith.constant 0 : i32
    %c0_i32_0 = arith.constant 0 : i32
    return %c0_i32, %arg0 : i32, i32
  }
  func.func @transform_6(%arg0: i32) -> (i32, i32) {
    %c0_i32 = arith.constant 0 : i32
    %c0_i32_0 = arith.constant 0 : i32
    return %c0_i32, %arg0 : i32, i32
  }
}

</mosaic_0001>

<bundles_post_ra>
// kernel: tpu_custom_call.1
= control target key start
LH: loop header
LB: loop body
LE: loop exit
PB: predicated region body
PF: predicated region fallthrough
CT: control target
= control target key end

     0   :  { %12 = vsyncpa [#allocation3], 0  ;;  %s7686_s0 = inlined_call_operand.hbm [shape: f32[4,1024], index: 0, kind: input, shape index: {}]   ;;  %s7687_s1 = inlined_call_operand.hbm [shape: f32[4,66], index: 1, kind: input, shape index: {}]   ;;  %s7688_s2 = inlined_call_operand.hbm [shape: f32[32,36], index: 2, kind: input, shape index: {}]   ;;  %s7689_s3 = inlined_call_operand.hbm [shape: f32[32,36], index: 3, kind: input, shape index: {}]   ;;  %s7690_s4 = inlined_call_operand.hbm [shape: f32[8,1024], index: 4, kind: output, shape index: {0}]   ;;  %s7691_s5 = inlined_call_operand.hbm [shape: f32[32,1024], index: 5, kind: output, shape index: {1}]   ;;  %s7692_s6 = inlined_call_operand.hbm [shape: f32[32,1024], index: 6, kind: output, shape index: {2}]  }
   0x1   :  { %14 = vsyncpa [#allocation3 + $0x1], 0 }
   0x2   :  { %15 = vsyncpa [#allocation6], 0 }
   0x3   :  { %16 = vsyncpa [#allocation9], 0 }
   0x4   :  { %17 = vsyncpa [#allocation4], 0 }
   0x5   :  { %19 = vsyncpa [#allocation4 + $0x1], 0 }
   0x6   :  { %20 = vsyncpa [#allocation12], 0 }
   0x7   :  { %22 = vsyncpa [#allocation12 + $0x1], 0  ;;  %s5664_s21 = smov 0   ;;  %s5666_s22 = smov 0  }
   0x8   :  { %s5668_s23 = smov 0   ;;  %s5670_s24 = smov 0  }
   0x9 LB: > { %s5685_s25 = sadd.s32 4294967295, %s5546_s24   ;;  %s7746_s26 = sadd.s32 4294967294, %s5546_s24   ;;  %s5546_s24 = sphi %s5670_s24, %s7885_s24   ;;  %s5542_s23 = sphi %s5668_s23, %s7884_s23   ;;  %s5538_s22 = sphi %s5666_s22, %s7883_s22   ;;  %s5534_s21 = sphi %s5664_s21, %s7882_s21  }
   0xa   : > { %p48_p0 = scmp.ne.s32.totalorder %s5538_s22, %s5534_s21  ;;  %p7693_p1 = scmp.eq.s32.totalorder %s5685_s25, 0 }
   0xb   : > { %p141_p3 = scmp.eq.s32.totalorder %s7746_s26, 1  ;;  %p4678_p5 = scmp.ge.s32.totalorder %s5546_s24, 1 }
   0xc   : > { %p5696_p4 = por %p7693_p1, %p48_p0  ;;  %p200_p7 = scmp.lt.s32.totalorder %s5546_s24, 3 }
   0xd   : > { %p5701_p6 = por %p141_p3, %p48_p0  ;;  %s5548_s30 = smov [#allocation5]  }
   0xe   : > { %s7749_s27 = scalar_select %p5696_p4, 1, 0 }
   0xf   : > { %s7750_s28 = scalar_select %p5701_p6, 1, 0 }
  0x10   : > { %p5706_p8 = pnand %p4678_p5, %p200_p7  ;;  %s213_s7 = sshll.u32 %s5548_s30, 4  ;;  %s214_s7 = int_to_ptr.vmem [resolvable:$true] %s213_s7 }
  0x11   : > { %s5549_s8 = smov [#allocation7]   ;;  %s5550_s11 = smov [#allocation8]  }
  0x12   : > { %s7751_s29 = scalar_select %p5706_p8, 1, 0 }
  0x13   : > { %p5083_p10 = pneg %p5706_p8  ;;  %s223_s9 = sshll.u32 %s5549_s8, 4  ;;  %s5719_s9 = int_to_ptr.vmem [resolvable:$true] %s223_s9 }
  0x14   : > { %s5721_s12 = sshll.u32 %s5550_s11, 4  ;;  %s5298_s15 = scalar_lea.hbm %s7687_s1, 64  ;;  %s237_s12 = int_to_ptr.vmem [resolvable:$true] %s5721_s12 }
  0x15   : > { %p5715_p11 = pnand %p5083_p10, %p7693_p1  ;;  %p5299_p12 = scmp.ne.s32.totalorder %s7687_s1, %s5298_s15 }
  0x16   : > { %p5305_p5 = scmp.lt.u32.totalorder %s5298_s15, %s7687_s1 }
  0x17   : > { %p5731_p13 = pneg %p5715_p11 }
  0x19   : > { %p5301_p0 = pnand %p5731_p13, %p5299_p12 }
  0x1b   : > { %p5302_p3 = pneg %p5301_p0 }
  0x1d   : > { %p5307_p7 = pnand %p5305_p5, %p5302_p3 }
  0x1f   : > { %5310 = shalt.err (!%p5307_p7)
}
  0x20   : > { %s5311_s30 = scalar_lea.vmem %s214_s7, 64  ;;  %p5319_p2 = scmp.lt.s32.totalorder %s214_s7, %s214_s7 }
  0x21   : > { %p5312_p10 = scmp.ne.s32.totalorder %s214_s7, %s5311_s30  ;;  %p5320_p6 = scmp.lt.s32.totalorder %s5311_s30, %s5311_s30 }
  0x23   : > { %p5314_p9 = pnand %p5312_p10, %p5731_p13  ;;  %p5321_p4 = por %p5320_p6, %p5319_p2 }
  0x25   : > { %p5315_p1 = pneg %p5314_p9 }
  0x27   : > { %p5322_p8 = pnand %p5321_p4, %p5315_p1 }
  0x29   : > { %5325 = shalt.err (!%p5322_p8)
}
  0x2a   : > { %5086 = dma.hbm_to_vmem [thread:$0]  (!%p5715_p11), %s7687_s1, 64, %s214_s7, [#allocation6]  }
  0x2b   : > { %s5326_s15 = scalar_lea.hbm %s7688_s2, 512 }
  0x2c   : > { %p5327_p9 = scmp.ne.s32.totalorder %s7688_s2, %s5326_s15  ;;  %p5333_p1 = scmp.lt.u32.totalorder %s5326_s15, %s7688_s2 }
  0x2e   : > { %p5329_p12 = pnand %p5327_p9, %p5731_p13 }
  0x30   : > { %p5330_p2 = pneg %p5329_p12 }
  0x32   : > { %p5335_p4 = pnand %p5333_p1, %p5330_p2 }
  0x34   : > { %5338 = shalt.err (!%p5335_p4)
}
  0x35   : > { %s5339_s7 = scalar_lea.vmem %s5719_s9, 512  ;;  %p5347_p3 = scmp.lt.s32.totalorder %s5719_s9, %s5719_s9 }
  0x36   : > { %p5340_p6 = scmp.ne.s32.totalorder %s5719_s9, %s5339_s7  ;;  %p5348_p5 = scmp.lt.s32.totalorder %s5339_s7, %s5339_s7 }
  0x38   : > { %p5342_p8 = pnand %p5340_p6, %p5731_p13  ;;  %p5349_p7 = por %p5348_p5, %p5347_p3 }
  0x3a   : > { %p5343_p0 = pneg %p5342_p8 }
  0x3c   : > { %p5350_p10 = pnand %p5349_p7, %p5343_p0 }
  0x3e   : > { %5353 = shalt.err (!%p5350_p10)
}
  0x3f   : > { %s5551_s30 = smov 128   ;;  %s5552_s8 = smov 8  }
  0x40   : > { %5089 = dma.hbm_to_vmem [thread:$0]  (!%p5715_p11), %s7688_s2, 512, %s5719_s9, [#allocation6], %s5551_s30, %s5551_s30, %s5552_s8  }
  0x41   : > { %s5354_s16 = scalar_lea.hbm %s7689_s3, 512 }
  0x42   : > { %p5355_p9 = scmp.ne.s32.totalorder %s7689_s3, %s5354_s16  ;;  %p5361_p1 = scmp.lt.u32.totalorder %s5354_s16, %s7689_s3 }
  0x44   : > { %p5357_p12 = pnand %p5355_p9, %p5731_p13 }
  0x46   : > { %p5358_p2 = pneg %p5357_p12 }
  0x48   : > { %p5363_p4 = pnand %p5361_p1, %p5358_p2 }
  0x4a   : > { %5366 = shalt.err (!%p5363_p4)
}
  0x4b   : > { %s5367_s11 = scalar_lea.vmem %s237_s12, 512  ;;  %p5375_p3 = scmp.lt.s32.totalorder %s237_s12, %s237_s12 }
  0x4c   : > { %p5368_p6 = scmp.ne.s32.totalorder %s237_s12, %s5367_s11  ;;  %p5376_p5 = scmp.lt.s32.totalorder %s5367_s11, %s5367_s11 }
  0x4e   : > { %p5370_p8 = pnand %p5368_p6, %p5731_p13  ;;  %p5377_p7 = por %p5376_p5, %p5375_p3 }
  0x50   : > { %p5371_p0 = pneg %p5370_p8 }
  0x52   : > { %p5378_p10 = pnand %p5377_p7, %p5371_p0 }
  0x54   : > { %5381 = shalt.err (!%p5378_p10)
}
  0x55   : > { %5092 = dma.hbm_to_vmem [thread:$0]  (!%p5715_p11), %s7689_s3, 512, %s237_s12, [#allocation9], %s5551_s30, %s5551_s30, %s5552_s8  }
  0x56   : > { %s5790_s18 = sadd.s32 1, %s5546_s24   ;;  %s35_s10 = sadd.s32 1, %s5542_s23 }
  0x57   : > { %s32_s14 = ssub.s32 %s5546_s24, %s5790_s18  ;;  %p42_p9 = scmp.ne.s32.totalorder %s5542_s23, %s5538_s22 }
  0x58   : > { %p33_p13 = scmp.eq.s32.totalorder %s32_s14, 0  ;;  %p43_p12 = scmp.eq.s32.totalorder %s5546_s24, 0 }
  0x59   : > { %p5110_p2 = scmp.lt.s32.totalorder %s5546_s24, 2  ;;  %p7754_p4 = scmp.eq.s32.totalorder %s5685_s25, 1 }
  0x5a   : > { %s5800_s15 = scalar_select %p33_p13, %s5542_s23, %s35_s10  }
  0x5b   : > { %p44_p1 = por %p43_p12, %p42_p9  ;;  %p5804_p6 = por %p7754_p4, %p42_p9 }
  0x5c   : > { %s250_s17 = sand.u32 1, %s5542_s23   ;;  %s4707_s19 = sshll.u32 %s5546_s24, 8 }
  0x5d   : > { %s4683_s12 = sshll.u32 %s250_s17, 4  ;;  %s5813_s20 = scalar_lea.hbm %s7686_s0, %s4707_s19 }
  0x5e   : > { %s254_s7 = scalar_lea.vmem [#allocation2], %s4683_s12  ;;  %p5815_p11 = pnand %p5110_p2, %p44_p1 }
  0x5f   : > { %s262_s11 = sshll.u32 %s254_s7, 4  ;;  %s251_s13 = scalar_lea.sflag [#allocation3], %s250_s17  ;;  %s5819_s11 = int_to_ptr.vmem [resolvable:$true] %s262_s11 }
  0x60   : > { %s5382_s14 = scalar_lea.hbm %s5813_s20, 256  ;;  %p5384_p0 = pneg %p5815_p11 }
  0x61   : > { %p5383_p8 = scmp.ne.s32.totalorder %s5813_s20, %s5382_s14  ;;  %s5387_s12 = scalar_lea.hbm %s7686_s0, 512 }
  0x62   : > { %p5388_p7 = scmp.lt.u32.totalorder %s5813_s20, %s7686_s0  ;;  %p5389_p10 = scmp.lt.u32.totalorder %s5387_s12, %s5382_s14 }
  0x63   : > { %p5385_p3 = pnand %p5384_p0, %p5383_p8  ;;  %p5391_p9 = scmp.lt.u32.totalorder %s5382_s14, %s5813_s20 }
  0x64   : > { %p5390_p13 = por %p5389_p10, %p5388_p7 }
  0x65   : > { %p5386_p5 = pneg %p5385_p3 }
  0x66   : > { %p5392_p12 = por %p5391_p9, %p5390_p13 }
  0x68   : > { %p5393_p2 = pnand %p5392_p12, %p5386_p5 }
  0x6a   : > { %5396 = shalt.err (!%p5393_p2)
}
  0x6b   : > { %s5397_s17 = scalar_lea.vmem %s5819_s11, 256  ;;  %s5553_s7 = smov [#allocation2]  }
  0x6c   : > { %p5398_p1 = scmp.ne.s32.totalorder %s5819_s11, %s5397_s17  ;;  %s5402_s10 = sshll.u32 %s5553_s7, 4  ;;  %s5403_s10 = int_to_ptr.vmem [resolvable:$false] %s5402_s10 }
  0x6d   : > { %s5404_s19 = scalar_lea.vmem %s5403_s10, 512  ;;  %p5405_p3 = scmp.lt.s32.totalorder %s5819_s11, %s5403_s10 }
  0x6e   : > { %p5400_p4 = pnand %p5398_p1, %p5384_p0  ;;  %p5406_p7 = scmp.lt.s32.totalorder %s5404_s19, %s5397_s17 }
  0x70   : > { %p5401_p8 = pneg %p5400_p4  ;;  %p5407_p10 = por %p5406_p7, %p5405_p3 }
  0x72   : > { %p5408_p13 = pnand %p5407_p10, %p5401_p8 }
  0x74   : > { %5411 = shalt.err (!%p5408_p13)
}
  0x75   : > { %5096 = dma.hbm_to_vmem [thread:$0]  (!%p5815_p11), %s5813_s20, 256, %s5819_s11, %s251_s13  }
  0x76   : > { %p7757_p5 = scmp.ne.s32.totalorder %s7751_s29, 0 }
  0x78   : > { %271 = sbr.rel (%p7757_p5) target bundleno = 917 (0x395), region = 36 }
  0x7f   : > { %s5849_s14 = sand.u32 1, %s5538_s22   ;;  %p7758_p0 = scmp.ne.s32.totalorder %s7749_s27, 0 }
  0x80   : > { %s4687_s12 = sshll.u32 %s5849_s14, 4  ;;  %s274_s30 = scalar_lea.sflag [#allocation3], %s5849_s14 }
  0x81   : > { %s5853_s8 = scalar_lea.vmem [#allocation2], %s4687_s12 }
  0x82   : > { %5513 = dma.done.wait (%p7758_p0), %s274_s30, 256  }
  0x83   : > { %5515 = vsyncadd (%p7758_p0), %s274_s30, 4294967040  ;;  %p7759_p11 = scmp.eq.s32.totalorder %s5685_s25, 0 }
  0x85   : > { %5517 = dma.done.wait (%p7759_p11), [#allocation6], 576   ;;  %p7760_p9 = pmov %p7759_p11 }
  0x87   : > { %5519 = vsyncadd (%p7760_p9), [#allocation6], 4294966720  ;;  %p7761_p12 = pmov %p7760_p9 }
  0x88   : > { %p7762_p2 = pmov %p7760_p9 }
  0x89   : > { %5521 = dma.done.wait (%p7761_p12), [#allocation9], 512  }
  0x8a   : > { %5523 = vsyncadd (%p7762_p2), [#allocation9], 4294966784  ;;  %v5554_v0 = vmov 2   ;;  %v5555_v1 = vmov 0   ;;  %v5867_v2 = vld [vmem:[#allocation5] sm:$0xf]  ;;  %v342_v51 = vlaneseq }
  0x8b   : > { %5226 = vset.pattern.permute.xlu1 %v5554_v0  ;;  %5224 = vset.pattern.permute.xlu0 %v5555_v1  ;;  %v5556_v3 = vmov 3   ;;  %v5557_v4 = vmov 1   ;;  %v5558_v5 = vmov 4   ;;  %v5559_v6 = vmov 5   ;;  %v5924_v63 = vld [vmem:[%s5853_s8] sm:$0xff]  ;;  %v5927_v0 = vld [vmem:[%s5853_s8 + $0x8] sm:$0xff] }
  0x8c   : > { %367 = vperm.xlu1 %5226, %v5867_v2   ;;  %337 = vperm.xlu0 %5224, %v5867_v2   ;;  %v5560_v7 = vmov 6   ;;  %v5561_v8 = vmov 12   ;;  %v5562_v9 = vmov 7   ;;  %v5563_v10 = vmov 23   ;;  %s7747_s27 = sshll.u32 %s5849_s14, 7  ;;  %s4691_s20 = sshll.u32 %s5849_s14, 5 }
  0x8d   : > { %v5564_v11 = vmov 22   ;;  %v5565_v12 = vmov 15   ;;  %v5566_v13 = vmov 13   ;;  %v5567_v14 = vmov 26   ;;  %s7514_s29 = scalar_lea.vmem [#allocation11], %s7747_s27  ;;  %s4465_s11 = sand.u32 1, %s5685_s25  }
  0x8e   : > { %v5568_v15 = vmov 14   ;;  %v5569_v16 = vmov 8   ;;  %v5570_v17 = vmov 24   ;;  %v5571_v18 = vmov 11   ;;  %s7527_s9 = sshll.u32 %s5685_s25, 9  ;;  %s4498_s13 = sshll.u32 %s7514_s29, 4  ;;  %s7540_s13 = int_to_ptr.vmem [resolvable:$true] %s4498_s13 }
  0x8f   : > { %v5572_v19 = vmov 25   ;;  %v5573_v20 = vmov 33   ;;  %v5574_v21 = vmov 16   ;;  %v5575_v22 = vmov 43   ;;  %s7538_s10 = scalar_lea.hbm %s7691_s5, %s7527_s9  ;;  %s7542_s19 = scalar_lea.vmem [#allocation10], %s4691_s20 }
  0x90   : > { %5227 = vset.pattern.permute.xlu1 %v5556_v3  ;;  %5225 = vset.pattern.permute.xlu0 %v5557_v4  ;;  %v5576_v23 = vmov 17   ;;  %v5577_v24 = vmov 18   ;;  %v5578_v25 = vmov 27   ;;  %v5579_v26 = vmov 29   ;;  %s4485_s12 = sshll.u32 %s7542_s19, 4  ;;  %s7553_s20 = scalar_lea.hbm %s7690_s4, %s7527_s9  ;;  %s7555_s12 = int_to_ptr.vmem [resolvable:$true] %s4485_s12 }
  0x91   : > { %384 = vperm.xlu1 %5227, %v5867_v2   ;;  %350 = vperm.xlu0 %5225, %v5867_v2   ;;  %v5580_v27 = vmov 9   ;;  %v5581_v28 = vmov 36   ;;  %v5582_v29 = vmov 10   ;;  %v5583_v30 = vmov 31   ;;  %s7561_s17 = scalar_lea.sflag [#allocation12], %s4465_s11  ;;  %s5412_s7 = scalar_lea.vmem %s7540_s13, 2048 }
  0x92   : > { %v5584_v31 = vmov 32   ;;  %v5585_v32 = vmov 38   ;;  %v5586_v33 = vmov 41   ;;  %v5587_v34 = vmov 48   ;;  %p5413_p1 = scmp.ne.s32.totalorder %s7540_s13, %s5412_s7  ;;  %s5623_s26 = smov [#allocation11]  }
  0x93   : > { %v5588_v35 = vmov 42   ;;  %v5589_v36 = vmov 52   ;;  %v5590_v37 = vmov 34   ;;  %v5591_v38 = vmov 49   ;;  %s5416_s27 = sshll.u32 %s5623_s26, 4  ;;  %s5417_s27 = int_to_ptr.vmem [resolvable:$false] %s5416_s27 }
  0x94   : > { %v5592_v39 = vmov 35   ;;  %v5593_v40 = vmov 53   ;;  %v5594_v41 = vmov 44   ;;  %v5595_v42 = vmov 62   ;;  %p5414_p4 = pnand %p5413_p1, %p5804_p6  ;;  %p5419_p3 = scmp.lt.s32.totalorder %s7540_s13, %s5417_s27 }
  0x95   : > { %5228 = vset.pattern.permute.xlu1 %v5558_v5  ;;  %5229 = vset.pattern.permute.xlu0 %v5559_v6  ;;  %v5596_v43 = vmov 28   ;;  %v5597_v44 = vmov 55   ;;  %v5598_v45 = vmov 19   ;;  %v5599_v46 = vmov 65  }
  0x96   : > { %401 = vperm.xlu1 %5228, %v5867_v2   ;;  %418 = vperm.xlu0 %5229, %v5867_v2   ;;  %v5600_v47 = vmov 20   ;;  %v5601_v48 = vmov 30   ;;  %v5602_v49 = vmov 839922192   ;;  %v5603_v52 = vmov 45   ;;  %p5415_p8 = pneg %p5414_p4 }
  0x97   : > { %v340_v50 = vunpack.c.l.s4 %v5602_v49  ;;  %v343_v54 = vshrl.u32 %v342_v51, 7  ;;  %v5604_v57 = vmov 21   ;;  %v5605_v62 = vmov 37  }
  0x98   : > { %vm5607_vm2 = vmmov 1  }
  0x99   : > { %v341_v53 = vunpack.c.0.s8 %v340_v50 }
  0x9a   : > { %5230 = vset.pattern.permute.xlu1 %v5560_v7  ;;  %5232 = vset.pattern.permute.xlu0 %v5561_v8  ;;  %v5606_v7 = vmov 46  }
  0x9b   : > { %435 = vperm.xlu1 %5230, %v5867_v2   ;;  %539 = vperm.xlu0 %5232, %v5867_v2   ;;  %v5919_v58 = vsub.s32 %v341_v53, %v343_v54 }
  0x9f   : > { %5231 = vset.pattern.permute.xlu1 %v5562_v9  ;;  %5235 = vset.pattern.permute.xlu0 %v5563_v10 }
  0xa0   : > { %452 = vperm.xlu1 %5231, %v5867_v2   ;;  %590 = vperm.xlu0 %5235, %v5867_v2  }
  0xa4   : > { %5233 = vset.pattern.permute.xlu1 %v5564_v11  ;;  %5238 = vset.pattern.permute.xlu0 %v5565_v12  ;;  %v5613_v11 = vmov 40  }
  0xa5   : > { %554 = vperm.xlu1 %5233, %v5867_v2   ;;  %643 = vperm.xlu0 %5238, %v5867_v2  }
  0xa9   : > { %5234 = vset.pattern.permute.xlu1 %v5566_v13  ;;  %5241 = vset.pattern.permute.xlu0 %v5567_v14  ;;  %v5608_v14 = vmov 47  }
  0xaa   : > { %575 = vperm.xlu1 %5234, %v5867_v2   ;;  %692 = vperm.xlu0 %5241, %v5867_v2  }
  0xae   : > { %5236 = vset.pattern.permute.xlu1 %v5568_v15  ;;  %5244 = vset.pattern.permute.xlu0 %v5569_v16 }
  0xaf   : > { %609 = vperm.xlu1 %5236, %v5867_v2   ;;  %469 = vperm.xlu0 %5244, %v5867_v2  }
  0xb3   : > { %5237 = vset.pattern.permute.xlu1 %v5570_v17  ;;  %5247 = vset.pattern.permute.xlu0 %v5571_v18 }
  0xb4   : > { %624 = vperm.xlu1 %5237, %v5867_v2   ;;  %520 = vperm.xlu0 %5247, %v5867_v2  }
  0xb8   : > { %5239 = vset.pattern.permute.xlu1 %v5572_v19  ;;  %5250 = vset.pattern.permute.xlu0 %v5573_v20 }
  0xb9   : > { %658 = vperm.xlu1 %5239, %v5867_v2   ;;  %913 = vperm.xlu0 %5250, %v5867_v2  }
  0xbd   : > { %5240 = vset.pattern.permute.xlu1 %v5574_v21  ;;  %5253 = vset.pattern.permute.xlu0 %v5575_v22 }
  0xbe   : > { %677 = vperm.xlu1 %5240, %v5867_v2   ;;  %958 = vperm.xlu0 %5253, %v5867_v2  }
  0xc2   : > { %5242 = vset.pattern.permute.xlu1 %v5576_v23  ;;  %5256 = vset.pattern.permute.xlu0 %v5577_v24 }
  0xc3   : > { %711 = vperm.xlu1 %5242, %v5867_v2   ;;  %745 = vperm.xlu0 %5256, %v5867_v2  }
  0xc7   : > { %5243 = vset.pattern.permute.xlu1 %v5578_v25  ;;  %5259 = vset.pattern.permute.xlu0 %v5579_v26  ;;  %v5609_v26 = vmov 39  }
  0xc8   : > { %726 = vperm.xlu1 %5243, %v5867_v2   ;;  %794 = vperm.xlu0 %5259, %v5867_v2  }
  0xcc   : > { %5245 = vset.pattern.permute.xlu1 %v5580_v27  ;;  %5262 = vset.pattern.permute.xlu0 %v5581_v28 }
  0xcd   : > { %486 = vperm.xlu1 %5245, %v5867_v2   ;;  %1009 = vperm.xlu0 %5262, %v5867_v2  }
  0xd1   : > { %5246 = vset.pattern.permute.xlu1 %v5582_v29  ;;  %5265 = vset.pattern.permute.xlu0 %v5583_v30 }
  0xd2   : > { %503 = vperm.xlu1 %5246, %v5867_v2   ;;  %862 = vperm.xlu0 %5265, %v5867_v2  }
  0xd6   : > { %5248 = vset.pattern.permute.xlu1 %v5584_v31  ;;  %5268 = vset.pattern.permute.xlu0 %v5585_v32 }
  0xd7   : > { %881 = vperm.xlu1 %5248, %v5867_v2   ;;  %1073 = vperm.xlu0 %5268, %v5867_v2  }
  0xdb   : > { %5249 = vset.pattern.permute.xlu1 %v5586_v33  ;;  %5271 = vset.pattern.permute.xlu0 %v5587_v34 }
  0xdc   : > { %894 = vperm.xlu1 %5249, %v5867_v2   ;;  %1118 = vperm.xlu0 %5271, %v5867_v2  }
  0xe0   : > { %5251 = vset.pattern.permute.xlu1 %v5588_v35  ;;  %5274 = vset.pattern.permute.xlu0 %v5589_v36 }
  0xe1   : > { %926 = vperm.xlu1 %5251, %v5867_v2   ;;  %1233 = vperm.xlu0 %5274, %v5867_v2  }
  0xe5   : > { %5252 = vset.pattern.permute.xlu1 %v5590_v37  ;;  %5277 = vset.pattern.permute.xlu0 %v5591_v38 }
  0xe6   : > { %945 = vperm.xlu1 %5252, %v5867_v2   ;;  %1150 = vperm.xlu0 %5277, %v5867_v2  }
  0xea   : > { %5254 = vset.pattern.permute.xlu1 %v5592_v39  ;;  %5280 = vset.pattern.permute.xlu0 %v5593_v40 }
  0xeb   : > { %977 = vperm.xlu1 %5254, %v5867_v2   ;;  %1265 = vperm.xlu0 %5280, %v5867_v2  }
  0xef   : > { %5255 = vset.pattern.permute.xlu1 %v5594_v41  ;;  %5283 = vset.pattern.permute.xlu0 %v5595_v42 }
  0xf0   : > { %990 = vperm.xlu1 %5255, %v5867_v2   ;;  %1310 = vperm.xlu0 %5283, %v5867_v2  }
  0xf4   : > { %5257 = vset.pattern.permute.xlu1 %v5596_v43  ;;  %5286 = vset.pattern.permute.xlu0 %v5597_v44 }
  0xf5   : > { %760 = vperm.xlu1 %5257, %v5867_v2   ;;  %1329 = vperm.xlu0 %5286, %v5867_v2  }
  0xf9   : > { %5258 = vset.pattern.permute.xlu1 %v5598_v45  ;;  %5289 = vset.pattern.permute.xlu0 %v5599_v46  ;;  %v5610_v45 = vmov 50  }
  0xfa   : > { %779 = vperm.xlu1 %5258, %v5867_v2   ;;  %1406 = vperm.xlu0 %5289, %v5867_v2  }
  0xfe   : > { %5260 = vset.pattern.permute.xlu1 %v5600_v47 }
  0xff   : > { %813 = vperm.xlu1 %5260, %v5867_v2  }
 0x103   : > { %5261 = vset.pattern.permute.xlu1 %v5601_v48 }
 0x104   : > { %828 = vperm.xlu1 %5261, %v5867_v2  }
 0x108   : > { %5263 = vset.pattern.permute.xlu1 %v5603_v52 }
 0x109   : > { %1022 = vperm.xlu1 %5263, %v5867_v2  }
 0x10b   : > { %v368_v55 = vpop.permute.xlu1 %367  ;;  %v338_v56 = vpop.permute.xlu0 %337 }
 0x10c   : > { %v5930_v1 = vrot.slane %v368_v55, %v5919_v58  ;;  %v345_v8 = vrot.slane %v338_v56, %v5919_v58 }
 0x10d   : > { %5264 = vset.pattern.permute.xlu1 %v5604_v57 }
 0x10e   : > { %847 = vperm.xlu1 %5264, %v5867_v2   ;;  %vm377_vm4 = vcmp.ge.f32.partialorder %v5924_v63, %v5930_v1  ;;  %vm378_vm6 = vcmp.ge.f32.partialorder %v5927_v0, %v5930_v1  ;;  %v5993_v16 = vsub.f32 %v5924_v63, %v345_v8  ;;  %v5998_v18 = vsub.f32 %v5927_v0, %v345_v8 }
 0x10f   : > { %v6055_v38 = vsub.f32 %v5924_v63, %v5930_v1  ;;  %v6059_v39 = vsub.f32 %v5927_v0, %v5930_v1 }
 0x110   : > { %v385_v59 = vpop.permute.xlu1 %384  ;;  %v351_v60 = vpop.permute.xlu0 %350 }
 0x111   : > { %v392_v61 = vrot.slane %v385_v59, %v5919_v58  ;;  %v5937_v5 = vrot.slane %v351_v60, %v5919_v58 }
 0x112   : > { %5266 = vset.pattern.permute.xlu1 %v5605_v62 }
 0x113   : > { %1041 = vperm.xlu1 %5266, %v5867_v2   ;;  %vm394_vm0 = vcmp.ge.f32.partialorder %v5924_v63, %v392_v61  ;;  %vm395_vm1 = vcmp.ge.f32.partialorder %v5927_v0, %v392_v61  ;;  %vm7699_vm8 = vcmp.ge.f32.partialorder %v5924_v63, %v5937_v5  ;;  %vm7696_vm11 = vcmp.ge.f32.partialorder %v5927_v0, %v5937_v5 }
 0x114   : > { %vm396_vm3 = vmxor %vm394_vm0, %vm5607_vm2  ;;  %v6010_v21 = vsub.f32 %v5924_v63, %v392_v61  ;;  %v6013_v22 = vsub.f32 %v5927_v0, %v392_v61  ;;  %v6105_v52 = vsub.f32 %v5924_v63, %v5937_v5  ;;  %v6109_v53 = vsub.f32 %v5927_v0, %v5937_v5 }
 0x115   : > { %v402_v3 = vpop.permute.xlu1 %401  ;;  %v5933_v4 = vpop.permute.xlu0 %418  ;;  %vm397_vm5 = vmxor %vm395_vm1, %vm5607_vm2 }
 0x116   : > { %v5940_v6 = vrot.slane %v402_v3, %v5919_v58  ;;  %vm5957_vm7 = vmand %vm377_vm4, %vm396_vm3  ;;  %vm347_vm3 = vcmp.ge.f32.partialorder %v5924_v63, %v345_v8  ;;  %7785 = vst [vmem:[#allocation19_spill] sm:$0xff] %v6105_v52  ;;  %v5611_v3 = vmov 58  }
 0x117   : > { %5267 = vset.pattern.permute.xlu1 %v5606_v7  ;;  %vm5966_vm9 = vmand %vm378_vm6, %vm397_vm5  ;;  %7786 = vst [vmem:[#allocation20_spill] sm:$0xff] %v6109_v53 }
 0x118   : > { %1054 = vperm.xlu1 %5267, %v5867_v2   ;;  %vm7697_vm10 = vcmp.ge.f32.partialorder %v5924_v63, %v5940_v6  ;;  %vm5978_vm12 = vmxor %vm7699_vm8, %vm5607_vm2  ;;  %vm7698_vm13 = vcmp.ge.f32.partialorder %v5927_v0, %v5940_v6 }
 0x119   : > { %vm5988_vm14 = vmxor %vm7696_vm11, %vm5607_vm2  ;;  %vm348_vm11 = vcmp.ge.f32.partialorder %v5927_v0, %v345_v8 }
 0x11a   : > { %v436_v9 = vpop.permute.xlu1 %435  ;;  %v540_v10 = vpop.permute.xlu0 %539  ;;  %vm413_vm15 = vmxor %vm7697_vm10, %vm5607_vm2 }
 0x11b   : > { %v547_v17 = vrot.slane %v540_v10, %v5919_v58  ;;  %vm414_vm5 = vmxor %vm7698_vm13, %vm5607_vm2  ;;  %v6068_v42 = vrot.slane %v436_v9, %v5919_v58 }
 0x11c   : > { %5269 = vset.pattern.permute.xlu1 %v5608_v14  ;;  %vm6019_vm10 = vmand %vm394_vm0, %vm413_vm15 }
 0x11d   : > { %1086 = vperm.xlu1 %5269, %v5867_v2   ;;  %v549_v25 = vmul.f32 %v547_v17, %v5993_v16  ;;  %vm6026_vm13 = vmand %vm395_vm1, %vm414_vm5  ;;  %v550_v29 = vmul.f32 %v547_v17, %v5998_v18  ;;  %vm445_vm5 = vcmp.ge.f32.partialorder %v5924_v63, %v6068_v42 }
 0x11e   : > { %vm6032_vm8 = vmand %vm347_vm3, %vm5978_vm12  ;;  %vm7779_vm12 = vcmp.ge.f32.partialorder %v5924_v63, %v5937_v5 }
 0x11f   : > { %v453_v19 = vpop.permute.xlu1 %452  ;;  %v591_v20 = vpop.permute.xlu0 %590  ;;  %vm6045_vm0 = vmand %vm348_vm11, %vm5988_vm14  ;;  %v566_v43 = vsel %vm6032_vm8, %v549_v25, 0.0  ;;  %v426_v25 = vrot.slane %v5933_v4, %v5919_v58  ;;  %v6185_v4 = vsub.f32 %v5927_v0, %v5940_v6 }
 0x120   : > { %v598_v23 = vrot.slane %v591_v20, %v5919_v58  ;;  %v6038_v30 = vrot.slane %v453_v19, %v5919_v58  ;;  %vm379_vm1 = vmxor %vm377_vm4, %vm5607_vm2  ;;  %v567_v44 = vsel %vm6045_vm0, %v550_v29, 0.0 }
 0x121   : > { %5270 = vset.pattern.permute.xlu1 %v5609_v26  ;;  %vm380_vm11 = vmxor %vm378_vm6, %vm5607_vm2  ;;  %vm7782_vm6 = vcmp.ge.f32.partialorder %v5927_v0, %v5937_v5 }
 0x122   : > { %v600_v31 = vmul.f32 %v598_v23, %v6010_v21  ;;  %v601_v32 = vmul.f32 %v598_v23, %v6013_v22  ;;  %1105 = vperm.xlu1 %5270, %v5867_v2   ;;  %vm462_vm4 = vcmp.ge.f32.partialorder %v5924_v63, %v6038_v30  ;;  %vm6083_vm14 = vmand %vm7779_vm12, %vm379_vm1  ;;  %vm7700_vm15 = vcmp.ge.f32.partialorder %v5927_v0, %v6038_v30 }
 0x123   : > { %vm6099_vm8 = vmand %vm7782_vm6, %vm380_vm11  ;;  %vm446_vm1 = vcmp.ge.f32.partialorder %v5927_v0, %v6068_v42  ;;  %v5612_v23 = vmov 60  }
 0x124   : > { %v604_v34 = vsel %vm5957_vm7, %v600_v31, 0.0  ;;  %v605_v35 = vsel %vm5966_vm9, %v601_v32, 0.0  ;;  %v555_v36 = vpop.permute.xlu1 %554  ;;  %v644_v37 = vpop.permute.xlu0 %643  ;;  %vm464_vm3 = vmxor %vm462_vm4, %vm5607_vm2 }
 0x125   : > { %v562_v40 = vrot.slane %v555_v36, %v5919_v58  ;;  %v651_v41 = vrot.slane %v644_v37, %v5919_v58  ;;  %vm465_vm0 = vmxor %vm7700_vm15, %vm5607_vm2  ;;  %v6194_v37 = vsub.f32 %v5924_v63, %v426_v25 }
 0x126   : > { %5272 = vset.pattern.permute.xlu1 %v5610_v45  ;;  %vm6146_vm11 = vmand %vm445_vm5, %vm464_vm3 }
 0x127   : > { %v564_v47 = vmul.f32 %v562_v40, %v6055_v38  ;;  %v565_v48 = vmul.f32 %v562_v40, %v6059_v39  ;;  %v6090_v49 = vmul.f32 %v651_v41, %v6010_v21  ;;  %v6093_v50 = vmul.f32 %v651_v41, %v6013_v22  ;;  %1169 = vperm.xlu1 %5272, %v5867_v2   ;;  %vm6153_vm12 = vmand %vm446_vm1, %vm465_vm0 }
 0x128   : > { %v6197_v40 = vsub.f32 %v5927_v0, %v426_v25  ;;  %vm7795_vm0 = vcmp.ge.f32.partialorder %v5927_v0, %v5940_v6 }
 0x129   : > { %v568_v54 = vsel %vm6083_vm14, %v564_v47, 0.0  ;;  %v569_v55 = vsel %vm6099_vm8, %v565_v48, 0.0  ;;  %v670_v56 = vsel %vm6019_vm10, %v6090_v49, 0.0  ;;  %v671_v57 = vsel %vm6026_vm13, %v6093_v50, 0.0  ;;  %v576_v59 = vpop.permute.xlu1 %575  ;;  %v693_v60 = vpop.permute.xlu0 %692 }
 0x12a   : > { %v6123_v61 = vsub.f32 %v566_v43, %v568_v54  ;;  %v6125_v62 = vsub.f32 %v567_v44, %v569_v55  ;;  %v583_v1 = vrot.slane %v576_v59, %v5919_v58  ;;  %v700_v46 = vrot.slane %v693_v60, %v5919_v58 }
 0x12b   : > { %5273 = vset.pattern.permute.xlu1 %v5611_v3  ;;  %v5614_v54 = vmov 51   ;;  %v6219_v55 = vsub.f32 %v5924_v63, %v6068_v42  ;;  %v6233_v3 = vsub.f32 %v5927_v0, %v6068_v42 }
 0x12c   : > { %v585_v5 = vmul.f32 %v583_v1, %v6105_v52  ;;  %v586_v7 = vmul.f32 %v583_v1, %v6109_v53  ;;  %1182 = vperm.xlu1 %5273, %v5867_v2  }
 0x12e   : > { %v602_v10 = vsel %vm6083_vm14, %v585_v5, 0.0  ;;  %v603_v13 = vsel %vm6099_vm8, %v586_v7, 0.0  ;;  %v610_v14 = vpop.permute.xlu1 %609  ;;  %v6166_v20 = vpop.permute.xlu0 %469  ;;  %vm428_vm14 = vcmp.ge.f32.partialorder %v5924_v63, %v426_v25  ;;  %vm7792_vm8 = vcmp.ge.f32.partialorder %v5924_v63, %v5940_v6 }
 0x12f   : > { %v6161_v15 = vsub.f32 %v602_v10, %v604_v34  ;;  %v6163_v17 = vsub.f32 %v603_v13, %v605_v35  ;;  %v617_v19 = vrot.slane %v610_v14, %v5919_v58  ;;  %v6181_v34 = vsub.f32 %v5924_v63, %v5940_v6 }
 0x130   : > { %5275 = vset.pattern.permute.xlu1 %v5612_v23  ;;  %v702_v7 = vmul.f32 %v700_v46, %v6219_v55  ;;  %v703_v6 = vmul.f32 %v700_v46, %v6233_v3 }
 0x131   : > { %v619_v26 = vmul.f32 %v617_v19, %v6055_v38  ;;  %v620_v28 = vmul.f32 %v617_v19, %v6059_v39  ;;  %1246 = vperm.xlu1 %5275, %v5867_v2   ;;  %7791 = vst [vmem:[#allocation21_spill] sm:$0xff] %v6181_v34 }
 0x133   : > { %v636_v29 = vsel %vm5957_vm7, %v619_v26, 0.0  ;;  %v637_v31 = vsel %vm5966_vm9, %v620_v28, 0.0  ;;  %v625_v32 = vpop.permute.xlu1 %624  ;;  %v6177_v33 = vpop.permute.xlu0 %520  ;;  %vm429_vm7 = vcmp.ge.f32.partialorder %v5927_v0, %v426_v25  ;;  %vm430_vm9 = vmxor %vm428_vm14, %vm5607_vm2 }
 0x134   : > { %v632_v35 = vrot.slane %v625_v32, %v5919_v58  ;;  %vm431_vm6 = vmxor %vm429_vm7, %vm5607_vm2 }
 0x135   : > { %5276 = vset.pattern.permute.xlu1 %v5613_v11  ;;  %vm6224_vm3 = vmand %vm7792_vm8, %vm430_vm9 }
 0x136   : > { %v634_v12 = vmul.f32 %v632_v35, %v6181_v34  ;;  %v635_v36 = vmul.f32 %v632_v35, %v6185_v4  ;;  %1137 = vperm.xlu1 %5276, %v5867_v2   ;;  %vm6238_vm15 = vmand %vm7795_vm0, %vm431_vm6 }
 0x137   : > { %vm447_vm9 = vmxor %vm445_vm5, %vm5607_vm2 }
 0x138   : > { %v638_v41 = vsel %vm6019_vm10, %v634_v12, 0.0  ;;  %v639_v43 = vsel %vm6026_vm13, %v635_v36, 0.0  ;;  %v659_v44 = vpop.permute.xlu1 %658  ;;  %v6206_v45 = vpop.permute.xlu0 %913  ;;  %vm448_vm6 = vmxor %vm446_vm1, %vm5607_vm2 }
 0x139   : > { %v6209_v47 = vsub.f32 %v636_v29, %v638_v41  ;;  %v6211_v48 = vsub.f32 %v637_v31, %v639_v43  ;;  %v666_v51 = vrot.slane %v659_v44, %v5919_v58  ;;  %v5615_v29 = vmov 59   ;;  %vm6273_vm5 = vmand %vm428_vm14, %vm447_vm9 }
 0x13a   : > { %5278 = vset.pattern.permute.xlu1 %v5614_v54  ;;  %vm6282_vm10 = vmand %vm429_vm7, %vm448_vm6  ;;  %v706_v50 = vsel %vm6273_vm5, %v702_v7, 0.0  ;;  %v5616_v41 = vmov 61  }
 0x13b   : > { %v668_v60 = vmul.f32 %v666_v51, %v6194_v37  ;;  %v669_v1 = vmul.f32 %v666_v51, %v6197_v40  ;;  %1201 = vperm.xlu1 %5278, %v5867_v2  }
 0x13d   : > { %v672_v10 = vsel %vm6224_vm3, %v668_v60, 0.0  ;;  %v673_v13 = vsel %vm6238_vm15, %v669_v1, 0.0  ;;  %v678_v14 = vpop.permute.xlu1 %677  ;;  %v6251_v19 = vpop.permute.xlu0 %958 }
 0x13e   : > { %v6262_v23 = vsub.f32 %v670_v56, %v672_v10  ;;  %v6268_v26 = vsub.f32 %v671_v57, %v673_v13  ;;  %v685_v28 = vrot.slane %v678_v14, %v5919_v58  ;;  %v707_v56 = vsel %vm6282_vm10, %v703_v6, 0.0 }
 0x13f   : > { %5279 = vset.pattern.permute.xlu1 %v5615_v29  ;;  %v6323_v10 = vsub.f32 %v5924_v63, %v6038_v30  ;;  %v6327_v13 = vsub.f32 %v5927_v0, %v6038_v30  ;;  %v5617_v6 = vmov 54  }
 0x140   : > { %v687_v24 = vmul.f32 %v685_v28, %v6181_v34  ;;  %v688_v49 = vmul.f32 %v685_v28, %v6185_v4  ;;  %1214 = vperm.xlu1 %5279, %v5867_v2  }
 0x142   : > { %v704_v57 = vsel %vm6224_vm3, %v687_v24, 0.0  ;;  %v705_v31 = vsel %vm6238_vm15, %v688_v49, 0.0  ;;  %v712_v32 = vpop.permute.xlu1 %711  ;;  %v746_v35 = vpop.permute.xlu0 %745 }
 0x143   : > { %v6294_v11 = vsub.f32 %v704_v57, %v706_v50  ;;  %v6296_v25 = vsub.f32 %v705_v31, %v707_v56  ;;  %v719_v12 = vrot.slane %v712_v32, %v5919_v58  ;;  %v753_v36 = vrot.slane %v746_v35, %v5919_v58 }
 0x144   : > { %5281 = vset.pattern.permute.xlu1 %v5616_v41  ;;  %v5618_v31 = vmov 56  }
 0x145   : > { %v721_v43 = vmul.f32 %v719_v12, %v6194_v37  ;;  %v722_v44 = vmul.f32 %v719_v12, %v6197_v40  ;;  %v6303_v46 = vmul.f32 %v753_v36, %v6219_v55  ;;  %v6306_v51 = vmul.f32 %v753_v36, %v6233_v3  ;;  %1278 = vperm.xlu1 %5281, %v5867_v2  }
 0x147   : > { %v738_v54 = vsel %vm6273_vm5, %v721_v43, 0.0  ;;  %v739_v59 = vsel %vm6282_vm10, %v722_v44, 0.0  ;;  %v727_v5 = vpop.permute.xlu1 %726  ;;  %v6319_v7 = vpop.permute.xlu0 %794 }
 0x148   : > { %v734_v14 = vrot.slane %v727_v5, %v5919_v58 }
 0x149   : > { %5282 = vset.pattern.permute.xlu1 %v5617_v6  ;;  %v5620_v6 = vmov 63  }
 0x14a   : > { %v736_v28 = vmul.f32 %v734_v14, %v6323_v10  ;;  %v737_v29 = vmul.f32 %v734_v14, %v6327_v13  ;;  %1297 = vperm.xlu1 %5282, %v5867_v2  }
 0x14c   : > { %v740_v42 = vsel %vm6146_vm11, %v736_v28, 0.0  ;;  %v741_v24 = vsel %vm6153_vm12, %v737_v29, 0.0  ;;  %v487_v49 = vpop.permute.xlu1 %486  ;;  %v1010_v27 = vpop.permute.xlu0 %1009 }
 0x14d   : > { %v6337_v50 = vsub.f32 %v738_v54, %v740_v42  ;;  %v6339_v56 = vsub.f32 %v739_v59, %v741_v24  ;;  %v1017_v57 = vrot.slane %v1010_v27, %v5919_v58  ;;  %v5619_v54 = vmov 64  }
 0x14e   : > { %5284 = vset.pattern.permute.xlu1 %v5618_v31  ;;  %v6357_v59 = vrot.slane %v487_v49, %v5919_v58 }
 0x14f   : > { %1361 = vperm.xlu1 %5284, %v5867_v2   ;;  %v1019_v32 = vmul.f32 %v1017_v57, %v6181_v34  ;;  %v1020_v35 = vmul.f32 %v1017_v57, %v6185_v4 }
 0x150   : > { %vm496_vm14 = vcmp.ge.f32.partialorder %v5924_v63, %v6357_v59  ;;  %vm497_vm8 = vcmp.ge.f32.partialorder %v5927_v0, %v6357_v59 }
 0x151   : > { %v504_v12 = vpop.permute.xlu1 %503  ;;  %v6346_v36 = vmul.f32 %v1019_v32, %v6294_v11  ;;  %v6349_v41 = vmul.f32 %v1020_v35, %v6296_v25  ;;  %v6354_v44 = vpop.permute.xlu0 %862  ;;  %v921_v35 = vrot.slane %v6206_v45, %v5919_v58 }
 0x152   : > { %v6352_v43 = vrot.slane %v504_v12, %v5919_v58  ;;  %v5621_v12 = vmov 57  }
 0x153   : > { %5285 = vset.pattern.permute.xlu1 %v5619_v54  ;;  %v924_v45 = vmul.f32 %v921_v35, %v6109_v53 }
 0x154   : > { %vm513_vm13 = vcmp.ge.f32.partialorder %v5924_v63, %v6352_v43  ;;  %1374 = vperm.xlu1 %5285, %v5867_v2   ;;  %vm7705_vm15 = vcmp.ge.f32.partialorder %v5927_v0, %v6352_v43 }
 0x155   : > { %vm515_vm1 = vmxor %vm513_vm13, %vm5607_vm2  ;;  %v939_v1 = vmul.f32 %v924_v45, %v6163_v17 }
 0x156   : > { %v882_v5 = vpop.permute.xlu1 %881  ;;  %vm516_vm7 = vmxor %vm7705_vm15, %vm5607_vm2  ;;  %v6379_v42 = vpop.permute.xlu0 %1073 }
 0x157   : > { %v889_v14 = vrot.slane %v882_v5, %v5919_v58  ;;  %vm6385_vm3 = vmand %vm496_vm14, %vm515_vm1 }
 0x158   : > { %5287 = vset.pattern.permute.xlu1 %v5620_v6  ;;  %vm6392_vm0 = vmand %vm497_vm8, %vm516_vm7  ;;  %vm7808_vm7 = vcmp.ge.f32.partialorder %v5927_v0, %v6038_v30 }
 0x159   : > { %v891_v28 = vmul.f32 %v889_v14, %v5993_v16  ;;  %v892_v29 = vmul.f32 %v889_v14, %v5998_v18  ;;  %1342 = vperm.xlu1 %5287, %v5867_v2  }
 0x15b   : > { %v6397_v27 = vmul.f32 %v891_v28, %v6123_v61  ;;  %v6400_v57 = vmul.f32 %v892_v29, %v6125_v62  ;;  %v895_v31 = vpop.permute.xlu1 %894  ;;  %v6408_v14 = vpop.permute.xlu0 %1118  ;;  %v923_v28 = vmul.f32 %v921_v35, %v6105_v52 }
 0x15c   : > { %v902_v32 = vrot.slane %v895_v31, %v5919_v58  ;;  %v966_v31 = vrot.slane %v6251_v19, %v5919_v58 }
 0x15d   : > { %5288 = vset.pattern.permute.xlu1 %v5621_v12 }
 0x15e   : > { %v904_v54 = vmul.f32 %v902_v32, %v6010_v21  ;;  %v905_v5 = vmul.f32 %v902_v32, %v6013_v22  ;;  %1393 = vperm.xlu1 %5288, %v5867_v2   ;;  %v968_v53 = vmul.f32 %v966_v31, %v6194_v37  ;;  %v969_v2 = vmul.f32 %v966_v31, %v6197_v40 }
 0x160   : > { %v6411_v61 = vmul.f32 %v904_v54, %v6161_v15  ;;  %v6414_v62 = vmul.f32 %v905_v5, %v6163_v17  ;;  %v927_v6 = vpop.permute.xlu1 %926  ;;  %v938_v5 = vmul.f32 %v923_v28, %v6161_v15  ;;  %v1234_v60 = vpop.permute.xlu0 %1233 }
 0x161   : > { %v934_v29 = vrot.slane %v927_v6, %v5919_v58  ;;  %v1241_v15 = vrot.slane %v1234_v60, %v5919_v58 }
 0x163   : > { %v936_v12 = vmul.f32 %v934_v29, %v6181_v34  ;;  %v937_v54 = vmul.f32 %v934_v29, %v6185_v4  ;;  %v972_v29 = vmul.f32 %v968_v53, %v6262_v23 }
 0x165   : > { %v940_v35 = vmul.f32 %v936_v12, %v6209_v47  ;;  %v941_v6 = vmul.f32 %v937_v54, %v6211_v48  ;;  %v946_v19 = vpop.permute.xlu1 %945  ;;  %v6441_v45 = vpop.permute.xlu0 %1150  ;;  %v973_v12 = vmul.f32 %v969_v2, %v6268_v26 }
 0x166   : > { %v953_v32 = vrot.slane %v946_v19, %v5919_v58 }
 0x167   : > { %v6434_v52 = vsub.f32 %v938_v5, %v940_v35  ;;  %v6436_v34 = vsub.f32 %v939_v1, %v941_v6  ;;  %v477_v1 = vrot.slane %v6166_v20, %v5919_v58  ;;  %v1243_v35 = vmul.f32 %v1241_v15, %v6055_v38 }
 0x168   : > { %v955_v17 = vmul.f32 %v953_v32, %v6055_v38  ;;  %v956_v28 = vmul.f32 %v953_v32, %v6059_v39  ;;  %v1244_v32 = vmul.f32 %v1241_v15, %v6059_v39 }
 0x169   : > { %vm479_vm9 = vcmp.ge.f32.partialorder %v5924_v63, %v477_v1  ;;  %vm480_vm6 = vcmp.ge.f32.partialorder %v5927_v0, %v477_v1 }
 0x16a   : > { %v970_v31 = vmul.f32 %v955_v17, %v6209_v47  ;;  %v971_v54 = vmul.f32 %v956_v28, %v6211_v48  ;;  %v978_v5 = vpop.permute.xlu1 %977  ;;  %v1266_v17 = vpop.permute.xlu0 %1265  ;;  %vm481_vm5 = vmxor %vm479_vm9, %vm5607_vm2 }
 0x16b   : > { %v985_v60 = vrot.slane %v978_v5, %v5919_v58  ;;  %v1273_v28 = vrot.slane %v1266_v17, %v5919_v58  ;;  %vm482_vm10 = vmxor %vm480_vm6, %vm5607_vm2  ;;  %v6490_v5 = vsub.f32 %v5924_v63, %v6357_v59 }
 0x16c   : > { %v6452_v6 = vsub.f32 %v970_v31, %v972_v29  ;;  %v6454_v19 = vsub.f32 %v971_v54, %v973_v12  ;;  %v6480_v31 = vsub.f32 %v5927_v0, %v477_v1  ;;  %v802_v54 = vrot.slane %v6319_v7, %v5919_v58  ;;  %vm6503_vm1 = vmand %vm462_vm4, %vm481_vm5 }
 0x16d   : > { %v987_v53 = vmul.f32 %v985_v60, %v6010_v21  ;;  %v988_v47 = vmul.f32 %v985_v60, %v6013_v22  ;;  %vm6513_vm15 = vmand %vm7808_vm7, %vm482_vm10 }
 0x16e   : > { %v6459_v48 = vmul.f32 %v1243_v35, %v6452_v6  ;;  %v6462_v2 = vmul.f32 %v1244_v32, %v6454_v19  ;;  %vm498_vm4 = vmxor %vm496_vm14, %vm5607_vm2 }
 0x16f   : > { %v1002_v20 = vmul.f32 %v987_v53, %v6262_v23  ;;  %v1003_v38 = vmul.f32 %v988_v47, %v6268_v26  ;;  %v991_v39 = vpop.permute.xlu1 %990  ;;  %v7706_v23 = vmov 0.0   ;;  %v6477_v26 = vsub.f32 %v5924_v63, %v477_v1  ;;  %vm499_vm5 = vmxor %vm497_vm8, %vm5607_vm2 }
 0x170   : > { %v998_v15 = vrot.slane %v991_v39, %v5919_v58  ;;  %1606 = vmatprep.mubr.f32.mxu0 %v7706_v23  ;;  %2322 = vmatprep.mubr.f32.mxu1 %v7706_v23  ;;  %v6496_v53 = vsub.f32 %v5927_v0, %v6357_v59  ;;  %v1081_v47 = vrot.slane %v6379_v42, %v5919_v58  ;;  %vm6559_vm14 = vmand %vm479_vm9, %vm498_vm4 }
 0x171   : > { %vm6566_vm8 = vmand %vm480_vm6, %vm499_vm5  ;;  %v528_v39 = vrot.slane %v6177_v33, %v5919_v58 }
 0x172   : > { %v1000_v29 = vmul.f32 %v998_v15, %v6219_v55  ;;  %v1001_v12 = vmul.f32 %v998_v15, %v6233_v3  ;;  %v805_v59 = vmul.f32 %v802_v54, %v6496_v53 }
 0x173   : > { %v6628_v23 = vsub.f32 %v5924_v63, %v528_v39 }
 0x174   : > { %v1004_v60 = vmul.f32 %v1000_v29, %v6294_v11  ;;  %v1005_v35 = vmul.f32 %v1001_v12, %v6296_v25  ;;  %v761_v32 = vpop.permute.xlu1 %760  ;;  %v1275_v11 = vmul.f32 %v1273_v28, %v6010_v21  ;;  %v1276_v25 = vmul.f32 %v1273_v28, %v6013_v22 }
 0x175   : > { %v768_v17 = vrot.slane %v761_v32, %v5919_v58  ;;  %v804_v21 = vmul.f32 %v802_v54, %v6490_v5  ;;  %v7813_v32 = vsel %vm6146_vm11, %v6303_v46, 0.0  ;;  %vm530_vm11 = vcmp.ge.f32.partialorder %v5924_v63, %v528_v39 }
 0x176   : > { %v6517_v42 = vsub.f32 %v1002_v20, %v1004_v60  ;;  %v6519_v15 = vsub.f32 %v1003_v38, %v1005_v35  ;;  %v1083_v20 = vmul.f32 %v1081_v47, %v6219_v55  ;;  %v1084_v35 = vmul.f32 %v1081_v47, %v6233_v3 }
 0x177   : > { %v770_v29 = vmul.f32 %v768_v17, %v6477_v26  ;;  %v771_v12 = vmul.f32 %v768_v17, %v6480_v31 }
 0x178   : > { %v6533_v22 = vmul.f32 %v1275_v11, %v6517_v42  ;;  %v6536_v30 = vmul.f32 %v1276_v25, %v6519_v15  ;;  %v7814_v11 = vsel %vm6153_vm12, %v6306_v51, 0.0  ;;  %vm531_vm12 = vcmp.ge.f32.partialorder %v5927_v0, %v528_v39 }
 0x179   : > { %v774_v38 = vsel %vm6503_vm1, %v770_v29, 0.0  ;;  %v775_v28 = vsel %vm6513_vm15, %v771_v12, 0.0  ;;  %v780_v60 = vpop.permute.xlu1 %779  ;;  %vm533_vm9 = vmxor %vm531_vm12, %vm5607_vm2 }
 0x17a   : > { %7811 = vst [vmem:[#allocation22_spill] sm:$0xff] %v6533_v22  ;;  %7812 = vst [vmem:[#allocation23_spill] sm:$0xff] %v6536_v30  ;;  %v6549_v17 = vsub.f32 %v7813_v32, %v774_v38  ;;  %v6555_v25 = vsub.f32 %v7814_v11, %v775_v28  ;;  %v787_v54 = vrot.slane %v780_v60, %v5919_v58  ;;  %v808_v38 = vsel %vm6559_vm14, %v804_v21, 0.0 }
 0x17b   : > { %v1126_v21 = vrot.slane %v6408_v14, %v5919_v58 }
 0x17c   : > { %v6571_v9 = vmul.f32 %v1083_v20, %v6549_v17  ;;  %v6574_v46 = vmul.f32 %v1084_v35, %v6555_v25  ;;  %v789_v51 = vmul.f32 %v787_v54, %v6323_v10  ;;  %v790_v47 = vmul.f32 %v787_v54, %v6327_v13 }
 0x17d   : > { %v809_v20 = vsel %vm6566_vm8, %v805_v59, 0.0 }
 0x17e   : > { %v806_v12 = vsel %vm6503_vm1, %v789_v51, 0.0  ;;  %v807_v1 = vsel %vm6513_vm15, %v790_v47, 0.0  ;;  %v814_v28 = vpop.permute.xlu1 %813  ;;  %v6603_v47 = vsub.f32 %v5924_v63, %v6352_v43  ;;  %vm532_vm15 = vmxor %vm530_vm11, %vm5607_vm2  ;;  %vm7821_vm2 = vcmp.ge.f32.partialorder %v5927_v0, %v6352_v43 }
 0x17f   : > { %v6586_v60 = vsub.f32 %v806_v12, %v808_v38  ;;  %v6588_v35 = vsub.f32 %v807_v1, %v809_v20  ;;  %v821_v32 = vrot.slane %v814_v28, %v5919_v58  ;;  %v6607_v12 = vsub.f32 %v5927_v0, %v6352_v43  ;;  %vm534_vm6 = vmand %vm513_vm13, %vm532_vm15 }
 0x180   : > { %7819 = vst [vmem:[#allocation24_spill] sm:$0xff] %v6603_v47  ;;  %v1128_v29 = vmul.f32 %v1126_v21, %v6603_v47  ;;  %vm535_vm10 = vmand %vm7821_vm2, %vm533_vm9  ;;  %vm1511_vm13 = vcmask 293888  }
 0x181   : > { %v823_v11 = vmul.f32 %v821_v32, %v6477_v26  ;;  %v824_v7 = vmul.f32 %v821_v32, %v6480_v31  ;;  %7820 = vst [vmem:[#allocation25_spill] sm:$0xff] %v6607_v12  ;;  %v1129_v8 = vmul.f32 %v1126_v21, %v6607_v12  ;;  %v4694_v32 = vmul.f32 -1.442695, %v5924_v63 }
 0x182   : > { %v6631_v21 = vsub.f32 %v5927_v0, %v528_v39 }
 0x183   : > { %v840_v59 = vsel %vm6559_vm14, %v823_v11, 0.0  ;;  %v841_v54 = vsel %vm6566_vm8, %v824_v7, 0.0  ;;  %v829_v51 = vpop.permute.xlu1 %828  ;;  %5290 = vpow2.f32 %v4694_v32 }
 0x184   : > { %v836_v33 = vrot.slane %v829_v51, %v5919_v58 }
 0x186   : > { %v838_v1 = vmul.f32 %v836_v33, %v6603_v47  ;;  %v839_v14 = vmul.f32 %v836_v33, %v6607_v12  ;;  %v4695_v33 = vmul.f32 -1.442695, %v5927_v0 }
 0x188   : > { %v842_v38 = vsel %vm6385_vm3, %v838_v1, 0.0  ;;  %v843_v20 = vsel %vm6392_vm0, %v839_v14, 0.0  ;;  %v1023_v28 = vpop.permute.xlu1 %1022  ;;  %v870_v1 = vrot.slane %v6354_v44, %v5919_v58  ;;  %5292 = vpow2.f32 %v4695_v33 }
 0x189   : > { %v6621_v11 = vsub.f32 %v840_v59, %v842_v38  ;;  %v6623_v7 = vsub.f32 %v841_v54, %v843_v20  ;;  %v1030_v51 = vrot.slane %v1023_v28, %v5919_v58 }
 0x18b   : > { %v6639_v59 = vmul.f32 %v1128_v29, %v6621_v11  ;;  %v6642_v54 = vmul.f32 %v1129_v8, %v6623_v7  ;;  %v1032_v14 = vmul.f32 %v1030_v51, %v6323_v10  ;;  %v1033_v38 = vmul.f32 %v1030_v51, %v6327_v13 }
 0x18c   : > { %v872_v29 = vmul.f32 %v870_v1, %v6628_v23  ;;  %v873_v8 = vmul.f32 %v870_v1, %v6631_v21 }
 0x18d   : > { %v1036_v44 = vmul.f32 %v1032_v14, %v6337_v50  ;;  %v1037_v20 = vmul.f32 %v1033_v38, %v6339_v56  ;;  %v848_v28 = vpop.permute.xlu1 %847 }
 0x18e   : > { %v855_v51 = vrot.slane %v848_v28, %v5919_v58  ;;  %v876_v38 = vsel %vm534_vm6, %v872_v29, 0.0  ;;  %v877_v12 = vsel %vm535_vm10, %v873_v8, 0.0 }
 0x18f   : > { %v6661_v39 = vsub.f32 %v6346_v36, %v1036_v44  ;;  %v6664_v32 = vsub.f32 %v6349_v41, %v1037_v20  ;;  %v5291_v44 = vpop.eup %5290 }
 0x190   : > { %v857_v33 = vmul.f32 %v855_v51, %v6490_v5  ;;  %v858_v14 = vmul.f32 %v855_v51, %v6496_v53  ;;  %v1430_v8 = vadd.f32 1.0, %v5291_v44 }
 0x192   : > { %v874_v1 = vsel %vm6385_vm3, %v857_v33, 0.0  ;;  %v875_v28 = vsel %vm6392_vm0, %v858_v14, 0.0  ;;  %v1042_v43 = vpop.permute.xlu1 %1041  ;;  %v5293_v20 = vpop.eup %5292  ;;  %5294 = vrcp.f32 %v1430_v8  ;;  %vm1490_vm3 = vcmask 1043456  }
 0x193   : > { %v6672_v47 = vsub.f32 %v874_v1, %v876_v38  ;;  %v6674_v36 = vsub.f32 %v875_v28, %v877_v12  ;;  %v1049_v41 = vrot.slane %v1042_v43, %v5919_v58  ;;  %v1431_v14 = vadd.f32 1.0, %v5293_v20 }
 0x195   : > { %v1051_v51 = vmul.f32 %v1049_v41, %v6194_v37  ;;  %v1052_v29 = vmul.f32 %v1049_v41, %v6197_v40  ;;  %5296 = vrcp.f32 %v1431_v14 }
 0x197   : > { %v1055_v30 = vpop.permute.xlu1 %1054  ;;  %v1066_v12 = vmul.f32 %v1051_v51, %v6337_v50  ;;  %v1067_v38 = vmul.f32 %v1052_v29, %v6339_v56 }
 0x198   : > { %v1062_v24 = vrot.slane %v1055_v30, %v5919_v58 }
 0x19a   : > { %v1064_v49 = vmul.f32 %v1062_v24, %v6477_v26  ;;  %v1065_v33 = vmul.f32 %v1062_v24, %v6480_v31 }
 0x19c   : > { %v1068_v1 = vmul.f32 %v1064_v49, %v6549_v17  ;;  %v1069_v28 = vmul.f32 %v1065_v33, %v6555_v25  ;;  %v1087_v43 = vpop.permute.xlu1 %1086  ;;  %v5295_v14 = vpop.eup %5294 }
 0x19d   : > { %v1094_v22 = vrot.slane %v1087_v43, %v5919_v58  ;;  %v1507_v43 = vld [vmem:[#allocation7] sm:$0xff] }
 0x19e   : > { %v6687_v41 = vsub.f32 %v1066_v12, %v1068_v1  ;;  %v6689_v30 = vsub.f32 %v1067_v38, %v1069_v28 }
 0x19f   : > { %v1096_v44 = vmul.f32 %v1094_v22, %v6490_v5  ;;  %v1097_v20 = vmul.f32 %v1094_v22, %v6496_v53  ;;  %v5297_v38 = vpop.eup %5296 }
 0x1a1   : > { %v1100_v50 = vmul.f32 %v1096_v44, %v6586_v60  ;;  %v1101_v56 = vmul.f32 %v1097_v20, %v6588_v35  ;;  %v1106_v17 = vpop.permute.xlu1 %1105  ;;  %v7823_v44 = vsub.f32 %v6400_v57, %v6414_v62 }
 0x1a2   : > { %v1113_v25 = vrot.slane %v1106_v17, %v5919_v58  ;;  %v1513_v17 = vsel %vm1511_vm13, %v1507_v43, 0 }
 0x1a3   : > { %v6697_v51 = vsub.f32 %v6571_v9, %v1100_v50  ;;  %v6700_v29 = vsub.f32 %v6574_v46, %v1101_v56  ;;  %v1311_v56 = vpop.permute.xlu0 %1310 }
 0x1a4   : > { %v1115_v24 = vmul.f32 %v1113_v25, %v6323_v10  ;;  %v1116_v8 = vmul.f32 %v1113_v25, %v6327_v13  ;;  %v7824_v25 = vld [vmem:[#allocation21_spill] sm:$0xff] }
 0x1a6   : > { %v1130_v49 = vmul.f32 %v1115_v24, %v6586_v60  ;;  %v1131_v22 = vmul.f32 %v1116_v8, %v6588_v35  ;;  %v1170_v33 = vpop.permute.xlu1 %1169  ;;  %v7822_v60 = vsub.f32 %v6397_v27, %v6411_v61  ;;  %v1508_v24 = vld [vmem:[#allocation7 + $0x8] sm:$0xff] }
 0x1a7   : > { %v1177_v12 = vrot.slane %v1170_v33, %v5919_v58  ;;  %v1516_v33 = vsel %vm1511_vm13, %v1508_v24, 0 }
 0x1a8   : > { %v6708_v1 = vsub.f32 %v1130_v49, %v6639_v59  ;;  %v6711_v9 = vsub.f32 %v1131_v22, %v6642_v54  ;;  %v1436_v59 = vmul.f32 %v5295_v14, %v5924_v63  ;;  %v1437_v54 = vmul.f32 %v5297_v38, %v5927_v0  ;;  %v1509_v14 = vld [vmem:[#allocation7 + $0x10] sm:$0xff]  ;;  %v1330_v38 = vpop.permute.xlu0 %1329 }
 0x1a9   : > { %v1179_v46 = vmul.f32 %v1177_v12, %v5993_v16  ;;  %v1180_v28 = vmul.f32 %v1177_v12, %v5998_v18  ;;  %v1158_v18 = vrot.slane %v6441_v45, %v5919_v58  ;;  %v6731_v49 = vand.u32 4294901760, %v1513_v17 }
 0x1aa   : > { %v1488_v57 = vcombine.high %v1436_v59, %v1436_v59  ;;  %v1489_v62 = vcombine.high %v1437_v54, %v1437_v54  ;;  %v1524_v43 = vsel %vm1490_vm3, %v1436_v59, 0  ;;  %v1337_v59 = vrot.slane %v1330_v38, %v5919_v58 }
 0x1ab   : > { %v1194_v35 = vmul.f32 %v1179_v46, %v7822_v60  ;;  %v1195_v20 = vmul.f32 %v1180_v28, %v7823_v44  ;;  %v1183_v50 = vpop.permute.xlu1 %1182  ;;  %7825 = vst [vmem:[#allocation21_spill] sm:$0xff] %v6731_v49  ;;  %v1160_v22 = vmul.f32 %v1158_v18, %v6628_v23  ;;  %v1161_v12 = vmul.f32 %v1158_v18, %v6631_v21 }
 0x1ac   : > { %v1190_v16 = vrot.slane %v1183_v50, %v5919_v58  ;;  %v1526_v50 = vsel %vm1490_vm3, %v1488_v57, 0  ;;  %v6750_v18 = vand.u32 4294901760, %v1516_v33 }
 0x1ae   : > { %v1192_v27 = vmul.f32 %v1190_v16, %v7824_v25  ;;  %v1193_v61 = vmul.f32 %v1190_v16, %v6185_v4  ;;  %v1530_v16 = vsel %vm1490_vm3, %v1489_v62, 0  ;;  %7827 = vst [vmem:[#allocation27_spill] sm:$0xff] %v6750_v18 }
 0x1b0   : > { %v1196_v8 = vmul.f32 %v1192_v27, %v6434_v52  ;;  %v1197_v63 = vmul.f32 %v1193_v61, %v6436_v34  ;;  %v1247_v0 = vpop.permute.xlu1 %1246  ;;  %v1528_v27 = vsel %vm1490_vm3, %v1437_v54, 0  ;;  %v6748_v61 = vsub.f32 %v1513_v17, %v6731_v49 }
 0x1b1   : > { %v1254_v45 = vrot.slane %v1247_v0, %v5919_v58  ;;  %v6760_v54 = vand.u32 4294901760, %v1530_v16  ;;  %v6762_v17 = vand.u32 4294901760, %v1524_v43 }
 0x1b2   : > { %v6737_v46 = vsub.f32 %v1194_v35, %v1196_v8  ;;  %v6739_v28 = vsub.f32 %v1195_v20, %v1197_v63  ;;  %7826 = vst [vmem:[#allocation26_spill] sm:$0xff] %v6748_v61  ;;  %v1519_v35 = vsel %vm1511_vm13, %v1509_v14, 0  ;;  %v1318_v20 = vrot.slane %v1311_v56, %v5919_v58 }
 0x1b3   : > { %v1256_v60 = vmul.f32 %v1254_v45, %v6219_v55  ;;  %v1257_v44 = vmul.f32 %v1254_v45, %v6233_v3  ;;  %v6758_v63 = vand.u32 4294901760, %v1526_v50  ;;  %7828 = vst [vmem:[#allocation28_spill] sm:$0xff] %v6762_v17  ;;  %v6770_v45 = vand.u32 4294901760, %v1528_v27 }
 0x1b5   : > { %v1260_v24 = vmul.f32 %v1256_v60, %v6517_v42  ;;  %v1261_v8 = vmul.f32 %v1257_v44, %v6519_v15  ;;  %v1138_v57 = vpop.permute.xlu1 %1137  ;;  %7829 = vst [vmem:[#allocation29_spill] sm:$0xff] %v6770_v45  ;;  %v6772_v42 = vand.u32 4294901760, %v1519_v35  ;;  %v1407_v15 = vpop.permute.xlu0 %1406  ;;  %v6777_v60 = vand.u32 4294901760, %v6748_v61 }
 0x1b6   : > { %v1145_v62 = vrot.slane %v1138_v57, %v5919_v58  ;;  %v6780_v44 = vsub.f32 %v1516_v33, %v6750_v18  ;;  %v1164_v57 = vmul.f32 %v1160_v22, %v6672_v47 }
 0x1b7   : > { %v6765_v0 = vsub.f32 %v6459_v48, %v1260_v24  ;;  %v6768_v56 = vsub.f32 %v6462_v2, %v1261_v8  ;;  %7830 = vst [vmem:[#allocation30_spill] sm:$0xff] %v6772_v42  ;;  %7831 = vst [vmem:[#allocation31_spill] sm:$0xff] %v6777_v60  ;;  %v6783_v48 = vsub.f32 %v1526_v50, %v6758_v63 }
 0x1b8   : > { %v1147_v14 = vmul.f32 %v1145_v62, %v6477_v26  ;;  %v1148_v38 = vmul.f32 %v1145_v62, %v6480_v31  ;;  %v6786_v2 = vsub.f32 %v1530_v16, %v6760_v54  ;;  %v6789_v24 = vsub.f32 %v1524_v43, %v6762_v17 }
 0x1b9   : > { %v6792_v8 = vsub.f32 %v1528_v27, %v6770_v45  ;;  %v6796_v62 = vmul.f32 %v1161_v12, %v6674_v36  ;;  %v1414_v16 = vrot.slane %v1407_v15, %v5919_v58  ;;  %v6804_v49 = vsub.f32 %v1519_v35, %v6772_v42  ;;  %v1510_v35 = vld [vmem:[#allocation7 + $0x18] sm:$0xff] }
 0x1ba   : > { %v1162_v33 = vmul.f32 %v1147_v14, %v6621_v11  ;;  %v6800_v18 = vmul.f32 %v1148_v38, %v6623_v7  ;;  %v1202_v50 = vpop.permute.xlu1 %1201  ;;  %v1320_v43 = vmul.f32 %v1318_v20, %v6477_v26  ;;  %v1610_v11 = vsub.f32 %v6748_v61, %v6777_v60  ;;  %v7835_v60 = vld [vmem:[#allocation19_spill] sm:$0xff] }
 0x1bb   : > { %7832 = vst [vmem:[#allocation32_spill] sm:$0xff] %v6792_v8  ;;  %v1209_v36 = vrot.slane %v1202_v50, %v5919_v58  ;;  %v6813_v7 = vand.u32 4294901760, %v6780_v44  ;;  %v6816_v22 = vand.u32 4294901760, %v6783_v48  ;;  %v6819_v12 = vand.u32 4294901760, %v6786_v2 }
 0x1bc   : > { %v1166_v27 = vsub.f32 %v1162_v33, %v1164_v57  ;;  %v1167_v47 = vsub.f32 %v6800_v18, %v6796_v62  ;;  %v1321_v26 = vmul.f32 %v1318_v20, %v6480_v31  ;;  %v1339_v15 = vmul.f32 %v1337_v59, %v6194_v37  ;;  %v7836_v20 = vld [vmem:[#allocation20_spill] sm:$0xff] }
 0x1bd   : > { %v6824_v18 = vand.u32 4294901760, %v6789_v24  ;;  %v6827_v14 = vand.u32 4294901760, %v6792_v8  ;;  %v1340_v38 = vmul.f32 %v1337_v59, %v6197_v40  ;;  %v1416_v57 = vmul.f32 %v1414_v16, %v6628_v23 }
 0x1be   : > { %v1417_v62 = vmul.f32 %v1414_v16, %v6631_v21  ;;  %v6833_v50 = vand.u32 4294901760, %v6804_v49  ;;  %v1211_v31 = vmul.f32 %v1209_v36, %v7835_v60  ;;  %v1212_v61 = vmul.f32 %v1209_v36, %v7836_v20 }
 0x1bf   : > { %7833 = vst [vmem:[#allocation33_spill] sm:$0xff] %v6824_v18  ;;  %7834 = vst [vmem:[#allocation34_spill] sm:$0xff] %v6827_v14  ;;  %v1215_v33 = vpop.permute.xlu1 %1214  ;;  %v6839_v45 = vsel %vm1511_vm13, %v1510_v35, 0  ;;  %v6841_v17 = vand.u32 4294901760, %v1610_v11  ;;  %v1324_v35 = vmul.f32 %v1320_v43, %v6687_v41  ;;  %v1440_v43 = vcombine.high %v6737_v46, %v6737_v46  ;;  %v7838_v14 = vld [vmem:[#allocation23_spill] sm:$0xff] }
 0x1c0   : > { %v1222_v42 = vrot.slane %v1215_v33, %v5919_v58  ;;  %v1325_v33 = vmul.f32 %v1321_v26, %v6689_v30  ;;  %v6860_v21 = vand.u32 4294901760, %v6839_v45  ;;  %v6870_v11 = vmul.f32 %v1339_v15, %v6687_v41 }
 0x1c1   : > { %v6873_v20 = vmul.f32 %v1340_v38, %v6689_v30  ;;  %v6883_v41 = vmul.f32 %v1416_v57, %v1166_v27 }
 0x1c2   : > { %v1224_v60 = vmul.f32 %v1222_v42, %v6194_v37  ;;  %v1225_v16 = vmul.f32 %v1222_v42, %v6197_v40  ;;  %v1226_v37 = vmul.f32 %v1211_v31, %v6434_v52  ;;  %v1227_v40 = vmul.f32 %v1212_v61, %v6436_v34 }
 0x1c3   : > { %v1441_v52 = vcombine.high %v6739_v28, %v6739_v28  ;;  %v1452_v34 = vcombine.high %v6765_v0, %v6765_v0  ;;  %v1453_v61 = vcombine.high %v6768_v56, %v6768_v56 }
 0x1c4   : > { %v1228_v42 = vmul.f32 %v1224_v60, %v6452_v6  ;;  %v1229_v36 = vmul.f32 %v1225_v16, %v6454_v19  ;;  %v1279_v59 = vpop.permute.xlu1 %1278 }
 0x1c5   : > { %v1286_v26 = vrot.slane %v1279_v59, %v5919_v58 }
 0x1c6   : > { %v1230_v6 = vsub.f32 %v1226_v37, %v1228_v42  ;;  %v1231_v19 = vsub.f32 %v1227_v40, %v1229_v36 }
 0x1c7   : > { %v1288_v31 = vmul.f32 %v1286_v26, %v6323_v10  ;;  %v1289_v59 = vmul.f32 %v1286_v26, %v6327_v13  ;;  %v6894_v26 = vmul.f32 %v1417_v62, %v1167_v47 }
 0x1c8   : > { %v1446_v15 = vcombine.low %v1230_v6, %v1230_v6  ;;  %v1447_v30 = vcombine.low %v1231_v19, %v1231_v19  ;;  %v1492_v38 = vsel %vm1490_vm3, %v1440_v43, %v1230_v6  ;;  %v1494_v60 = vsel %vm1490_vm3, %v1441_v52, %v1231_v19  ;;  %v7837_v52 = vld [vmem:[#allocation22_spill] sm:$0xff] }
 0x1c9   : > { %v1532_v16 = vand.u32 4294901760, %v1492_v38  ;;  %v2248_v23 = vand.u32 4294901760, %v1494_v60  ;;  %v1292_v37 = vmul.f32 %v1288_v31, %v6661_v39  ;;  %v1293_v36 = vmul.f32 %v1289_v59, %v6664_v32  ;;  %v1298_v40 = vpop.permute.xlu1 %1297 }
 0x1ca   : > { %v1491_v42 = vsel %vm1490_vm3, %v6737_v46, %v1446_v15  ;;  %v1493_v27 = vsel %vm1490_vm3, %v6739_v28, %v1447_v30  ;;  %v1305_v57 = vrot.slane %v1298_v40, %v5919_v58 }
 0x1cb   : > { %v1534_v43 = vand.u32 4294901760, %v1491_v42  ;;  %v2250_v6 = vand.u32 4294901760, %v1493_v27  ;;  %v1294_v19 = vsub.f32 %v7837_v52, %v1292_v37  ;;  %v1295_v8 = vsub.f32 %v7838_v14, %v1293_v36 }
 0x1cc   : > { %v1307_v31 = vmul.f32 %v1305_v57, %v7824_v25  ;;  %v1308_v59 = vmul.f32 %v1305_v57, %v6185_v4  ;;  %v6900_v18 = vsub.f32 %v1492_v38, %v1532_v16  ;;  %v6902_v46 = vsub.f32 %v1494_v60, %v2248_v23 }
 0x1cd   : > { %v6904_v15 = vsub.f32 %v1491_v42, %v1534_v43  ;;  %v6906_v28 = vsub.f32 %v1493_v27, %v2250_v6  ;;  %v1458_v47 = vcombine.low %v1294_v19, %v1294_v19  ;;  %v1459_v62 = vcombine.low %v1295_v8, %v1295_v8 }
 0x1ce   : > { %v1496_v30 = vsel %vm1490_vm3, %v1452_v34, %v1294_v19  ;;  %v1498_v37 = vsel %vm1490_vm3, %v1453_v61, %v1295_v8  ;;  %v1322_v14 = vmul.f32 %v1307_v31, %v6661_v39  ;;  %v1323_v25 = vmul.f32 %v1308_v59, %v6664_v32  ;;  %v1362_v36 = vpop.permute.xlu1 %1361 }
 0x1cf   : > { %v1495_v4 = vsel %vm1490_vm3, %v6765_v0, %v1458_v47  ;;  %v1497_v38 = vsel %vm1490_vm3, %v6768_v56, %v1459_v62  ;;  %v1536_v60 = vand.u32 4294901760, %v1496_v30  ;;  %v2252_v40 = vand.u32 4294901760, %v1498_v37 }
 0x1d0   : > { %v1538_v42 = vand.u32 4294901760, %v1495_v4  ;;  %v2254_v27 = vand.u32 4294901760, %v1497_v38  ;;  %v6916_v57 = vsub.f32 %v1322_v14, %v1324_v35  ;;  %v6918_v34 = vsub.f32 %v1323_v25, %v1325_v33  ;;  %v7842_v25 = vld [vmem:[#allocation24_spill] sm:$0xff] }
 0x1d1   : > { %v6920_v8 = vpack.c.bf16 %v1536_v60, %v1532_v16  ;;  %v6922_v39 = vpack.c.bf16 %v2252_v40, %v2248_v23  ;;  %v1369_v32 = vrot.slane %v1362_v36, %v5919_v58  ;;  %v7731_v61 = vand.u32 4294901760, %v6900_v18 }
 0x1d2   : > { %v6926_v0 = vpack.c.bf16 %v1538_v42, %v1534_v43  ;;  %v6928_v52 = vsub.f32 %v1495_v4, %v1538_v42  ;;  %v6930_v56 = vpack.c.bf16 %v2254_v27, %v2250_v6  ;;  %v6932_v19 = vsub.f32 %v1497_v38, %v2254_v27  ;;  %v7843_v4 = vld [vmem:[#allocation25_spill] sm:$0xff] }
 0x1d3   : > { %7839 = vst [vmem:[#allocation19_spill] sm:$0xff] %v6922_v39  ;;  %v1371_v23 = vmul.f32 %v1369_v32, %v6219_v55  ;;  %v1372_v16 = vmul.f32 %v1369_v32, %v6233_v3  ;;  %4712 = vmatprep.subr.bf16.mxu0 %v6920_v8  ;;  %v1375_v43 = vpop.permute.xlu1 %1374  ;;  %4760 = vmatprep.subr.bf16.mxu1 %v6922_v39  ;;  %v7730_v47 = vand.u32 4294901760, %v6902_v46  ;;  %v7732_v14 = vand.u32 4294901760, %v6904_v15 }
 0x1d4   : > { %7840 = vst [vmem:[#allocation20_spill] sm:$0xff] %v6926_v0  ;;  %7841 = vst [vmem:[#allocation22_spill] sm:$0xff] %v6930_v56  ;;  %v1382_v6 = vrot.slane %v1375_v43, %v5919_v58  ;;  %4714 = vmatpush1.bf16.msra.mxu0 %v6926_v0  ;;  %v1654_v31 = vsub.f32 %v6900_v18, %v7731_v61  ;;  %v6947_v59 = vsub.f32 %v1496_v30, %v1536_v60 }
 0x1d5   : > { %v1386_v55 = vmul.f32 %v1371_v23, %v6697_v51  ;;  %v1387_v3 = vmul.f32 %v1372_v16, %v6700_v29  ;;  %4762 = vmatpush1.bf16.msra.mxu1 %v6930_v56  ;;  %v6953_v62 = vsub.f32 %v1498_v37, %v2252_v40  ;;  %v2370_v60 = vsub.f32 %v6902_v46, %v7730_v47 }
 0x1d6   : > { %v1384_v36 = vmul.f32 %v1382_v6, %v7842_v25  ;;  %v1385_v38 = vmul.f32 %v1382_v6, %v7843_v4  ;;  %v1655_v42 = vand.u32 4294901760, %v1654_v31  ;;  %v1665_v30 = vand.u32 4294901760, %v6947_v59 }
 0x1d7   : > { %v2381_v27 = vand.u32 4294901760, %v6953_v62  ;;  %v1660_v37 = vsub.f32 %v6904_v15, %v7732_v14  ;;  %v7743_v40 = vand.u32 4294901760, %v6928_v52  ;;  %v7742_v6 = vand.u32 4294901760, %v6906_v28 }
 0x1d8   : > { %v1388_v32 = vmul.f32 %v1384_v36, %v6708_v1  ;;  %v1389_v23 = vmul.f32 %v1385_v38, %v6711_v9  ;;  %v1343_v16 = vpop.permute.xlu1 %1342  ;;  %v1666_v43 = vsub.f32 %v6947_v59, %v1665_v30  ;;  %v2371_v25 = vand.u32 4294901760, %v2370_v60 }
 0x1d9   : > { %v1350_v31 = vrot.slane %v1343_v16, %v5919_v58  ;;  %v2382_v4 = vsub.f32 %v6953_v62, %v2381_v27  ;;  %v1661_v47 = vand.u32 4294901760, %v1660_v37  ;;  %v1672_v36 = vsub.f32 %v6928_v52, %v7743_v40 }
 0x1da   : > { %v1390_v61 = vsub.f32 %v1386_v55, %v1388_v32  ;;  %v1391_v33 = vsub.f32 %v1387_v3, %v1389_v23  ;;  %v1667_v14 = vand.u32 4294901760, %v1666_v43  ;;  %v2376_v16 = vsub.f32 %v6906_v28, %v7742_v6 }
 0x1db   : > { %v1352_v38 = vmul.f32 %v1350_v31, %v6490_v5  ;;  %v1353_v35 = vmul.f32 %v1350_v31, %v6496_v53  ;;  %v2383_v56 = vand.u32 4294901760, %v2382_v4  ;;  %v1673_v55 = vand.u32 4294901760, %v1672_v36 }
 0x1dc   : > { %v1476_v60 = vcombine.high %v1390_v61, %v1390_v61  ;;  %v1477_v0 = vcombine.high %v1391_v33, %v1391_v33  ;;  %v6981_v39 = vpack.c.bf16 %v1667_v14, %v1655_v42  ;;  %v2377_v5 = vand.u32 4294901760, %v2376_v16 }
 0x1dd   : > { %v1356_v3 = vmul.f32 %v1352_v38, %v6697_v51  ;;  %v1357_v37 = vmul.f32 %v1353_v35, %v6700_v29  ;;  %v1394_v32 = vpop.permute.xlu1 %1393  ;;  %v6985_v23 = vpack.c.bf16 %v2383_v56, %v2371_v25  ;;  %v6988_v43 = vpack.c.bf16 %v1673_v55, %v1661_v47 }
 0x1de   : > { %v1401_v53 = vrot.slane %v1394_v32, %v5919_v58  ;;  %v7741_v31 = vand.u32 4294901760, %v6932_v19  ;;  %v6993_v4 = vpack.c.bf16 %v6947_v59, %v6900_v18  ;;  %v6999_v29 = vpack.c.bf16 %v6953_v62, %v6902_v46 }
 0x1df   : > { %v1358_v14 = vsub.f32 %v6870_v11, %v1356_v3  ;;  %v1359_v51 = vsub.f32 %v6873_v20, %v1357_v37  ;;  %v7003_v56 = vpack.c.bf16 %v6928_v52, %v6904_v15  ;;  %v7012_v11 = vpack.c.bf16 %v6932_v19, %v6906_v28 }
 0x1e0   : > { %v1403_v58 = vmul.f32 %v1401_v53, %v6323_v10  ;;  %v1404_v35 = vmul.f32 %v1401_v53, %v6327_v13  ;;  %v2388_v59 = vsub.f32 %v6932_v19, %v7741_v31  ;;  %v7844_v62 = vcombine.high %v6916_v57, %v6916_v57  ;;  %v7849_v31 = vld [vmem:[#allocation28_spill] sm:$0xff] }
 0x1e1   : > { %v1470_v20 = vcombine.low %v1358_v14, %v1358_v14  ;;  %v1471_v47 = vcombine.low %v1359_v51, %v1359_v51  ;;  %v7845_v10 = vcombine.high %v6918_v34, %v6918_v34  ;;  %v7846_v32 = vand.u32 4294901760, %v6900_v18 }
 0x1e2   : > { %v1500_v42 = vsel %vm1490_vm3, %v7844_v62, %v1358_v14  ;;  %v1418_v38 = vmul.f32 %v1403_v58, %v6708_v1  ;;  %v1419_v16 = vmul.f32 %v1404_v35, %v6711_v9  ;;  %v2389_v37 = vand.u32 4294901760, %v2388_v59 }
 0x1e3   : > { %v1502_v13 = vsel %vm1490_vm3, %v7845_v10, %v1359_v51  ;;  %v1540_v25 = vand.u32 4294901760, %v1500_v42  ;;  %v1499_v55 = vsel %vm1490_vm3, %v6916_v57, %v1470_v20  ;;  %v1501_v3 = vsel %vm1490_vm3, %v6918_v34, %v1471_v47 }
 0x1e4   : > { %v2256_v36 = vand.u32 4294901760, %v1502_v13  ;;  %v7030_v53 = vpack.c.bf16 %v1665_v30, %v7846_v32  ;;  %v1542_v14 = vand.u32 4294901760, %v1499_v55  ;;  %v2258_v62 = vand.u32 4294901760, %v1501_v3 }
 0x1e5   : > { %v1422_v51 = vsub.f32 %v1418_v38, %v6883_v41  ;;  %v1423_v10 = vsub.f32 %v1419_v16, %v6894_v26  ;;  %v7034_v1 = vpack.c.bf16 %v2389_v37, %v2377_v5  ;;  %v7036_v9 = vsub.f32 %v1500_v42, %v1540_v25 }
 0x1e6   : > { %v7038_v58 = vsub.f32 %v1502_v13, %v2256_v36  ;;  %v7847_v57 = vand.u32 4294901760, %v6902_v46  ;;  %v7044_v35 = vsub.f32 %v1499_v55, %v1542_v14  ;;  %v7046_v18 = vsub.f32 %v1501_v3, %v2258_v62 }
 0x1e7   : > { %v1482_v30 = vcombine.low %v1422_v51, %v1422_v51  ;;  %v1483_v59 = vcombine.low %v1423_v10, %v1423_v10  ;;  %v1504_v41 = vsel %vm1490_vm3, %v1476_v60, %v1422_v51  ;;  %v1506_v26 = vsel %vm1490_vm3, %v1477_v0, %v1423_v10 }
 0x1e8   : > { %v7042_v34 = vpack.c.bf16 %v2381_v27, %v7847_v57  ;;  %v7740_v5 = vand.u32 4294901760, %v7036_v9  ;;  %v7739_v20 = vand.u32 4294901760, %v7038_v58  ;;  %v1544_v27 = vand.u32 4294901760, %v1504_v41 }
 0x1e9   : > { %v1503_v47 = vsel %vm1490_vm3, %v1390_v61, %v1482_v30  ;;  %v1505_v46 = vsel %vm1490_vm3, %v1391_v33, %v1483_v59  ;;  %v2260_v42 = vand.u32 4294901760, %v1506_v26 }
 0x1ea   : > { %7848 = vst [vmem:[#allocation23_spill] sm:$0xff] %v7042_v34  ;;  %v1546_v13 = vand.u32 4294901760, %v1503_v47  ;;  %v2262_v38 = vand.u32 4294901760, %v1505_v46  ;;  %v1678_v16 = vsub.f32 %v7036_v9, %v7740_v5  ;;  %v2394_v0 = vsub.f32 %v7038_v58, %v7739_v20 }
 0x1eb   : > { %v7060_v60 = vpack.c.bf16 %v1544_v27, %v1540_v25  ;;  %v7062_v55 = vpack.c.bf16 %v2260_v42, %v2256_v36  ;;  %v1688_v3 = vsub.f32 %v1504_v41, %v1544_v27  ;;  %v2404_v61 = vsub.f32 %v1506_v26, %v2260_v42 }
 0x1ec   : > { %v7064_v37 = vpack.c.bf16 %v1546_v13, %v1542_v14  ;;  %v1694_v33 = vsub.f32 %v1503_v47, %v1546_v13  ;;  %v7066_v32 = vpack.c.bf16 %v2262_v38, %v2258_v62  ;;  %v2410_v51 = vsub.f32 %v1505_v46, %v2262_v38 }
 0x1ed   : > { %4716 = vmatprep.subr.bf16.mxu0 %v7060_v60  ;;  %4764 = vmatprep.subr.bf16.mxu1 %v7062_v55  ;;  %v1679_v10 = vand.u32 4294901760, %v1678_v16  ;;  %v1689_v57 = vand.u32 4294901760, %v1688_v3  ;;  %v2405_v30 = vand.u32 4294901760, %v2404_v61  ;;  %v7072_v25 = vsub.f32 %v6839_v45, %v6860_v21 }
 0x1ee   : > { %4718 = vmatpush1.bf16.msra.mxu0 %v7064_v37  ;;  %4766 = vmatpush1.bf16.msra.mxu1 %v7066_v32  ;;  %v1683_v36 = vand.u32 4294901760, %v7044_v35  ;;  %v1695_v14 = vand.u32 4294901760, %v1694_v33  ;;  %v2399_v62 = vand.u32 4294901760, %v7046_v18  ;;  %v2411_v59 = vand.u32 4294901760, %v2410_v51 }
 0x1ef   : > { %1549 = vmatprep.subr.mxu0 %v6758_v63  ;;  %2265 = vmatprep.subr.mxu1 %v6760_v54  ;;  %v1690_v41 = vsub.f32 %v1688_v3, %v1689_v57  ;;  %v2395_v26 = vand.u32 4294901760, %v2394_v0  ;;  %v2406_v47 = vsub.f32 %v2404_v61, %v2405_v30  ;;  %v7081_v45 = vpack.c.bf16 %v1688_v3, %v7036_v9  ;;  %v7850_v0 = vld [vmem:[#allocation29_spill] sm:$0xff] }
 0x1f0   : > { %v1684_v46 = vsub.f32 %v7044_v35, %v1683_v36  ;;  %v1696_v27 = vsub.f32 %v1694_v33, %v1695_v14  ;;  %v2400_v42 = vsub.f32 %v7046_v18, %v2399_v62  ;;  %v2412_v13 = vsub.f32 %v2410_v51, %v2411_v59 }
 0x1f1   : > { %v1691_v38 = vand.u32 4294901760, %v1690_v41  ;;  %v2407_v16 = vand.u32 4294901760, %v2406_v47  ;;  %v7086_v20 = vpack.c.bf16 %v2404_v61, %v7038_v58  ;;  %v7089_v5 = vpack.c.bf16 %v1694_v33, %v7044_v35 }
 0x1f2   : > { %1551 = vmatpush1.msra.mxu0 %v7849_v31  ;;  %2267 = vmatpush1.msra.mxu1 %v7850_v0  ;;  %v1685_v3 = vand.u32 4294901760, %v1684_v46  ;;  %v1697_v6 = vand.u32 4294901760, %v1696_v27  ;;  %v2401_v40 = vand.u32 4294901760, %v2400_v42  ;;  %v2413_v34 = vand.u32 4294901760, %v2412_v13 }
 0x1f3   : > { %1612 = vmatmul.mubr.f32.vlgmr.msra.gmra.mrb[0].mxu0 %v6841_v17  ;;  %4720 = vmatprep.subr.bf16.mxu0 %v6981_v39  ;;  %v7095_v41 = vpack.c.bf16 %v1691_v38, %v1679_v10  ;;  %v7097_v47 = vpack.c.bf16 %v2407_v16, %v2395_v26  ;;  %v7851_v35 = vsub.f32 %v6780_v44, %v6813_v7  ;;  %v7112_v10 = vand.u32 4294901760, %v7072_v25 }
 0x1f4   : > { %v7103_v33 = vpack.c.bf16 %v2410_v51, %v7046_v18  ;;  %2328 = vmatmul.mubr.f32.vlgmr.msra.gmra.mrb[0].mxu1 %v6841_v17  ;;  %4768 = vmatprep.subr.bf16.mxu1 %v6985_v23  ;;  %v7107_v46 = vpack.c.bf16 %v1697_v6, %v1685_v3  ;;  %v7109_v27 = vpack.c.bf16 %v2413_v34, %v2401_v40  ;;  %v7852_v26 = vand.u32 4294901760, %v6904_v15  ;;  %v7864_v3 = vld [vmem:[#allocation32_spill] sm:$0xff] }
 0x1f5   : > { %v1622_v61 = vand.u32 4294901760, %v7851_v35  ;;  %v7853_v42 = vand.u32 4294901760, %v6928_v52  ;;  %4722 = vmatpush1.bf16.msra.mxu0 %v6988_v43  ;;  %4770 = vmatpush1.bf16.msra.mxu1 %v7034_v1  ;;  %v7854_v17 = vand.u32 4294901760, %v6906_v28  ;;  %v7855_v6 = vand.u32 4294901760, %v6932_v19  ;;  %v7865_v35 = vld [vmem:[#allocation34_spill] sm:$0xff] }
 0x1f6   : > { %v7856_v40 = vand.u32 4294901760, %v7036_v9  ;;  %v7857_v15 = vand.u32 4294901760, %v7038_v58  ;;  %4724 = vmatprep.subr.bf16.mxu0 %v7095_v41  ;;  %4772 = vmatprep.subr.bf16.mxu1 %v7097_v47  ;;  %v7138_v52 = vpack.c.bf16 %v1695_v14, %v1683_v36  ;;  %v7140_v38 = vpack.c.bf16 %v2411_v59, %v2399_v62  ;;  %v7862_v62 = vld [vmem:[#allocation33_spill] sm:$0xff] }
 0x1f7   : > { %v7118_v13 = vpack.c.bf16 %v7853_v42, %v7852_v26  ;;  %v7126_v18 = vpack.c.bf16 %v7855_v6, %v7854_v17  ;;  %v7858_v28 = vmov 0.0   ;;  %v7859_v19 = vsub.f32 %v6783_v48, %v6816_v22  ;;  %v7867_v17 = vld [vmem:[#allocation21_spill] sm:$0xff]  ;;  %v7868_v6 = vld [vmem:[#allocation27_spill] sm:$0xff] }
 0x1f8   : > { %v7130_v34 = vpack.c.bf16 %v1689_v57, %v7856_v40  ;;  %v7134_v51 = vpack.c.bf16 %v2405_v30, %v7857_v15  ;;  %1617 = vmatprep.mubr.f32.mxu0 %v7858_v28  ;;  %2333 = vmatprep.mubr.f32.mxu1 %v7858_v28  ;;  %v7860_v58 = vsub.f32 %v6786_v2, %v6819_v12  ;;  %v7869_v40 = vld [vmem:[#allocation30_spill] sm:$0xff]  ;;  %v7870_v15 = vld [vmem:[#allocation19_spill] sm:$0xff] }
 0x1f9   : > { %v7147_v9 = vand.u32 4294901760, %v7859_v19  ;;  %1623 = vmatmul.mubr.f32.gmra.mrb[2].mxu0 %v1622_v61  ;;  %2339 = vmatmul.mubr.f32.gmra.mrb[2].mxu1 %v1622_v61  ;;  %v7861_v30 = vsub.f32 %v6804_v49, %v6833_v50  ;;  %v1643_v14 = vsub.f32 %v7072_v25, %v7112_v10  ;;  %v7863_v59 = vsub.f32 %v6789_v24, %v7862_v62  ;;  %v7871_v19 = vld [vmem:[#allocation26_spill] sm:$0xff] }
 0x1fa   : > { %v7152_v57 = vand.u32 4294901760, %v7860_v58  ;;  %4726 = vmatpush1.bf16.msra.mxu0 %v7107_v46  ;;  %4774 = vmatpush1.bf16.msra.mxu1 %v7109_v27  ;;  %v7866_v26 = vsub.f32 %v7864_v3, %v7865_v35  ;;  %v7872_v58 = vld [vmem:[#allocation20_spill] sm:$0xff] }
 0x1fb   : > { %v1633_v36 = vand.u32 4294901760, %v7861_v30  ;;  %v7164_v16 = vand.u32 4294901760, %v7863_v59  ;;  %1628 = vmatprep.mubr.f32.mxu0 %v7858_v28  ;;  %2344 = vmatprep.mubr.f32.mxu1 %v7858_v28  ;;  %v1644_v42 = vand.u32 4294901760, %v1643_v14  ;;  %v7873_v30 = vld [vmem:[#allocation22_spill] sm:$0xff]  ;;  %v2998_v14 = vld [vmem:[#allocation8 + $0x10] sm:$0xff] }
 0x1fc   : > { %v7169_v61 = vand.u32 4294901760, %v7866_v26  ;;  %1704 = vmatprep.subr.mxu0 %v7147_v9  ;;  %2420 = vmatprep.subr.mxu1 %v7152_v57 }
 0x1fd   : > { %1634 = vmatmul.mubr.f32.gmra.mrb[4].mxu0 %v1633_v36  ;;  %2350 = vmatmul.mubr.f32.gmra.mrb[4].mxu1 %v1633_v36 }
 0x1fe   : > { %1710 = vmatpush1.msra.mxu0 %v7164_v16  ;;  %2426 = vmatpush1.msra.mxu1 %v7169_v61 }
 0x1ff   : > { %4728 = vmatprep.subr.bf16.mxu0 %v6993_v4  ;;  %4776 = vmatprep.subr.bf16.mxu1 %v6999_v29 }
 0x200   : > { %1639 = vmatprep.mubr.f32.mxu0 %v7858_v28  ;;  %2355 = vmatprep.mubr.f32.mxu1 %v7858_v28 }
 0x201   : > { %1645 = vmatmul.mubr.f32.gmra.mrb[6].mxu0 %v1644_v42  ;;  %2361 = vmatmul.mubr.f32.gmra.mrb[6].mxu1 %v1644_v42  ;;  %v3007_v42 = vsel %vm1511_vm13, %v2998_v14, 0 }
 0x202   : > { %1765 = vmatprep.mubr.f32.mxu0 %v7858_v28  ;;  %2481 = vmatprep.mubr.f32.mxu1 %v7858_v28 }
 0x205   : > { %1767 = vmatmul.mubr.f32.vlgmr.msra.gmra.mrb[0].mxu0 %v7867_v17  ;;  %2483 = vmatmul.mubr.f32.vlgmr.msra.gmra.mrb[0].mxu1 %v7867_v17 }
 0x206   : > { %4730 = vmatpush1.bf16.msra.mxu0 %v7003_v56  ;;  %4778 = vmatpush1.bf16.msra.mxu1 %v7012_v11 }
 0x207   : > { %4732 = vmatprep.subr.bf16.mxu0 %v7081_v45  ;;  %4780 = vmatprep.subr.bf16.mxu1 %v7086_v20 }
 0x208   : > { %1772 = vmatprep.mubr.f32.mxu0 %v7858_v28  ;;  %2488 = vmatprep.mubr.f32.mxu1 %v7858_v28 }
 0x209   : > { %1774 = vmatmul.mubr.f32.gmra.mrb[2].mxu0 %v7868_v6  ;;  %2490 = vmatmul.mubr.f32.gmra.mrb[2].mxu1 %v7868_v6 }
 0x20a   : > { %4734 = vmatpush1.bf16.msra.mxu0 %v7089_v5  ;;  %4782 = vmatpush1.bf16.msra.mxu1 %v7103_v33 }
 0x20b   : > { %1779 = vmatprep.mubr.f32.mxu0 %v7858_v28  ;;  %1820 = vmatprep.subr.mxu0 %v6783_v48 }
 0x20c   : > { %2495 = vmatprep.mubr.f32.mxu1 %v7858_v28  ;;  %2536 = vmatprep.subr.mxu1 %v6786_v2 }
 0x20d   : > { %1781 = vmatmul.mubr.f32.gmra.mrb[4].mxu0 %v7869_v40  ;;  %2497 = vmatmul.mubr.f32.gmra.mrb[4].mxu1 %v7869_v40 }
 0x20e   : > { %1823 = vmatpush1.msra.mxu0 %v6789_v24  ;;  %2539 = vmatpush1.msra.mxu1 %v7864_v3 }
 0x20f   : > { %4736 = vmatprep.subr.bf16.mxu0 %v6920_v8  ;;  %4784 = vmatprep.subr.bf16.mxu1 %v7870_v15 }
 0x210   : > { %1786 = vmatprep.mubr.f32.mxu0 %v7858_v28  ;;  %2502 = vmatprep.mubr.f32.mxu1 %v7858_v28 }
 0x211   : > { %1788 = vmatmul.mubr.f32.gmra.mrb[6].mxu0 %v6860_v21  ;;  %2504 = vmatmul.mubr.f32.gmra.mrb[6].mxu1 %v6860_v21 }
 0x212   : > { %1878 = vmatprep.mubr.f32.mxu0 %v7858_v28  ;;  %2594 = vmatprep.mubr.f32.mxu1 %v7858_v28 }
 0x215   : > { %1881 = vmatmul.mubr.f32.vlgmr.msra.gmra.mrb[0].mxu0 %v7871_v19  ;;  %2597 = vmatmul.mubr.f32.vlgmr.msra.gmra.mrb[0].mxu1 %v7871_v19  ;;  %v2999_v19 = vld [vmem:[#allocation8 + $0x18] sm:$0xff] }
 0x216   : > { %4738 = vmatpush1.bf16.msra.mxu0 %v7872_v58  ;;  %4786 = vmatpush1.bf16.msra.mxu1 %v7873_v30 }
 0x217   : > { %4740 = vmatprep.subr.bf16.mxu0 %v7060_v60  ;;  %4788 = vmatprep.subr.bf16.mxu1 %v7062_v55 }
 0x218   : > { %1886 = vmatprep.mubr.f32.mxu0 %v7858_v28  ;;  %2602 = vmatprep.mubr.f32.mxu1 %v7858_v28 }
 0x219   : > { %1889 = vmatmul.mubr.f32.gmra.mrb[2].mxu0 %v6780_v44  ;;  %2605 = vmatmul.mubr.f32.gmra.mrb[2].mxu1 %v6780_v44  ;;  %v7874_v44 = vld [vmem:[#allocation23_spill] sm:$0xff] }
 0x21a   : > { %4742 = vmatpush1.bf16.msra.mxu0 %v7064_v37  ;;  %4790 = vmatpush1.bf16.msra.mxu1 %v7066_v32 }
 0x21b   : > { %1894 = vmatprep.mubr.f32.mxu0 %v7858_v28  ;;  %1928 = vmatprep.subr.mxu0 %v6758_v63 }
 0x21c   : > { %2610 = vmatprep.mubr.f32.mxu1 %v7858_v28  ;;  %2644 = vmatprep.subr.mxu1 %v6760_v54 }
 0x21d   : > { %1897 = vmatmul.mubr.f32.gmra.mrb[4].mxu0 %v6804_v49  ;;  %2613 = vmatmul.mubr.f32.gmra.mrb[4].mxu1 %v6804_v49  ;;  %v7875_v49 = vld [vmem:[#allocation31_spill] sm:$0xff] }
 0x21e   : > { %1930 = vmatpush1.msra.mxu0 %v7849_v31  ;;  %2646 = vmatpush1.msra.mxu1 %v7850_v0 }
 0x21f   : > { %4744 = vmatprep.subr.bf16.mxu0 %v7030_v53  ;;  %4792 = vmatprep.subr.bf16.mxu1 %v7874_v44 }
 0x220   : > { %1902 = vmatprep.mubr.f32.mxu0 %v7858_v28  ;;  %2618 = vmatprep.mubr.f32.mxu1 %v7858_v28 }
 0x221   : > { %1905 = vmatmul.mubr.f32.gmra.mrb[6].mxu0 %v7072_v25  ;;  %2621 = vmatmul.mubr.f32.gmra.mrb[6].mxu1 %v7072_v25  ;;  %v2997_v25 = vld [vmem:[#allocation8 + $0x8] sm:$0xff] }
 0x222   : > { %1985 = vmatprep.mubr.f32.mxu0 %v7858_v28  ;;  %2701 = vmatprep.mubr.f32.mxu1 %v7858_v28  ;;  %v3004_v36 = vsel %vm1511_vm13, %v2997_v25, 0 }
 0x223   : > { %v7304_v26 = vand.u32 4294901760, %v3004_v36 }
 0x225   : > { %1989 = vmatmul.mubr.f32.vlgmr.msra.gmra.mrb[0].mxu0 %v7875_v49  ;;  %2705 = vmatmul.mubr.f32.vlgmr.msra.gmra.mrb[0].mxu1 %v7875_v49  ;;  %v7319_v49 = vsub.f32 %v3004_v36, %v7304_v26 }
 0x226   : > { %4746 = vmatpush1.bf16.msra.mxu0 %v7118_v13  ;;  %4794 = vmatpush1.bf16.msra.mxu1 %v7126_v18 }
 0x227   : > { %4748 = vmatprep.subr.bf16.mxu0 %v7130_v34  ;;  %4796 = vmatprep.subr.bf16.mxu1 %v7134_v51  ;;  %v7335_v25 = vand.u32 4294901760, %v7319_v49 }
 0x228   : > { %1994 = vmatprep.mubr.f32.mxu0 %v7858_v28  ;;  %2710 = vmatprep.mubr.f32.mxu1 %v7858_v28 }
 0x229   : > { %1998 = vmatmul.mubr.f32.gmra.mrb[2].mxu0 %v6813_v7  ;;  %2714 = vmatmul.mubr.f32.gmra.mrb[2].mxu1 %v6813_v7  ;;  %v2996_v7 = vld [vmem:[#allocation8] sm:$0xff] }
 0x22a   : > { %4750 = vmatpush1.bf16.msra.mxu0 %v7138_v52  ;;  %4798 = vmatpush1.bf16.msra.mxu1 %v7140_v38 }
 0x22b   : > { %2003 = vmatprep.mubr.f32.mxu0 %v7858_v28  ;;  %2057 = vmatprep.subr.mxu0 %v6816_v22 }
 0x22c   : > { %2719 = vmatprep.mubr.f32.mxu1 %v7858_v28  ;;  %2773 = vmatprep.subr.mxu1 %v6819_v12 }
 0x22d   : > { %2007 = vmatmul.mubr.f32.gmra.mrb[4].mxu0 %v6833_v50  ;;  %2723 = vmatmul.mubr.f32.gmra.mrb[4].mxu1 %v6833_v50  ;;  %v3001_v50 = vsel %vm1511_vm13, %v2996_v7, 0  ;;  %v7321_v7 = vand.u32 4294901760, %v3007_v42 }
 0x22e   : > { %2061 = vmatpush1.msra.mxu0 %v7862_v62  ;;  %2777 = vmatpush1.msra.mxu1 %v7865_v35 }
 0x22f   : > { %4752 = vmatprep.subr.bf16.mxu0 %v6920_v8  ;;  %4800 = vmatprep.subr.bf16.mxu1 %v7870_v15  ;;  %v7338_v36 = vsub.f32 %v3007_v42, %v7321_v7  ;;  %v3101_v42 = vsub.f32 %v7319_v49, %v7335_v25 }
 0x230   : > { %2012 = vmatprep.mubr.f32.mxu0 %v7858_v28  ;;  %2728 = vmatprep.mubr.f32.mxu1 %v7858_v28 }
 0x231   : > { %2016 = vmatmul.mubr.f32.gmra.mrb[6].mxu0 %v7112_v10  ;;  %2732 = vmatmul.mubr.f32.gmra.mrb[6].mxu1 %v7112_v10  ;;  %v7294_v10 = vand.u32 4294901760, %v3001_v50 }
 0x232   : > { %2116 = vmatprep.mubr.f32.mxu0 %v7858_v28  ;;  %2832 = vmatprep.mubr.f32.mxu1 %v7858_v28 }
 0x233   : > { %v7302_v59 = vsub.f32 %v3001_v50, %v7294_v10  ;;  %v3010_v50 = vsel %vm1511_vm13, %v2999_v19, 0  ;;  %v7353_v19 = vand.u32 4294901760, %v7338_v36 }
 0x234   : > { %v7340_v14 = vand.u32 4294901760, %v3010_v50 }
 0x235   : > { %2118 = vmatmul.mubr.f32.vlgmr.msra.gmra.mrb[0].mxu0 %v7867_v17  ;;  %2834 = vmatmul.mubr.f32.vlgmr.msra.gmra.mrb[0].mxu1 %v7867_v17 }
 0x236   : > { %4754 = vmatpush1.bf16.msra.mxu0 %v7872_v58  ;;  %4802 = vmatpush1.bf16.msra.mxu1 %v7873_v30  ;;  %v7356_v35 = vsub.f32 %v3010_v50, %v7340_v14 }
 0x237   : > { %4756 = vmatprep.subr.bf16.mxu0 %v7060_v60  ;;  %4804 = vmatprep.subr.bf16.mxu1 %v7062_v55 }
 0x238   : > { %2123 = vmatprep.mubr.f32.mxu0 %v7858_v28  ;;  %2839 = vmatprep.mubr.f32.mxu1 %v7858_v28 }
 0x239   : > { %2125 = vmatmul.mubr.f32.gmra.mrb[2].mxu0 %v7868_v6  ;;  %2841 = vmatmul.mubr.f32.gmra.mrb[2].mxu1 %v7868_v6 }
 0x23a   : > { %4758 = vmatpush1.bf16.msra.mxu0 %v7064_v37  ;;  %4806 = vmatpush1.bf16.msra.mxu1 %v7066_v32 }
 0x23b   : > { %2130 = vmatprep.mubr.f32.mxu0 %v7858_v28  ;;  %2162 = vmatprep.subr.mxu0 %v6758_v63 }
 0x23c   : > { %2846 = vmatprep.mubr.f32.mxu1 %v7858_v28  ;;  %2878 = vmatprep.subr.mxu1 %v6760_v54 }
 0x23d   : > { %2132 = vmatmul.mubr.f32.gmra.mrb[4].mxu0 %v7869_v40  ;;  %2848 = vmatmul.mubr.f32.gmra.mrb[4].mxu1 %v7869_v40 }
 0x23e   : > { %2164 = vmatpush1.msra.mxu0 %v7849_v31  ;;  %2880 = vmatpush1.msra.mxu1 %v7850_v0 }
 0x23f   : > { %4808 = vmatprep.subr.bf16.mxu0 %v6920_v8  ;;  %4856 = vmatprep.subr.bf16.mxu1 %v7870_v15 }
 0x240   : > { %2137 = vmatprep.mubr.f32.mxu0 %v7858_v28  ;;  %2853 = vmatprep.mubr.f32.mxu1 %v7858_v28 }
 0x241   : > { %2139 = vmatmul.mubr.f32.gmra.mrb[6].mxu0 %v6860_v21  ;;  %2855 = vmatmul.mubr.f32.gmra.mrb[6].mxu1 %v6860_v21 }
 0x242   : > { %2219 = vmatprep.mubr.f32.mxu0 %v7858_v28  ;;  %2935 = vmatprep.mubr.f32.mxu1 %v7858_v28 }
 0x245   : > { %2221 = vmatmul.mubr.f32.vlgmr.msra.gmra.mrb[0].mxu0 %v7867_v17  ;;  %2937 = vmatmul.mubr.f32.vlgmr.msra.gmra.mrb[0].mxu1 %v7867_v17  ;;  %v7316_v17 = vand.u32 4294901760, %v7302_v59 }
 0x246   : > { %4810 = vmatpush1.bf16.msra.mxu0 %v7872_v58  ;;  %4858 = vmatpush1.bf16.msra.mxu1 %v7873_v30 }
 0x247   : > { %4812 = vmatprep.subr.bf16.mxu0 %v7060_v60  ;;  %4860 = vmatprep.subr.bf16.mxu1 %v7062_v55 }
 0x248   : > { %2226 = vmatprep.mubr.f32.mxu0 %v7858_v28  ;;  %2942 = vmatprep.mubr.f32.mxu1 %v7858_v28 }
 0x249   : > { %2228 = vmatmul.mubr.f32.gmra.mrb[2].mxu0 %v7868_v6  ;;  %2944 = vmatmul.mubr.f32.gmra.mrb[2].mxu1 %v7868_v6  ;;  %v3090_v6 = vsub.f32 %v7302_v59, %v7316_v17 }
 0x24a   : > { %4814 = vmatpush1.bf16.msra.mxu0 %v7064_v37  ;;  %4862 = vmatpush1.bf16.msra.mxu1 %v7066_v32 }
 0x24b   : > { %2233 = vmatprep.mubr.f32.mxu0 %v7858_v28  ;;  %2949 = vmatprep.mubr.f32.mxu1 %v7858_v28 }
 0x24c   : > { %3029 = vmatprep.subr.mxu0 %v6758_v63  ;;  %3745 = vmatprep.subr.mxu1 %v6760_v54 }
 0x24d   : > { %2235 = vmatmul.mubr.f32.gmra.mrb[4].mxu0 %v7869_v40  ;;  %2951 = vmatmul.mubr.f32.gmra.mrb[4].mxu1 %v7869_v40  ;;  %v3091_v40 = vand.u32 4294901760, %v3090_v6 }
 0x24e   : > { %3031 = vmatpush1.msra.mxu0 %v7849_v31  ;;  %3747 = vmatpush1.msra.mxu1 %v7850_v0 }
 0x24f   : > { %4816 = vmatprep.subr.bf16.mxu0 %v6981_v39  ;;  %4864 = vmatprep.subr.bf16.mxu1 %v6985_v23  ;;  %v3102_v39 = vand.u32 4294901760, %v3101_v42  ;;  %v7363_v23 = vand.u32 4294901760, %v7356_v35 }
 0x250   : > { %2240 = vmatprep.mubr.f32.mxu0 %v7858_v28  ;;  %2956 = vmatprep.mubr.f32.mxu1 %v7858_v28 }
 0x251   : > { %2242 = vmatmul.mubr.f32.gmra.mrb[6].mxu0 %v6860_v21  ;;  %2958 = vmatmul.mubr.f32.gmra.mrb[6].mxu1 %v6860_v21  ;;  %v3112_v21 = vsub.f32 %v7338_v36, %v7353_v19  ;;  %v3123_v6 = vsub.f32 %v7356_v35, %v7363_v23 }
 0x252   : > { %3086 = vmatprep.mubr.f32.mxu0 %v7858_v28  ;;  %3802 = vmatprep.mubr.f32.mxu1 %v7858_v28 }
 0x253   : > { %v3113_v50 = vand.u32 4294901760, %v3112_v21 }
 0x255   : > { %3092 = vmatmul.mubr.f32.vlgmr.msra.gmra.mrb[8].mxu0 %v3091_v40  ;;  %3808 = vmatmul.mubr.f32.vlgmr.msra.gmra.mrb[8].mxu1 %v3091_v40 }
 0x256   : > { %4818 = vmatpush1.bf16.msra.mxu0 %v6988_v43  ;;  %4866 = vmatpush1.bf16.msra.mxu1 %v7034_v1  ;;  %v3124_v43 = vand.u32 4294901760, %v3123_v6 }
 0x257   : > { %4820 = vmatprep.subr.bf16.mxu0 %v7095_v41  ;;  %4868 = vmatprep.subr.bf16.mxu1 %v7097_v47 }
 0x258   : > { %3097 = vmatprep.mubr.f32.mxu0 %v7858_v28  ;;  %3813 = vmatprep.mubr.f32.mxu1 %v7858_v28 }
 0x259   : > { %3103 = vmatmul.mubr.f32.gmra.mrb[10].mxu0 %v3102_v39  ;;  %3819 = vmatmul.mubr.f32.gmra.mrb[10].mxu1 %v3102_v39 }
 0x25a   : > { %4822 = vmatpush1.bf16.msra.mxu0 %v7107_v46  ;;  %4870 = vmatpush1.bf16.msra.mxu1 %v7109_v27 }
 0x25b   : > { %3108 = vmatprep.mubr.f32.mxu0 %v7858_v28  ;;  %3184 = vmatprep.subr.mxu0 %v7147_v9 }
 0x25c   : > { %3824 = vmatprep.mubr.f32.mxu1 %v7858_v28  ;;  %3900 = vmatprep.subr.mxu1 %v7152_v57 }
 0x25d   : > { %3114 = vmatmul.mubr.f32.gmra.mrb[12].mxu0 %v3113_v50  ;;  %3830 = vmatmul.mubr.f32.gmra.mrb[12].mxu1 %v3113_v50 }
 0x25e   : > { %3190 = vmatpush1.msra.mxu0 %v7164_v16  ;;  %3906 = vmatpush1.msra.mxu1 %v7169_v61 }
 0x25f   : > { %4824 = vmatprep.subr.bf16.mxu0 %v6993_v4  ;;  %4872 = vmatprep.subr.bf16.mxu1 %v6999_v29 }
 0x260   : > { %3119 = vmatprep.mubr.f32.mxu0 %v7858_v28  ;;  %3835 = vmatprep.mubr.f32.mxu1 %v7858_v28 }
 0x261   : > { %3125 = vmatmul.mubr.f32.gmra.mrb[14].mxu0 %v3124_v43  ;;  %3841 = vmatmul.mubr.f32.gmra.mrb[14].mxu1 %v3124_v43 }
 0x262   : > { %3245 = vmatprep.mubr.f32.mxu0 %v7858_v28  ;;  %3961 = vmatprep.mubr.f32.mxu1 %v7858_v28 }
 0x265   : > { %3247 = vmatmul.mubr.f32.vlgmr.msra.gmra.mrb[8].mxu0 %v7294_v10  ;;  %3963 = vmatmul.mubr.f32.vlgmr.msra.gmra.mrb[8].mxu1 %v7294_v10 }
 0x266   : > { %4826 = vmatpush1.bf16.msra.mxu0 %v7003_v56  ;;  %4874 = vmatpush1.bf16.msra.mxu1 %v7012_v11 }
 0x267   : > { %4828 = vmatprep.subr.bf16.mxu0 %v7081_v45  ;;  %4876 = vmatprep.subr.bf16.mxu1 %v7086_v20 }
 0x268   : > { %3252 = vmatprep.mubr.f32.mxu0 %v7858_v28  ;;  %3968 = vmatprep.mubr.f32.mxu1 %v7858_v28 }
 0x269   : > { %3254 = vmatmul.mubr.f32.gmra.mrb[10].mxu0 %v7304_v26  ;;  %3970 = vmatmul.mubr.f32.gmra.mrb[10].mxu1 %v7304_v26 }
 0x26a   : > { %4830 = vmatpush1.bf16.msra.mxu0 %v7089_v5  ;;  %4878 = vmatpush1.bf16.msra.mxu1 %v7103_v33 }
 0x26b   : > { %3259 = vmatprep.mubr.f32.mxu0 %v7858_v28  ;;  %3300 = vmatprep.subr.mxu0 %v6783_v48  ;;  %v7876_v48 = vld [vmem:[#allocation34_spill] sm:$0xff] }
 0x26c   : > { %3975 = vmatprep.mubr.f32.mxu1 %v7858_v28  ;;  %4016 = vmatprep.subr.mxu1 %v6786_v2 }
 0x26d   : > { %3261 = vmatmul.mubr.f32.gmra.mrb[12].mxu0 %v7321_v7  ;;  %3977 = vmatmul.mubr.f32.gmra.mrb[12].mxu1 %v7321_v7 }
 0x26e   : > { %3303 = vmatpush1.msra.mxu0 %v6789_v24  ;;  %4019 = vmatpush1.msra.mxu1 %v7864_v3 }
 0x26f   : > { %4832 = vmatprep.subr.bf16.mxu0 %v6920_v8  ;;  %4880 = vmatprep.subr.bf16.mxu1 %v7870_v15 }
 0x270   : > { %3266 = vmatprep.mubr.f32.mxu0 %v7858_v28  ;;  %3982 = vmatprep.mubr.f32.mxu1 %v7858_v28 }
 0x271   : > { %3268 = vmatmul.mubr.f32.gmra.mrb[14].mxu0 %v7340_v14  ;;  %3984 = vmatmul.mubr.f32.gmra.mrb[14].mxu1 %v7340_v14 }
 0x272   : > { %3358 = vmatprep.mubr.f32.mxu0 %v7858_v28  ;;  %4074 = vmatprep.mubr.f32.mxu1 %v7858_v28 }
 0x275   : > { %3361 = vmatmul.mubr.f32.vlgmr.msra.gmra.mrb[8].mxu0 %v7302_v59  ;;  %4077 = vmatmul.mubr.f32.vlgmr.msra.gmra.mrb[8].mxu1 %v7302_v59 }
 0x276   : > { %4834 = vmatpush1.bf16.msra.mxu0 %v7872_v58  ;;  %4882 = vmatpush1.bf16.msra.mxu1 %v7873_v30 }
 0x277   : > { %4836 = vmatprep.subr.bf16.mxu0 %v7060_v60  ;;  %4884 = vmatprep.subr.bf16.mxu1 %v7062_v55 }
 0x278   : > { %3366 = vmatprep.mubr.f32.mxu0 %v7858_v28  ;;  %4082 = vmatprep.mubr.f32.mxu1 %v7858_v28 }
 0x279   : > { %3369 = vmatmul.mubr.f32.gmra.mrb[10].mxu0 %v7319_v49  ;;  %4085 = vmatmul.mubr.f32.gmra.mrb[10].mxu1 %v7319_v49 }
 0x27a   : > { %4838 = vmatpush1.bf16.msra.mxu0 %v7064_v37  ;;  %4886 = vmatpush1.bf16.msra.mxu1 %v7066_v32 }
 0x27b   : > { %3374 = vmatprep.mubr.f32.mxu0 %v7858_v28  ;;  %3408 = vmatprep.subr.mxu0 %v6758_v63 }
 0x27c   : > { %4090 = vmatprep.mubr.f32.mxu1 %v7858_v28  ;;  %4124 = vmatprep.subr.mxu1 %v6760_v54 }
 0x27d   : > { %3377 = vmatmul.mubr.f32.gmra.mrb[12].mxu0 %v7338_v36  ;;  %4093 = vmatmul.mubr.f32.gmra.mrb[12].mxu1 %v7338_v36 }
 0x27e   : > { %3410 = vmatpush1.msra.mxu0 %v7849_v31  ;;  %4126 = vmatpush1.msra.mxu1 %v7850_v0 }
 0x27f   : > { %4840 = vmatprep.subr.bf16.mxu0 %v7030_v53  ;;  %4888 = vmatprep.subr.bf16.mxu1 %v7874_v44 }
 0x280   : > { %3382 = vmatprep.mubr.f32.mxu0 %v7858_v28  ;;  %4098 = vmatprep.mubr.f32.mxu1 %v7858_v28 }
 0x281   : > { %3385 = vmatmul.mubr.f32.gmra.mrb[14].mxu0 %v7356_v35  ;;  %4101 = vmatmul.mubr.f32.gmra.mrb[14].mxu1 %v7356_v35 }
 0x282   : > { %3465 = vmatprep.mubr.f32.mxu0 %v7858_v28  ;;  %4181 = vmatprep.mubr.f32.mxu1 %v7858_v28 }
 0x285   : > { %3469 = vmatmul.mubr.f32.vlgmr.msra.gmra.mrb[8].mxu0 %v7316_v17  ;;  %4185 = vmatmul.mubr.f32.vlgmr.msra.gmra.mrb[8].mxu1 %v7316_v17 }
 0x286   : > { %4842 = vmatpush1.bf16.msra.mxu0 %v7118_v13  ;;  %4890 = vmatpush1.bf16.msra.mxu1 %v7126_v18 }
 0x287   : > { %4844 = vmatprep.subr.bf16.mxu0 %v7130_v34  ;;  %4892 = vmatprep.subr.bf16.mxu1 %v7134_v51 }
 0x288   : > { %3474 = vmatprep.mubr.f32.mxu0 %v7858_v28  ;;  %4190 = vmatprep.mubr.f32.mxu1 %v7858_v28 }
 0x289   : > { %3478 = vmatmul.mubr.f32.gmra.mrb[10].mxu0 %v7335_v25  ;;  %4194 = vmatmul.mubr.f32.gmra.mrb[10].mxu1 %v7335_v25 }
 0x28a   : > { %4846 = vmatpush1.bf16.msra.mxu0 %v7138_v52  ;;  %4894 = vmatpush1.bf16.msra.mxu1 %v7140_v38 }
 0x28b   : > { %3483 = vmatprep.mubr.f32.mxu0 %v7858_v28  ;;  %3537 = vmatprep.subr.mxu0 %v6816_v22 }
 0x28c   : > { %4199 = vmatprep.mubr.f32.mxu1 %v7858_v28  ;;  %4253 = vmatprep.subr.mxu1 %v6819_v12 }
 0x28d   : > { %3487 = vmatmul.mubr.f32.gmra.mrb[12].mxu0 %v7353_v19  ;;  %4203 = vmatmul.mubr.f32.gmra.mrb[12].mxu1 %v7353_v19 }
 0x28e   : > { %3541 = vmatpush1.msra.mxu0 %v7862_v62  ;;  %4257 = vmatpush1.msra.mxu1 %v7876_v48 }
 0x28f   : > { %4848 = vmatprep.subr.bf16.mxu0 %v6920_v8  ;;  %4896 = vmatprep.subr.bf16.mxu1 %v7870_v15 }
 0x290   : > { %3492 = vmatprep.mubr.f32.mxu0 %v7858_v28  ;;  %4208 = vmatprep.mubr.f32.mxu1 %v7858_v28 }
 0x291   : > { %3496 = vmatmul.mubr.f32.gmra.mrb[14].mxu0 %v7363_v23  ;;  %4212 = vmatmul.mubr.f32.gmra.mrb[14].mxu1 %v7363_v23 }
 0x292   : > { %3596 = vmatprep.mubr.f32.mxu0 %v7858_v28  ;;  %4312 = vmatprep.mubr.f32.mxu1 %v7858_v28 }
 0x295   : > { %3598 = vmatmul.mubr.f32.vlgmr.msra.gmra.mrb[8].mxu0 %v7294_v10  ;;  %4314 = vmatmul.mubr.f32.vlgmr.msra.gmra.mrb[8].mxu1 %v7294_v10 }
 0x296   : > { %4850 = vmatpush1.bf16.msra.mxu0 %v7872_v58  ;;  %4898 = vmatpush1.bf16.msra.mxu1 %v7873_v30 }
 0x297   : > { %4852 = vmatprep.subr.bf16.mxu0 %v7060_v60  ;;  %4900 = vmatprep.subr.bf16.mxu1 %v7062_v55 }
 0x298   : > { %3603 = vmatprep.mubr.f32.mxu0 %v7858_v28  ;;  %4319 = vmatprep.mubr.f32.mxu1 %v7858_v28 }
 0x299   : > { %3605 = vmatmul.mubr.f32.gmra.mrb[10].mxu0 %v7304_v26  ;;  %4321 = vmatmul.mubr.f32.gmra.mrb[10].mxu1 %v7304_v26 }
 0x29a   : > { %4854 = vmatpush1.bf16.msra.mxu0 %v7064_v37  ;;  %4902 = vmatpush1.bf16.msra.mxu1 %v7066_v32 }
 0x29b   : > { %3610 = vmatprep.mubr.f32.mxu0 %v7858_v28  ;;  %4326 = vmatprep.mubr.f32.mxu1 %v7858_v28 }
 0x29c   : > { %3642 = vmatprep.subr.mxu0 %v6758_v63  ;;  %4358 = vmatprep.subr.mxu1 %v6760_v54 }
 0x29d   : > { %3612 = vmatmul.mubr.f32.gmra.mrb[12].mxu0 %v7321_v7  ;;  %4328 = vmatmul.mubr.f32.gmra.mrb[12].mxu1 %v7321_v7 }
 0x29e   : > { %3617 = vmatprep.mubr.f32.mxu0 %v7858_v28  ;;  %4333 = vmatprep.mubr.f32.mxu1 %v7858_v28 }
 0x29f   : > { %3644 = vmatpush1.msra.mxu0 %v7849_v31  ;;  %4360 = vmatpush1.msra.mxu1 %v7850_v0 }
 0x2a1   : > { %3619 = vmatmul.mubr.f32.gmra.mrb[14].mxu0 %v7340_v14  ;;  %4335 = vmatmul.mubr.f32.gmra.mrb[14].mxu1 %v7340_v14 }
 0x2a2   : > { %3699 = vmatprep.mubr.f32.mxu0 %v7858_v28  ;;  %4415 = vmatprep.mubr.f32.mxu1 %v7858_v28 }
 0x2a5   : > { %3701 = vmatmul.mubr.f32.vlgmr.msra.gmra.mrb[8].mxu0 %v7294_v10  ;;  %4417 = vmatmul.mubr.f32.vlgmr.msra.gmra.mrb[8].mxu1 %v7294_v10 }
 0x2a6   : > { %3706 = vmatprep.mubr.f32.mxu0 %v7858_v28  ;;  %4422 = vmatprep.mubr.f32.mxu1 %v7858_v28 }
 0x2a9   : > { %3708 = vmatmul.mubr.f32.gmra.mrb[10].mxu0 %v7304_v26  ;;  %4424 = vmatmul.mubr.f32.gmra.mrb[10].mxu1 %v7304_v26 }
 0x2aa   : > { %3713 = vmatprep.mubr.f32.mxu0 %v7858_v28  ;;  %4429 = vmatprep.mubr.f32.mxu1 %v7858_v28 }
 0x2ad   : > { %3715 = vmatmul.mubr.f32.gmra.mrb[12].mxu0 %v7321_v7  ;;  %4431 = vmatmul.mubr.f32.gmra.mrb[12].mxu1 %v7321_v7 }
 0x2ae   : > { %3720 = vmatprep.mubr.f32.mxu0 %v7858_v28  ;;  %4436 = vmatprep.mubr.f32.mxu1 %v7858_v28 }
 0x2b1   : > { %3722 = vmatmul.mubr.f32.gmra.mrb[14].mxu0 %v7340_v14  ;;  %4438 = vmatmul.mubr.f32.gmra.mrb[14].mxu1 %v7340_v14 }
 0x318   : > { %v2222_v63 = vpop.f32.mrb[0].mxu0  ;;  %v2938_v54 = vpop.f32.mrb[0].mxu1 }
 0x319   : > { %2980 = vst [vmem:[%s7514_s29] sm:$0xff] %v2222_v63  ;;  %2982 = vst [vmem:[%s7514_s29 + $0x10] sm:$0xff] %v2938_v54  ;;  %v2224_v2 = vpop.f32.mrb[1].mxu0  ;;  %v2940_v24 = vpop.f32.mrb[1].mxu1 }
 0x31a   : > { %2981 = vst [vmem:[%s7514_s29 + $0x8] sm:$0xff] %v2224_v2  ;;  %2983 = vst [vmem:[%s7514_s29 + $0x18] sm:$0xff] %v2940_v24 }
 0x31c   : > { %v2229_v22 = vpop.f32.mrb[2].mxu0  ;;  %v2945_v12 = vpop.f32.mrb[2].mxu1 }
 0x31d   : > { %v2964_v8 = vadd.f32 %v2229_v22, %v2222_v63  ;;  %2984 = vst [vmem:[%s7514_s29 + $0x20] sm:$0xff] %v2229_v22  ;;  %v2966_v31 = vadd.f32 %v2945_v12, %v2938_v54  ;;  %2986 = vst [vmem:[%s7514_s29 + $0x30] sm:$0xff] %v2945_v12  ;;  %v2231_v4 = vpop.f32.mrb[3].mxu0  ;;  %v2947_v29 = vpop.f32.mrb[3].mxu1 }
 0x31e   : > { %v2965_v56 = vadd.f32 %v2231_v4, %v2224_v2  ;;  %2985 = vst [vmem:[%s7514_s29 + $0x28] sm:$0xff] %v2231_v4  ;;  %v2967_v11 = vadd.f32 %v2947_v29, %v2940_v24  ;;  %2987 = vst [vmem:[%s7514_s29 + $0x38] sm:$0xff] %v2947_v29 }
 0x320   : > { %v2236_v53 = vpop.f32.mrb[4].mxu0  ;;  %v2952_v1 = vpop.f32.mrb[4].mxu1 }
 0x321   : > { %v2968_v5 = vadd.f32 %v2964_v8, %v2236_v53  ;;  %2988 = vst [vmem:[%s7514_s29 + $0x40] sm:$0xff] %v2236_v53  ;;  %v2970_v20 = vadd.f32 %v2966_v31, %v2952_v1  ;;  %2990 = vst [vmem:[%s7514_s29 + $0x50] sm:$0xff] %v2952_v1  ;;  %v2238_v60 = vpop.f32.mrb[5].mxu0  ;;  %v2954_v55 = vpop.f32.mrb[5].mxu1 }
 0x322   : > { %v2969_v37 = vadd.f32 %v2965_v56, %v2238_v60  ;;  %2989 = vst [vmem:[%s7514_s29 + $0x48] sm:$0xff] %v2238_v60  ;;  %v2971_v32 = vadd.f32 %v2967_v11, %v2954_v55  ;;  %2991 = vst [vmem:[%s7514_s29 + $0x58] sm:$0xff] %v2954_v55 }
 0x324   : > { %v2243_v45 = vpop.f32.mrb[6].mxu0  ;;  %v2959_v0 = vpop.f32.mrb[6].mxu1 }
 0x325   : > { %v2972_v41 = vadd.f32 %v2968_v5, %v2243_v45  ;;  %2992 = vst [vmem:[%s7514_s29 + $0x60] sm:$0xff] %v2243_v45  ;;  %v2974_v47 = vadd.f32 %v2970_v20, %v2959_v0  ;;  %2994 = vst [vmem:[%s7514_s29 + $0x70] sm:$0xff] %v2959_v0  ;;  %v2245_v33 = vpop.f32.mrb[7].mxu0  ;;  %v2961_v46 = vpop.f32.mrb[7].mxu1 }
 0x326   : > { %v2973_v27 = vadd.f32 %v2969_v37, %v2245_v33  ;;  %2993 = vst [vmem:[%s7514_s29 + $0x68] sm:$0xff] %v2245_v33  ;;  %v2975_v13 = vadd.f32 %v2971_v32, %v2961_v46  ;;  %2995 = vst [vmem:[%s7514_s29 + $0x78] sm:$0xff] %v2961_v46  ;;  %s5418_s29 = scalar_lea.vmem %s5417_s27, 4096 }
 0x327   : > { %2976 = vst [vmem:[%s7542_s19] sm:$0xff] %v2972_v41  ;;  %2978 = vst [vmem:[%s7542_s19 + $0x10] sm:$0xff] %v2974_v47  ;;  %p5420_p7 = scmp.lt.s32.totalorder %s5418_s29, %s5412_s7 }
 0x329   : > { %p5421_p10 = por %p5420_p7, %p5419_p3 }
 0x32b   : > { %p5422_p13 = pnand %p5421_p10, %p5415_p8 }
 0x32d   : > { %5425 = shalt.err (!%p5422_p13)
}
 0x32e   : > { %s5426_s25 = scalar_lea.hbm %s7538_s10, 2048  ;;  %s5430_s26 = scalar_lea.hbm %s7691_s5, 4096 }
 0x32f   : > { %p5427_p5 = scmp.ne.s32.totalorder %s7538_s10, %s5426_s25  ;;  %p5431_p9 = scmp.lt.u32.totalorder %s7538_s10, %s7691_s5 }
 0x330   : > { %p5432_p12 = scmp.lt.u32.totalorder %s5430_s26, %s5426_s25  ;;  %p5434_p1 = scmp.lt.u32.totalorder %s5426_s25, %s7538_s10 }
 0x331   : > { %p5428_p0 = pnand %p5427_p5, %p5804_p6 }
 0x332   : > { %p5433_p2 = por %p5432_p12, %p5431_p9 }
 0x333   : > { %p5429_p11 = pneg %p5428_p0 }
 0x334   : > { %p5435_p4 = por %p5434_p1, %p5433_p2 }
 0x336   : > { %p5436_p8 = pnand %p5435_p4, %p5429_p11 }
 0x338   : > { %5439 = shalt.err (!%p5436_p8)
}
 0x339   : > { %s7748_s7 = smov 512   ;;  %s5625_s29 = smov 1024   ;;  %2977 = vst [vmem:[%s7542_s19 + $0x8] sm:$0xff] %v2973_v27  ;;  %2979 = vst [vmem:[%s7542_s19 + $0x18] sm:$0xff] %v2975_v13 }
 0x33a   : > { %s5626_s11 = smov 32   ;;  %s4461_s25 = scalar_lea.sflag [#allocation4], %s5849_s14 }
 0x33b   : > { %5078 = dma.vmem_to_hbm [thread:$0]  (%p5804_p6), %s7540_s13, 2048, %s7538_s10, %s7561_s17, %s7748_s7, %s5625_s29, %s5626_s11  }
 0x33c   : > { %s5440_s30 = scalar_lea.vmem %s7555_s12, 512  ;;  %s5627_s26 = smov [#allocation10]  }
 0x33d   : > { %p5441_p3 = scmp.ne.s32.totalorder %s7555_s12, %s5440_s30  ;;  %s5444_s8 = sshll.u32 %s5627_s26, 4  ;;  %s5445_s8 = int_to_ptr.vmem [resolvable:$false] %s5444_s8 }
 0x33e   : > { %s5446_s27 = scalar_lea.vmem %s5445_s8, 1024  ;;  %p5447_p13 = scmp.lt.s32.totalorder %s7555_s12, %s5445_s8 }
 0x33f   : > { %p5442_p7 = pnand %p5441_p3, %p5804_p6  ;;  %p5448_p5 = scmp.lt.s32.totalorder %s5446_s27, %s5440_s30 }
 0x341   : > { %p5443_p10 = pneg %p5442_p7  ;;  %p5449_p0 = por %p5448_p5, %p5447_p13 }
 0x343   : > { %p5450_p11 = pnand %p5449_p0, %p5443_p10 }
 0x345   : > { %5453 = shalt.err (!%p5450_p11)
}
 0x346   : > { %s5454_s13 = scalar_lea.hbm %s7553_s20, 512  ;;  %s5458_s26 = scalar_lea.hbm %s7690_s4, 1024 }
 0x347   : > { %p5455_p9 = scmp.ne.s32.totalorder %s7553_s20, %s5454_s13  ;;  %p5459_p1 = scmp.lt.u32.totalorder %s7553_s20, %s7690_s4 }
 0x348   : > { %p5460_p4 = scmp.lt.u32.totalorder %s5458_s26, %s5454_s13  ;;  %p5462_p3 = scmp.lt.u32.totalorder %s5454_s13, %s7553_s20 }
 0x349   : > { %p5456_p12 = pnand %p5455_p9, %p5804_p6 }
 0x34a   : > { %p5461_p8 = por %p5460_p4, %p5459_p1 }
 0x34b   : > { %p5457_p2 = pneg %p5456_p12 }
 0x34c   : > { %p5463_p7 = por %p5462_p3, %p5461_p8 }
 0x34e   : > { %p5464_p10 = pnand %p5463_p7, %p5457_p2 }
 0x350   : > { %5467 = shalt.err (!%p5464_p10)
}
 0x351   : > { %5077 = dma.vmem_to_hbm [thread:$0]  (%p5804_p6), %s7555_s12, 512, %s7553_s20, %s4461_s25  }
 0x352   : > { %s7877_s30 = sshll.u32 %s5849_s14, 7  ;;  %s7633_s7 = scalar_lea.hbm %s7692_s6, %s7527_s9 }
 0x353   : > { %s7614_s27 = scalar_lea.vmem [#allocation13], %s7877_s30  ;;  %s5628_s13 = smov [#allocation13]  }
 0x354   : > { %s4514_s14 = sshll.u32 %s7614_s27, 4  ;;  %s5472_s10 = sshll.u32 %s5628_s13, 4  ;;  %s7635_s14 = int_to_ptr.vmem [resolvable:$true] %s4514_s14  ;;  %s5473_s10 = int_to_ptr.vmem [resolvable:$false] %s5472_s10 }
 0x355   : > { %s5468_s25 = scalar_lea.vmem %s7635_s14, 2048  ;;  %s5474_s9 = scalar_lea.vmem %s5473_s10, 4096 }
 0x356   : > { %p5469_p13 = scmp.ne.s32.totalorder %s7635_s14, %s5468_s25  ;;  %p5475_p11 = scmp.lt.s32.totalorder %s7635_s14, %s5473_s10 }
 0x357   : > { %p5476_p9 = scmp.lt.s32.totalorder %s5474_s9, %s5468_s25 }
 0x358   : > { %p5470_p5 = pnand %p5469_p13, %p5804_p6 }
 0x359   : > { %p5477_p12 = por %p5476_p9, %p5475_p11 }
 0x35a   : > { %p5471_p0 = pneg %p5470_p5 }
 0x35c   : > { %p5478_p2 = pnand %p5477_p12, %p5471_p0 }
 0x378   : > { %v3702_v18 = vpop.f32.mrb[8].mxu0  ;;  %v4418_v34 = vpop.f32.mrb[8].mxu1 }
 0x379   : > { %4444 = vst [vmem:[%s7614_s27] sm:$0xff] %v3702_v18  ;;  %4446 = vst [vmem:[%s7614_s27 + $0x10] sm:$0xff] %v4418_v34  ;;  %v3704_v51 = vpop.f32.mrb[9].mxu0  ;;  %v4420_v52 = vpop.f32.mrb[9].mxu1 }
 0x37a   : > { %4445 = vst [vmem:[%s7614_s27 + $0x8] sm:$0xff] %v3704_v51  ;;  %4447 = vst [vmem:[%s7614_s27 + $0x18] sm:$0xff] %v4420_v52 }
 0x37c   : > { %v3709_v38 = vpop.f32.mrb[10].mxu0  ;;  %v4425_v28 = vpop.f32.mrb[10].mxu1 }
 0x37d   : > { %4448 = vst [vmem:[%s7614_s27 + $0x20] sm:$0xff] %v3709_v38  ;;  %4450 = vst [vmem:[%s7614_s27 + $0x30] sm:$0xff] %v4425_v28  ;;  %v3711_v9 = vpop.f32.mrb[11].mxu0  ;;  %v4427_v57 = vpop.f32.mrb[11].mxu1 }
 0x37e   : > { %4449 = vst [vmem:[%s7614_s27 + $0x28] sm:$0xff] %v3711_v9  ;;  %4451 = vst [vmem:[%s7614_s27 + $0x38] sm:$0xff] %v4427_v57 }
 0x380   : > { %v3716_v62 = vpop.f32.mrb[12].mxu0  ;;  %v4432_v16 = vpop.f32.mrb[12].mxu1 }
 0x381   : > { %4452 = vst [vmem:[%s7614_s27 + $0x40] sm:$0xff] %v3716_v62  ;;  %4454 = vst [vmem:[%s7614_s27 + $0x50] sm:$0xff] %v4432_v16  ;;  %v3718_v3 = vpop.f32.mrb[13].mxu0  ;;  %v4434_v35 = vpop.f32.mrb[13].mxu1 }
 0x382   : > { %4453 = vst [vmem:[%s7614_s27 + $0x48] sm:$0xff] %v3718_v3  ;;  %4455 = vst [vmem:[%s7614_s27 + $0x58] sm:$0xff] %v4434_v35 }
 0x384   : > { %v3723_v61 = vpop.f32.mrb[14].mxu0  ;;  %v4439_v15 = vpop.f32.mrb[14].mxu1 }
 0x385   : > { %4456 = vst [vmem:[%s7614_s27 + $0x60] sm:$0xff] %v3723_v61  ;;  %4458 = vst [vmem:[%s7614_s27 + $0x70] sm:$0xff] %v4439_v15  ;;  %v3725_v58 = vpop.f32.mrb[15].mxu0  ;;  %v4441_v30 = vpop.f32.mrb[15].mxu1 }
 0x386   : > { %4457 = vst [vmem:[%s7614_s27 + $0x68] sm:$0xff] %v3725_v58  ;;  %4459 = vst [vmem:[%s7614_s27 + $0x78] sm:$0xff] %v4441_v30 }
 0x387   : > { %5481 = shalt.err (!%p5478_p2)
}
 0x388   : > { %s5482_s19 = scalar_lea.hbm %s7633_s7, 2048  ;;  %s5486_s30 = scalar_lea.hbm %s7692_s6, 4096 }
 0x389   : > { %p5483_p1 = scmp.ne.s32.totalorder %s7633_s7, %s5482_s19  ;;  %p5487_p3 = scmp.lt.u32.totalorder %s7633_s7, %s7692_s6 }
 0x38a   : > { %p5488_p7 = scmp.lt.u32.totalorder %s5486_s30, %s5482_s19  ;;  %p5490_p13 = scmp.lt.u32.totalorder %s5482_s19, %s7633_s7 }
 0x38b   : > { %p5484_p4 = pnand %p5483_p1, %p5804_p6 }
 0x38c   : > { %p5489_p10 = por %p5488_p7, %p5487_p3 }
 0x38d   : > { %p5485_p8 = pneg %p5484_p4 }
 0x38e   : > { %p5491_p5 = por %p5490_p13, %p5489_p10 }
 0x390   : > { %p5492_p0 = pnand %p5491_p5, %p5485_p8 }
 0x392   : > { %5495 = shalt.err (!%p5492_p0)
}
 0x393   : > { %s7878_s20 = smov 512  }
 0x394   : > { %5079 = dma.vmem_to_hbm [thread:$0]  (%p5804_p6), %s7635_s14, 2048, %s7633_s7, %s7561_s17, %s7878_s20, %s5625_s29, %s5626_s11  }
 0x395 PF: > { %s4529_s25 = sand.u32 1, %s5534_s21   ;;  %p7879_p11 = scmp.ne.s32.totalorder %s7750_s28, 0 }
 0x396   : > { %p7880_p9 = scmp.ge.s32.totalorder %s5546_s24, 2  ;;  %s4530_s13 = scalar_lea.sflag [#allocation4], %s4529_s25 }
 0x398   : > { %p5098_p12 = pnand %p7880_p9, %p7879_p11 }
 0x39a   : > { %5525 = dma.done.wait (!%p5098_p12), %s4530_s13, 512  }
 0x39b   : > { %5527 = vsyncadd (!%p5098_p12), %s4530_s13, 4294966784  ;;  %s7881_s16 = sadd.s32 4294967294, %s5546_s24  }
 0x39c   : > { %s4538_s10 = sand.u32 1, %s7881_s16  }
 0x39d   : > { %s4539_s9 = scalar_lea.sflag [#allocation12], %s4538_s10 }
 0x39e   : > { %5529 = dma.done.wait (!%p5098_p12), %s4539_s9, 4096  }
 0x39f   : > { %5531 = vsyncadd (!%p5098_p12), %s4539_s9, 4294963200  ;;  %p25_p6 = scmp.ge.s32.totalorder %s5790_s18, 4   ;;  %s7882_s21 = smov %s5538_s22 }
 0x3a0   : > { %s7883_s22 = smov %s5542_s23  ;;  %s7884_s23 = smov %s5800_s15 }
 0x3a1   : > { %s7885_s24 = smov %s5790_s18  ;;  %27 = sbr.rel (!%p25_p6) target bundleno = 9 (0x9), region = 125 }
 0x3a8   :  { %4553 = vsyncpa [#allocation3], 1 }
 0x3a9   :  { %4555 = vsyncpa [#allocation3 + $0x1], 1 }
 0x3aa   :  { %4556 = vsyncpa [#allocation6], 1 }
 0x3ab   :  { %4557 = vsyncpa [#allocation9], 1 }
 0x3ac   :  { %4558 = vsyncpa [#allocation4], 1 }
 0x3ad   :  { %4560 = vsyncpa [#allocation4 + $0x1], 1 }
 0x3ae   :  { %4561 = vsyncpa [#allocation12], 1 }
 0x3af   :  { %4563 = vsyncpa [#allocation12 + $0x1], 1 }

</bundles_post_ra>
